<compile_context>
chip_gen: v7x
topology: tpu7x:2x2x1
jax: 0.10.0
libtpu: 0.0.40
codegen_flags: <defaults>
</compile_context>

<pallas_src>
import math
from functools import partial

import jax
import jax.numpy as jnp
from jax import lax
from jax.experimental import pallas as pl
from jax.experimental.pallas import tpu as pltpu


_LN_EPS = 1e-5


# --------------------------- in-kernel helpers ---------------------------

def _bf16(x):
    return x.astype(jnp.bfloat16)


def _layernorm(h, g, b, eps=_LN_EPS):
    mu = jnp.mean(h, axis=-1, keepdims=True)
    var = jnp.mean(jnp.square(h - mu), axis=-1, keepdims=True)
    return (h - mu) * lax.rsqrt(var + eps) * g + b


def _mha(q3, k3, v3, *, num_heads, scale):
    """Multi-head attention on VMEM-resident tensors.

    q3: (Bb, Sq, D), k3/v3: (Bb, Sk, D).  Heads are selected with 0/1 lane
    masks (no sub-128-lane slicing); per-head scores use a full-D batched MXU
    contraction (zeroed lanes contribute 0).  Returns the per-head outputs
    re-assembled on their head lanes, i.e. concat_h(softmax(q_h k_h^T) v_h),
    so the caller can apply the output projection as ONE fused matmul.
    """
    Bb, Sq, D = q3.shape
    Dh = D // num_heads
    lane = lax.broadcasted_iota(jnp.int32, (1, D), 1)
    qb, kb, vb = _bf16(q3), _bf16(k3), _bf16(v3)
    out = jnp.zeros((Bb, Sq, D), jnp.float32)
    for h in range(num_heads):                    # static unroll
        m = jnp.logical_and(lane >= h * Dh, lane < (h + 1) * Dh)
        qh = qb * m.astype(jnp.bfloat16)          # zero non-head lanes
        s = jnp.einsum('bqd,bkd->bqk', qh, kb,
                       preferred_element_type=jnp.float32) * scale
        s = s - jnp.max(s, axis=-1, keepdims=True)
        p = jnp.exp(s)
        p = p / jnp.sum(p, axis=-1, keepdims=True)   # exact softmax normalization
        o = jnp.einsum('bqk,bkd->bqd', _bf16(p), vb,
                       preferred_element_type=jnp.float32)
        out = out + o * m.astype(jnp.float32)        # keep only head-h lanes
    return out


# ----------------------------- fused kernels -----------------------------

def _encoder_stack_kernel(x_ref,
                          wqkv_ref, bqkv_ref, wo_ref, bo_ref,
                          ln1g_ref, ln1b_ref,
                          w1_ref, b1_ref, w2_ref, b2_ref,
                          ln2g_ref, ln2b_ref,
                          mem_ref,
                          carry,
                          *, num_heads):
    l = pl.program_id(1)
    Bb, S, D = x_ref.shape
    BS = Bb * S
    scale = 1.0 / math.sqrt(D // num_heads)

    @pl.when(l == 0)
    def _():
        carry[...] = x_ref[...].reshape(BS, D)

    h = carry[...]                                           # (BS, D) f32
    hb = _bf16(h)

    # fused QKV projection: one fat MXU matmul (N = 3D)
    qkv = jnp.dot(hb, wqkv_ref[...],
                  preferred_element_type=jnp.float32) + bqkv_ref[...]
    attn = _mha(qkv[:, 0:D].reshape(Bb, S, D),
                qkv[:, D:2 * D].reshape(Bb, S, D),
                qkv[:, 2 * D:3 * D].reshape(Bb, S, D),
                num_heads=num_heads, scale=scale)
    attn = jnp.dot(_bf16(attn.reshape(BS, D)), wo_ref[...],
                   preferred_element_type=jnp.float32) + bo_ref[...]
    h1 = _layernorm(h + attn, ln1g_ref[...], ln1b_ref[...])

    ff = jnp.dot(_bf16(h1), w1_ref[...],
                 preferred_element_type=jnp.float32) + b1_ref[...]
    ff = jnp.maximum(ff, 0.0)                                # ReLU
    ff = jnp.dot(_bf16(ff), w2_ref[...],
                 preferred_element_type=jnp.float32) + b2_ref[...]
    h2 = _layernorm(h1 + ff, ln2g_ref[...], ln2b_ref[...])

    carry[...] = h2

    @pl.when(l == pl.num_programs(1) - 1)
    def _():
        mem_ref[...] = h2.reshape(Bb, S, D)


def _decoder_stack_kernel(x_ref, mem_ref,
                          sa_wqkv_ref, sa_bqkv_ref, sa_wo_ref, sa_bo_ref,
                          ln1g_ref, ln1b_ref,
                          ca_wq_ref, ca_bq_ref, ca_wkv_ref, ca_bkv_ref,
                          ca_wo_ref, ca_bo_ref,
                          ln2g_ref, ln2b_ref,
                          w1_ref, b1_ref, w2_ref, b2_ref,
                          ln3g_ref, ln3b_ref,
                          pw_ref, pb_ref,
                          logits_ref,
                          carry,
                          *, num_heads):
    l = pl.program_id(1)
    Bb, S, D = x_ref.shape
    Sm = mem_ref.shape[1]
    BS = Bb * S
    scale = 1.0 / math.sqrt(D // num_heads)

    @pl.when(l == 0)
    def _():
        carry[...] = x_ref[...].reshape(BS, D)

    h = carry[...]
    hb = _bf16(h)

    # --- self attention (fused QKV) ---
    qkv = jnp.dot(hb, sa_wqkv_ref[...],
                  preferred_element_type=jnp.float32) + sa_bqkv_ref[...]
    attn = _mha(qkv[:, 0:D].reshape(Bb, S, D),
                qkv[:, D:2 * D].reshape(Bb, S, D),
                qkv[:, 2 * D:3 * D].reshape(Bb, S, D),
                num_heads=num_heads, scale=scale)
    attn = jnp.dot(_bf16(attn.reshape(BS, D)), sa_wo_ref[...],
                   preferred_element_type=jnp.float32) + sa_bo_ref[...]
    h1 = _layernorm(h + attn, ln1g_ref[...], ln1b_ref[...])

    # --- cross attention over the (resident) encoder memory ---
    memb = _bf16(mem_ref[...].reshape(Bb * Sm, D))
    q = jnp.dot(_bf16(h1), ca_wq_ref[...],
                preferred_element_type=jnp.float32) + ca_bq_ref[...]
    kv = jnp.dot(memb, ca_wkv_ref[...],
                 preferred_element_type=jnp.float32) + ca_bkv_ref[...]
    cattn = _mha(q.reshape(Bb, S, D),
                 kv[:, 0:D].reshape(Bb, Sm, D),
                 kv[:, D:2 * D].reshape(Bb, Sm, D),
                 num_heads=num_heads, scale=scale)
    cattn = jnp.dot(_bf16(cattn.reshape(BS, D)), ca_wo_ref[...],
                    preferred_element_type=jnp.float32) + ca_bo_ref[...]
    h2 = _layernorm(h1 + cattn, ln2g_ref[...], ln2b_ref[...])

    # --- feed forward ---
    ff = jnp.dot(_bf16(h2), w1_ref[...],
                 preferred_element_type=jnp.float32) + b1_ref[...]
    ff = jnp.maximum(ff, 0.0)
    ff = jnp.dot(_bf16(ff), w2_ref[...],
                 preferred_element_type=jnp.float32) + b2_ref[...]
    h3 = _layernorm(h2 + ff, ln3g_ref[...], ln3b_ref[...])

    carry[...] = h3

    # fused mean-over-seq (PyTorch .mean(dim=0)) + output projection
    @pl.when(l == pl.num_programs(1) - 1)
    def _():
        pooled = jnp.mean(h3.reshape(Bb, S, D), axis=1)      # (Bb, D)
        logits_ref[...] = jnp.dot(_bf16(pooled), pw_ref[...],
                                  preferred_element_type=jnp.float32) + pb_ref[...]


# ----------------------------- host wrappers -----------------------------

def _stacked_spec(shape):
    """(L, *shape) weight array streamed one layer per step of grid axis 1."""
    nd = len(shape)
    return pl.BlockSpec((None,) + tuple(shape), lambda b, l: (l,) + (0,) * nd)


def _const_spec(shape):
    nd = len(shape)
    return pl.BlockSpec(tuple(shape), lambda b, l: (0,) * nd)


def _nbytes(tree):
    return int(sum(a.size * a.dtype.itemsize for a in jax.tree_util.tree_leaves(tree)))


def encoder_stack(x, p, *, num_heads, batch_blocks=1):
    """x: (B, S, D) f32 (PE already added). Returns encoder memory (B, S, D) f32."""
    B, S, D = x.shape
    L, F = p["ff_w1"].shape[0], p["ff_w1"].shape[-1]
    nb = batch_blocks
    assert B % nb == 0
    Bb = B // nb
    tok = pl.BlockSpec((Bb, S, D), lambda b, l: (b, 0, 0))

    flops = L * (6 * B * S * D * D + 4 * num_heads * B * S * S * D
                 + 2 * B * S * D * D + 4 * B * S * D * F)
    ce = pl.CostEstimate(flops=int(flops),
                         transcendentals=int(L * num_heads * B * S * S),
                         bytes_accessed=_nbytes(p) + 2 * int(x.size) * 4)

    return pl.pallas_call(
        partial(_encoder_stack_kernel, num_heads=num_heads),
        out_shape=jax.ShapeDtypeStruct((B, S, D), jnp.float32),
        grid=(nb, L),
        in_specs=[
            tok,                                               # x (carry source)
            _stacked_spec((D, 3 * D)), _stacked_spec((1, 3 * D)),  # wqkv/bqkv
            _stacked_spec((D, D)), _stacked_spec((1, D)),           # wo/bo
            _stacked_spec((1, D)), _stacked_spec((1, D)),           # ln1 g/b
            _stacked_spec((D, F)), _stacked_spec((1, F)),           # ff w1/b1
            _stacked_spec((F, D)), _stacked_spec((1, D)),           # ff w2/b2
            _stacked_spec((1, D)), _stacked_spec((1, D)),           # ln2 g/b
        ],
        out_specs=tok,
        scratch_shapes=[pltpu.VMEM((Bb * S, D), jnp.float32)],
        compiler_params=pltpu.CompilerParams(
            dimension_semantics=("parallel", "arbitrary")),
        cost_estimate=ce,
    )(x,
      p["wqkv"], p["bqkv"], p["wo"], p["bo"],
      p["ln1_g"], p["ln1_b"],
      p["ff_w1"], p["ff_b1"], p["ff_w2"], p["ff_b2"],
      p["ln2_g"], p["ln2_b"])


def decoder_stack_and_project(x, memory, p, proj_w, proj_b, *, num_heads,
                              batch_blocks=1):
    """x: (B, S, D) f32 (PE added), memory: (B, Sm, D) f32.
    Returns (B, OUT_pad) f32 logits (lane-dense padded)."""
    B, S, D = x.shape
    Sm = memory.shape[1]
    L, F = p["ff_w1"].shape[0], p["ff_w1"].shape[-1]
    OUTP = proj_w.shape[1]
    nb = batch_blocks
    assert B % nb == 0
    Bb = B // nb
    tok = pl.BlockSpec((Bb, S, D), lambda b, l: (b, 0, 0))
    mem_spec = pl.BlockSpec((Bb, Sm, D), lambda b, l: (b, 0, 0))
    out_spec = pl.BlockSpec((Bb, OUTP), lambda b, l: (b, 0))

    flops = L * (6 * B * S * D * D + 4 * num_heads * B * S * S * D
                 + 4 * B * S * D * D + 4 * B * Sm * D * D
                 + 4 * num_heads * B * S * Sm * D + 4 * B * S * D * F) \
        + 2 * B * D * OUTP
    ce = pl.CostEstimate(
        flops=int(flops),
        transcendentals=int(L * num_heads * B * S * (S + Sm)),
        bytes_accessed=_nbytes(p) + _nbytes((proj_w, proj_b))
        + int(x.size) * 4 + int(memory.size) * 4 + B * OUTP * 4)

    return pl.pallas_call(
        partial(_decoder_stack_kernel, num_heads=num_heads),
        out_shape=jax.ShapeDtypeStruct((B, OUTP), jnp.float32),
        grid=(nb, L),
        in_specs=[
            tok,                                                   # x
            mem_spec,                                              # memory
            _stacked_spec((D, 3 * D)), _stacked_spec((1, 3 * D)),  # sa wqkv/bqkv
            _stacked_spec((D, D)), _stacked_spec((1, D)),           # sa wo/bo
            _stacked_spec((1, D)), _stacked_spec((1, D)),           # ln1 g/b
            _stacked_spec((D, D)), _stacked_spec((1, D)),           # ca wq/bq
            _stacked_spec((D, 2 * D)), _stacked_spec((1, 2 * D)),   # ca wkv/bkv
            _stacked_spec((D, D)), _stacked_spec((1, D)),           # ca wo/bo
            _stacked_spec((1, D)), _stacked_spec((1, D)),           # ln2 g/b
            _stacked_spec((D, F)), _stacked_spec((1, F)),           # ff w1/b1
            _stacked_spec((F, D)), _stacked_spec((1, D)),           # ff w2/b2
            _stacked_spec((1, D)), _stacked_spec((1, D)),           # ln3 g/b
            _const_spec((D, OUTP)), _const_spec((1, OUTP)),         # proj w/b
        ],
        out_specs=out_spec,
        scratch_shapes=[pltpu.VMEM((Bb * S, D), jnp.float32)],
        compiler_params=pltpu.CompilerParams(
            dimension_semantics=("parallel", "arbitrary")),
        cost_estimate=ce,
    )(x, memory,
      p["sa_wqkv"], p["sa_bqkv"], p["sa_wo"], p["sa_bo"],
      p["ln1_g"], p["ln1_b"],
      p["ca_wq"], p["ca_bq"], p["ca_wkv"], p["ca_bkv"], p["ca_wo"], p["ca_bo"],
      p["ln2_g"], p["ln2_b"],
      p["ff_w1"], p["ff_b1"], p["ff_w2"], p["ff_b2"],
      p["ln3_g"], p["ln3_b"],
      proj_w, proj_b)


# --------------------------- model forward pass ---------------------------

def positional_encoding(max_len, d_model):
    position = jnp.arange(max_len, dtype=jnp.float32)[:, None]
    div_term = jnp.exp(jnp.arange(0, d_model, 2, dtype=jnp.float32)
                       * (-math.log(10000.0) / d_model))
    pe = jnp.zeros((max_len, d_model), jnp.float32)
    pe = pe.at[:, 0::2].set(jnp.sin(position * div_term))
    pe = pe.at[:, 1::2].set(jnp.cos(position * div_term))
    return pe


def action_prediction_transformer_forward(params, z_g, z_r, *, num_heads,
                                           num_future_actions, action_dim,
                                           num_bins, batch_blocks=1):
    assert z_g.ndim == 3 and z_r.ndim == 3
    assert z_g.shape[-1] == z_r.shape[-1]
    B, Sg, D = z_g.shape
    Sr = z_r.shape[1]

    pe = params["pe"]
    # Positional encoding added once on the host (dropout = identity at eval),
    # so the fused stacks never DMA the PE table.
    zg = z_g.astype(jnp.float32) + pe[:Sg][None]
    zr = z_r.astype(jnp.float32) + pe[:Sr][None]

    memory = encoder_stack(zg, params["encoder"], num_heads=num_heads,
                           batch_blocks=batch_blocks)
    logits = decoder_stack_and_project(zr, memory, params["decoder"],
                                       params["proj_w"], params["proj_b"],
                                       num_heads=num_heads,
                                       batch_blocks=batch_blocks)
    out_dim = num_future_actions * action_dim * num_bins
    return logits[:, :out_dim].reshape(B, num_future_actions, action_dim, num_bins)


# ------------------------------- param init -------------------------------

def _stacked_dense(key, L, in_dim, out_dim, scale=0.02):
    kw, kb = jax.random.split(key)
    w = (scale * jax.random.normal(kw, (L, in_dim, out_dim), jnp.float32)
         ).astype(jnp.bfloat16)                       # matmul weights in bf16
    b = scale * jax.random.normal(kb, (L, 1, out_dim), jnp.float32)
    return w, b


def init_encoder_params(key, L, d, ff):
    ks = jax.random.split(key, 4)
    wqkv, bqkv = _stacked_dense(ks[0], L, d, 3 * d)
    wo, bo = _stacked_dense(ks[1], L, d, d)
    w1, b1 = _stacked_dense(ks[2], L, d, ff)
    w2, b2 = _stacked_dense(ks[3], L, ff, d)
    ones = jnp.ones((L, 1, d), jnp.float32)
    zeros = jnp.zeros((L, 1, d), jnp.float32)
    return dict(wqkv=wqkv, bqkv=bqkv, wo=wo, bo=bo,
                ff_w1=w1, ff_b1=b1, ff_w2=w2, ff_b2=b2,
                ln1_g=ones, ln1_b=zeros, ln2_g=ones, ln2_b=zeros)


def init_decoder_params(key, L, d, ff):
    ks = jax.random.split(key, 7)
    sa_wqkv, sa_bqkv = _stacked_dense(ks[0], L, d, 3 * d)
    sa_wo, sa_bo = _stacked_dense(ks[1], L, d, d)
    ca_wq, ca_bq = _stacked_dense(ks[2], L, d, d)
    ca_wkv, ca_bkv = _stacked_dense(ks[3], L, d, 2 * d)
    ca_wo, ca_bo = _stacked_dense(ks[4], L, d, d)
    w1, b1 = _stacked_dense(ks[5], L, d, ff)
    w2, b2 = _stacked_dense(ks[6], L, ff, d)
    ones = jnp.ones((L, 1, d), jnp.float32)
    zeros = jnp.zeros((L, 1, d), jnp.float32)
    return dict(sa_wqkv=sa_wqkv, sa_bqkv=sa_bqkv, sa_wo=sa_wo, sa_bo=sa_bo,
                ca_wq=ca_wq, ca_bq=ca_bq, ca_wkv=ca_wkv, ca_bkv=ca_bkv,
                ca_wo=ca_wo, ca_bo=ca_bo,
                ff_w1=w1, ff_b1=b1, ff_w2=w2, ff_b2=b2,
                ln1_g=ones, ln1_b=zeros, ln2_g=ones, ln2_b=zeros,
                ln3_g=ones, ln3_b=zeros)


def init_output_proj(key, d, out_dim, scale=0.02):
    out_pad = ((out_dim + 127) // 128) * 128   # lane-dense (unmasked) stores
    kw, kb = jax.random.split(key)
    w = scale * jax.random.normal(kw, (d, out_dim), jnp.float32)
    b = scale * jax.random.normal(kb, (1, out_dim), jnp.float32)
    w = jnp.pad(w, ((0, 0), (0, out_pad - out_dim))).astype(jnp.bfloat16)
    b = jnp.pad(b, ((0, 0), (0, out_pad - out_dim)))
    return w, b


# ----------------------------------- main -----------------------------------

if __name__ == "__main__":
    B, S, D = 2, 8, 32
    num_heads = 4
    num_enc_layers, num_dec_layers = 2, 2
    ff_dim = 64
    num_future_actions, action_dim, num_bins = 4, 7, 16
    out_dim = num_future_actions * action_dim * num_bins

    key = jax.random.PRNGKey(0)
    k_enc, k_dec, k_proj, kg, kr = jax.random.split(key, 5)
    proj_w, proj_b = init_output_proj(k_proj, D, out_dim)
    params = dict(
        encoder=init_encoder_params(k_enc, num_enc_layers, D, ff_dim),
        decoder=init_decoder_params(k_dec, num_dec_layers, D, ff_dim),
        proj_w=proj_w, proj_b=proj_b,
        pe=positional_encoding(64, D),
    )

    z_g = jax.random.normal(kg, (B, S, D), jnp.float32)
    z_r = jax.random.normal(kr, (B, S, D), jnp.float32)

    fwd = jax.jit(partial(action_prediction_transformer_forward,
                          num_heads=num_heads,
                          num_future_actions=num_future_actions,
                          action_dim=action_dim,
                          num_bins=num_bins,
                          batch_blocks=1))   # set 2 on v7x to use both TCs
    logits = fwd(params, z_g, z_r)
    jax.block_until_ready(logits)
    assert logits.shape == (B, num_future_actions, action_dim, num_bins)
    assert logits.dtype == jnp.float32
    assert bool(jnp.all(jnp.isfinite(logits)))
    print("KERNEL_OK")
</pallas_src>

<mosaic_0001>
module attributes {stable_mosaic.version = 11 : i64} {
  func.func @_encoder_stack_kernel(%arg0: i32, %arg1: i32, %arg2: memref<2x8x32xf32, #tpu.memory_space<vmem>>, %arg3: memref<1x32x96xbf16, #tpu.memory_space<vmem>>, %arg4: memref<1x1x96xf32, #tpu.memory_space<vmem>>, %arg5: memref<1x32x32xbf16, #tpu.memory_space<vmem>>, %arg6: memref<1x1x32xf32, #tpu.memory_space<vmem>>, %arg7: memref<1x1x32xf32, #tpu.memory_space<vmem>>, %arg8: memref<1x1x32xf32, #tpu.memory_space<vmem>>, %arg9: memref<1x32x64xbf16, #tpu.memory_space<vmem>>, %arg10: memref<1x1x64xf32, #tpu.memory_space<vmem>>, %arg11: memref<1x64x32xbf16, #tpu.memory_space<vmem>>, %arg12: memref<1x1x32xf32, #tpu.memory_space<vmem>>, %arg13: memref<1x1x32xf32, #tpu.memory_space<vmem>>, %arg14: memref<1x1x32xf32, #tpu.memory_space<vmem>>, %arg15: memref<2x8x32xf32, #tpu.memory_space<vmem>>, %arg16: memref<16x32xf32, #tpu.memory_space<vmem>>) attributes {dimension_semantics = [#tpu.dimension_semantics<parallel>, #tpu.dimension_semantics<arbitrary>], iteration_bounds = array<i64: 1, 2>, scalar_prefetch = 0 : i64, scratch_operands = 1 : i64, tpu.core_type = #tpu.core_type<tc>, window_params = [{transform_indices = @transform_0, window_bounds = array<i64: 2, 8, 32>}, {transform_indices = @transform_1, window_bounds = array<i64: 1, 32, 96>}, {transform_indices = @transform_2, window_bounds = array<i64: 1, 1, 96>}, {transform_indices = @transform_3, window_bounds = array<i64: 1, 32, 32>}, {transform_indices = @transform_4, window_bounds = array<i64: 1, 1, 32>}, {transform_indices = @transform_5, window_bounds = array<i64: 1, 1, 32>}, {transform_indices = @transform_6, window_bounds = array<i64: 1, 1, 32>}, {transform_indices = @transform_7, window_bounds = array<i64: 1, 32, 64>}, {transform_indices = @transform_8, window_bounds = array<i64: 1, 1, 64>}, {transform_indices = @transform_9, window_bounds = array<i64: 1, 64, 32>}, {transform_indices = @transform_10, window_bounds = array<i64: 1, 1, 32>}, {transform_indices = @transform_11, window_bounds = array<i64: 1, 1, 32>}, {transform_indices = @transform_12, window_bounds = array<i64: 1, 1, 32>}, {transform_indices = @transform_13, window_bounds = array<i64: 2, 8, 32>}]} {
    %c0_i32 = arith.constant 0 : i32
    %0 = arith.cmpi eq, %arg1, %c0_i32 : i32
    %1 = arith.extui %0 : i1 to i32
    %c0_i32_0 = arith.constant 0 : i32
    %2 = arith.cmpi ne, %1, %c0_i32_0 : i32
    scf.if %2 {
      %c0_80 = arith.constant 0 : index
      %c0_81 = arith.constant 0 : index
      %c0_82 = arith.constant 0 : index
      %232 = vector.load %arg2[%c0_80, %c0_81, %c0_82] : memref<2x8x32xf32, #tpu.memory_space<vmem>>, vector<2x8x32xf32>
      %233 = vector.shape_cast %232 : vector<2x8x32xf32> to vector<16x32xf32>
      %c0_83 = arith.constant 0 : index
      %c0_84 = arith.constant 0 : index
      %234 = vector.load %arg16[%c0_83, %c0_84] : memref<16x32xf32, #tpu.memory_space<vmem>>, vector<16x32xf32>
      tpu.vector_store %arg16[%c0_83, %c0_84], %233 {strides = array<i32>} : memref<16x32xf32, #tpu.memory_space<vmem>>, vector<16x32xf32>,
    } else {
    }
    %c0 = arith.constant 0 : index
    %c0_1 = arith.constant 0 : index
    %3 = vector.load %arg16[%c0, %c0_1] : memref<16x32xf32, #tpu.memory_space<vmem>>, vector<16x32xf32>
    %4 = arith.truncf %3 : vector<16x32xf32> to vector<16x32xbf16>
    %c0_2 = arith.constant 0 : index
    %c0_3 = arith.constant 0 : index
    %c0_4 = arith.constant 0 : index
    %5 = vector.load %arg3[%c0_2, %c0_3, %c0_4] : memref<1x32x96xbf16, #tpu.memory_space<vmem>>, vector<1x32x96xbf16>
    %6 = vector.shape_cast %5 : vector<1x32x96xbf16> to vector<32x96xbf16>
    %cst = arith.constant dense<0.000000e+00> : vector<16x96xf32>
    %7 = tpu.matmul %4, %6, %cst {dimension_numbers = #tpu.dot_dimension_numbers<[1], [0], [0], [1], [0, 0, 1, 1], [], []>} : vector<16x32xbf16>, vector<32x96xbf16>, vector<16x96xf32> -> vector<16x96xf32>
    %c0_5 = arith.constant 0 : index
    %c0_6 = arith.constant 0 : index
    %c0_7 = arith.constant 0 : index
    %8 = vector.load %arg4[%c0_5, %c0_6, %c0_7] : memref<1x1x96xf32, #tpu.memory_space<vmem>>, vector<1x1x96xf32>
    %9 = vector.shape_cast %8 : vector<1x1x96xf32> to vector<1x96xf32>
    %10 = vector.broadcast %9 : vector<1x96xf32> to vector<16x96xf32>
    %11 = arith.addf %7, %10 : vector<16x96xf32>
    %12 = vector.extract_strided_slice %11 {offsets = [0, 0], sizes = [16, 32], strides = [1, 1]} : vector<16x96xf32> to vector<16x32xf32>
    %13 = vector.shape_cast %12 : vector<16x32xf32> to vector<2x8x32xf32>
    %14 = vector.extract_strided_slice %11 {offsets = [0, 32], sizes = [16, 32], strides = [1, 1]} : vector<16x96xf32> to vector<16x32xf32>
    %15 = vector.shape_cast %14 : vector<16x32xf32> to vector<2x8x32xf32>
    %16 = vector.extract_strided_slice %11 {offsets = [0, 64], sizes = [16, 32], strides = [1, 1]} : vector<16x96xf32> to vector<16x32xf32>
    %17 = vector.shape_cast %16 : vector<16x32xf32> to vector<2x8x32xf32>
    %18 = tpu.iota {dimensions = array<i32: 1>} : vector<1x32xi32>
    %19 = arith.truncf %13 : vector<2x8x32xf32> to vector<2x8x32xbf16>
    %20 = arith.truncf %15 : vector<2x8x32xf32> to vector<2x8x32xbf16>
    %21 = arith.truncf %17 : vector<2x8x32xf32> to vector<2x8x32xbf16>
    %cst_8 = arith.constant 0.000000e+00 : f32
    %22 = vector.broadcast %cst_8 : f32 to vector<2x8x32xf32>
    %c0_i32_9 = arith.constant 0 : i32
    %23 = vector.broadcast %c0_i32_9 : i32 to vector<1x32xi32>
    %24 = arith.cmpi sge, %18, %23 : vector<1x32xi32>
    %c8_i32 = arith.constant 8 : i32
    %25 = vector.broadcast %c8_i32 : i32 to vector<1x32xi32>
    %26 = arith.cmpi slt, %18, %25 : vector<1x32xi32>
    %27 = arith.andi %24, %26 : vector<1x32xi1>
    %28 = arith.extui %27 : vector<1x32xi1> to vector<1x32xi32>
    %29 = arith.sitofp %28 : vector<1x32xi32> to vector<1x32xf32>
    %30 = arith.truncf %29 : vector<1x32xf32> to vector<1x32xbf16>
    %31 = vector.shape_cast %30 : vector<1x32xbf16> to vector<1x1x32xbf16>
    %32 = vector.broadcast %31 : vector<1x1x32xbf16> to vector<2x8x32xbf16>
    %33 = arith.mulf %19, %32 : vector<2x8x32xbf16>
    "tpu.trace_start"() <{level = 10 : i32, message = "bqd,bkd->bqk"}> : () -> ()
    %cst_10 = arith.constant dense<0.000000e+00> : vector<2x8x8xf32>
    %34 = tpu.matmul %33, %20, %cst_10 {dimension_numbers = #tpu.dot_dimension_numbers<[2], [2], [1], [1], [0, 0, 0, 1, 1, 1], [0], [0]>} : vector<2x8x32xbf16>, vector<2x8x32xbf16>, vector<2x8x8xf32> -> vector<2x8x8xf32>
    "tpu.trace_stop"() : () -> ()
    %cst_11 = arith.constant 0.353553385 : f32
    %35 = vector.broadcast %cst_11 : f32 to vector<2x8x8xf32>
    %36 = arith.mulf %34, %35 : vector<2x8x8xf32>
    %cst_12 = arith.constant dense<0xFF800000> : vector<2x8xf32>
    %37 = vector.multi_reduction <maximumf>, %36, %cst_12 [2] : vector<2x8x8xf32> to vector<2x8xf32>
    %38 = vector.shape_cast %37 : vector<2x8xf32> to vector<2x8x1xf32>
    %39 = vector.broadcast %38 : vector<2x8x1xf32> to vector<2x8x8xf32>
    %40 = arith.subf %36, %39 : vector<2x8x8xf32>
    %41 = math.exp %40 : vector<2x8x8xf32>
    %cst_13 = arith.constant dense<0.000000e+00> : vector<2x8xf32>
    %42 = vector.multi_reduction <add>, %41, %cst_13 [2] : vector<2x8x8xf32> to vector<2x8xf32>
    %43 = vector.shape_cast %42 : vector<2x8xf32> to vector<2x8x1xf32>
    %44 = vector.broadcast %43 : vector<2x8x1xf32> to vector<2x8x8xf32>
    %45 = arith.divf %41, %44 : vector<2x8x8xf32>
    %46 = arith.truncf %45 : vector<2x8x8xf32> to vector<2x8x8xbf16>
    "tpu.trace_start"() <{level = 10 : i32, message = "bqk,bkd->bqd"}> : () -> ()
    %cst_14 = arith.constant dense<0.000000e+00> : vector<2x8x32xf32>
    %47 = tpu.matmul %46, %21, %cst_14 {dimension_numbers = #tpu.dot_dimension_numbers<[2], [1], [1], [2], [0, 0, 0, 1, 1, 2], [0], [0]>} : vector<2x8x8xbf16>, vector<2x8x32xbf16>, vector<2x8x32xf32> -> vector<2x8x32xf32>
    "tpu.trace_stop"() : () -> ()
    %48 = arith.extui %27 : vector<1x32xi1> to vector<1x32xi32>
    %49 = arith.sitofp %48 : vector<1x32xi32> to vector<1x32xf32>
    %50 = vector.shape_cast %49 : vector<1x32xf32> to vector<1x1x32xf32>
    %51 = vector.broadcast %50 : vector<1x1x32xf32> to vector<2x8x32xf32>
    %52 = arith.mulf %47, %51 : vector<2x8x32xf32>
    %53 = arith.addf %22, %52 : vector<2x8x32xf32>
    %c8_i32_15 = arith.constant 8 : i32
    %54 = vector.broadcast %c8_i32_15 : i32 to vector<1x32xi32>
    %55 = arith.cmpi sge, %18, %54 : vector<1x32xi32>
    %c16_i32 = arith.constant 16 : i32
    %56 = vector.broadcast %c16_i32 : i32 to vector<1x32xi32>
    %57 = arith.cmpi slt, %18, %56 : vector<1x32xi32>
    %58 = arith.andi %55, %57 : vector<1x32xi1>
    %59 = arith.extui %58 : vector<1x32xi1> to vector<1x32xi32>
    %60 = arith.sitofp %59 : vector<1x32xi32> to vector<1x32xf32>
    %61 = arith.truncf %60 : vector<1x32xf32> to vector<1x32xbf16>
    %62 = vector.shape_cast %61 : vector<1x32xbf16> to vector<1x1x32xbf16>
    %63 = vector.broadcast %62 : vector<1x1x32xbf16> to vector<2x8x32xbf16>
    %64 = arith.mulf %19, %63 : vector<2x8x32xbf16>
    "tpu.trace_start"() <{level = 10 : i32, message = "bqd,bkd->bqk"}> : () -> ()
    %cst_16 = arith.constant dense<0.000000e+00> : vector<2x8x8xf32>
    %65 = tpu.matmul %64, %20, %cst_16 {dimension_numbers = #tpu.dot_dimension_numbers<[2], [2], [1], [1], [0, 0, 0, 1, 1, 1], [0], [0]>} : vector<2x8x32xbf16>, vector<2x8x32xbf16>, vector<2x8x8xf32> -> vector<2x8x8xf32>
    "tpu.trace_stop"() : () -> ()
    %cst_17 = arith.constant 0.353553385 : f32
    %66 = vector.broadcast %cst_17 : f32 to vector<2x8x8xf32>
    %67 = arith.mulf %65, %66 : vector<2x8x8xf32>
    %cst_18 = arith.constant dense<0xFF800000> : vector<2x8xf32>
    %68 = vector.multi_reduction <maximumf>, %67, %cst_18 [2] : vector<2x8x8xf32> to vector<2x8xf32>
    %69 = vector.shape_cast %68 : vector<2x8xf32> to vector<2x8x1xf32>
    %70 = vector.broadcast %69 : vector<2x8x1xf32> to vector<2x8x8xf32>
    %71 = arith.subf %67, %70 : vector<2x8x8xf32>
    %72 = math.exp %71 : vector<2x8x8xf32>
    %cst_19 = arith.constant dense<0.000000e+00> : vector<2x8xf32>
    %73 = vector.multi_reduction <add>, %72, %cst_19 [2] : vector<2x8x8xf32> to vector<2x8xf32>
    %74 = vector.shape_cast %73 : vector<2x8xf32> to vector<2x8x1xf32>
    %75 = vector.broadcast %74 : vector<2x8x1xf32> to vector<2x8x8xf32>
    %76 = arith.divf %72, %75 : vector<2x8x8xf32>
    %77 = arith.truncf %76 : vector<2x8x8xf32> to vector<2x8x8xbf16>
    "tpu.trace_start"() <{level = 10 : i32, message = "bqk,bkd->bqd"}> : () -> ()
    %cst_20 = arith.constant dense<0.000000e+00> : vector<2x8x32xf32>
    %78 = tpu.matmul %77, %21, %cst_20 {dimension_numbers = #tpu.dot_dimension_numbers<[2], [1], [1], [2], [0, 0, 0, 1, 1, 2], [0], [0]>} : vector<2x8x8xbf16>, vector<2x8x32xbf16>, vector<2x8x32xf32> -> vector<2x8x32xf32>
    "tpu.trace_stop"() : () -> ()
    %79 = arith.extui %58 : vector<1x32xi1> to vector<1x32xi32>
    %80 = arith.sitofp %79 : vector<1x32xi32> to vector<1x32xf32>
    %81 = vector.shape_cast %80 : vector<1x32xf32> to vector<1x1x32xf32>
    %82 = vector.broadcast %81 : vector<1x1x32xf32> to vector<2x8x32xf32>
    %83 = arith.mulf %78, %82 : vector<2x8x32xf32>
    %84 = arith.addf %53, %83 : vector<2x8x32xf32>
    %c16_i32_21 = arith.constant 16 : i32
    %85 = vector.broadcast %c16_i32_21 : i32 to vector<1x32xi32>
    %86 = arith.cmpi sge, %18, %85 : vector<1x32xi32>
    %c24_i32 = arith.constant 24 : i32
    %87 = vector.broadcast %c24_i32 : i32 to vector<1x32xi32>
    %88 = arith.cmpi slt, %18, %87 : vector<1x32xi32>
    %89 = arith.andi %86, %88 : vector<1x32xi1>
    %90 = arith.extui %89 : vector<1x32xi1> to vector<1x32xi32>
    %91 = arith.sitofp %90 : vector<1x32xi32> to vector<1x32xf32>
    %92 = arith.truncf %91 : vector<1x32xf32> to vector<1x32xbf16>
    %93 = vector.shape_cast %92 : vector<1x32xbf16> to vector<1x1x32xbf16>
    %94 = vector.broadcast %93 : vector<1x1x32xbf16> to vector<2x8x32xbf16>
    %95 = arith.mulf %19, %94 : vector<2x8x32xbf16>
    "tpu.trace_start"() <{level = 10 : i32, message = "bqd,bkd->bqk"}> : () -> ()
    %cst_22 = arith.constant dense<0.000000e+00> : vector<2x8x8xf32>
    %96 = tpu.matmul %95, %20, %cst_22 {dimension_numbers = #tpu.dot_dimension_numbers<[2], [2], [1], [1], [0, 0, 0, 1, 1, 1], [0], [0]>} : vector<2x8x32xbf16>, vector<2x8x32xbf16>, vector<2x8x8xf32> -> vector<2x8x8xf32>
    "tpu.trace_stop"() : () -> ()
    %cst_23 = arith.constant 0.353553385 : f32
    %97 = vector.broadcast %cst_23 : f32 to vector<2x8x8xf32>
    %98 = arith.mulf %96, %97 : vector<2x8x8xf32>
    %cst_24 = arith.constant dense<0xFF800000> : vector<2x8xf32>
    %99 = vector.multi_reduction <maximumf>, %98, %cst_24 [2] : vector<2x8x8xf32> to vector<2x8xf32>
    %100 = vector.shape_cast %99 : vector<2x8xf32> to vector<2x8x1xf32>
    %101 = vector.broadcast %100 : vector<2x8x1xf32> to vector<2x8x8xf32>
    %102 = arith.subf %98, %101 : vector<2x8x8xf32>
    %103 = math.exp %102 : vector<2x8x8xf32>
    %cst_25 = arith.constant dense<0.000000e+00> : vector<2x8xf32>
    %104 = vector.multi_reduction <add>, %103, %cst_25 [2] : vector<2x8x8xf32> to vector<2x8xf32>
    %105 = vector.shape_cast %104 : vector<2x8xf32> to vector<2x8x1xf32>
    %106 = vector.broadcast %105 : vector<2x8x1xf32> to vector<2x8x8xf32>
    %107 = arith.divf %103, %106 : vector<2x8x8xf32>
    %108 = arith.truncf %107 : vector<2x8x8xf32> to vector<2x8x8xbf16>
    "tpu.trace_start"() <{level = 10 : i32, message = "bqk,bkd->bqd"}> : () -> ()
    %cst_26 = arith.constant dense<0.000000e+00> : vector<2x8x32xf32>
    %109 = tpu.matmul %108, %21, %cst_26 {dimension_numbers = #tpu.dot_dimension_numbers<[2], [1], [1], [2], [0, 0, 0, 1, 1, 2], [0], [0]>} : vector<2x8x8xbf16>, vector<2x8x32xbf16>, vector<2x8x32xf32> -> vector<2x8x32xf32>
    "tpu.trace_stop"() : () -> ()
    %110 = arith.extui %89 : vector<1x32xi1> to vector<1x32xi32>
    %111 = arith.sitofp %110 : vector<1x32xi32> to vector<1x32xf32>
    %112 = vector.shape_cast %111 : vector<1x32xf32> to vector<1x1x32xf32>
    %113 = vector.broadcast %112 : vector<1x1x32xf32> to vector<2x8x32xf32>
    %114 = arith.mulf %109, %113 : vector<2x8x32xf32>
    %115 = arith.addf %84, %114 : vector<2x8x32xf32>
    %c24_i32_27 = arith.constant 24 : i32
    %116 = vector.broadcast %c24_i32_27 : i32 to vector<1x32xi32>
    %117 = arith.cmpi sge, %18, %116 : vector<1x32xi32>
    %c32_i32 = arith.constant 32 : i32
    %118 = vector.broadcast %c32_i32 : i32 to vector<1x32xi32>
    %119 = arith.cmpi slt, %18, %118 : vector<1x32xi32>
    %120 = arith.andi %117, %119 : vector<1x32xi1>
    %121 = arith.extui %120 : vector<1x32xi1> to vector<1x32xi32>
    %122 = arith.sitofp %121 : vector<1x32xi32> to vector<1x32xf32>
    %123 = arith.truncf %122 : vector<1x32xf32> to vector<1x32xbf16>
    %124 = vector.shape_cast %123 : vector<1x32xbf16> to vector<1x1x32xbf16>
    %125 = vector.broadcast %124 : vector<1x1x32xbf16> to vector<2x8x32xbf16>
    %126 = arith.mulf %19, %125 : vector<2x8x32xbf16>
    "tpu.trace_start"() <{level = 10 : i32, message = "bqd,bkd->bqk"}> : () -> ()
    %cst_28 = arith.constant dense<0.000000e+00> : vector<2x8x8xf32>
    %127 = tpu.matmul %126, %20, %cst_28 {dimension_numbers = #tpu.dot_dimension_numbers<[2], [2], [1], [1], [0, 0, 0, 1, 1, 1], [0], [0]>} : vector<2x8x32xbf16>, vector<2x8x32xbf16>, vector<2x8x8xf32> -> vector<2x8x8xf32>
    "tpu.trace_stop"() : () -> ()
    %cst_29 = arith.constant 0.353553385 : f32
    %128 = vector.broadcast %cst_29 : f32 to vector<2x8x8xf32>
    %129 = arith.mulf %127, %128 : vector<2x8x8xf32>
    %cst_30 = arith.constant dense<0xFF800000> : vector<2x8xf32>
    %130 = vector.multi_reduction <maximumf>, %129, %cst_30 [2] : vector<2x8x8xf32> to vector<2x8xf32>
    %131 = vector.shape_cast %130 : vector<2x8xf32> to vector<2x8x1xf32>
    %132 = vector.broadcast %131 : vector<2x8x1xf32> to vector<2x8x8xf32>
    %133 = arith.subf %129, %132 : vector<2x8x8xf32>
    %134 = math.exp %133 : vector<2x8x8xf32>
    %cst_31 = arith.constant dense<0.000000e+00> : vector<2x8xf32>
    %135 = vector.multi_reduction <add>, %134, %cst_31 [2] : vector<2x8x8xf32> to vector<2x8xf32>
    %136 = vector.shape_cast %135 : vector<2x8xf32> to vector<2x8x1xf32>
    %137 = vector.broadcast %136 : vector<2x8x1xf32> to vector<2x8x8xf32>
    %138 = arith.divf %134, %137 : vector<2x8x8xf32>
    %139 = arith.truncf %138 : vector<2x8x8xf32> to vector<2x8x8xbf16>
    "tpu.trace_start"() <{level = 10 : i32, message = "bqk,bkd->bqd"}> : () -> ()
    %cst_32 = arith.constant dense<0.000000e+00> : vector<2x8x32xf32>
    %140 = tpu.matmul %139, %21, %cst_32 {dimension_numbers = #tpu.dot_dimension_numbers<[2], [1], [1], [2], [0, 0, 0, 1, 1, 2], [0], [0]>} : vector<2x8x8xbf16>, vector<2x8x32xbf16>, vector<2x8x32xf32> -> vector<2x8x32xf32>
    "tpu.trace_stop"() : () -> ()
    %141 = arith.extui %120 : vector<1x32xi1> to vector<1x32xi32>
    %142 = arith.sitofp %141 : vector<1x32xi32> to vector<1x32xf32>
    %143 = vector.shape_cast %142 : vector<1x32xf32> to vector<1x1x32xf32>
    %144 = vector.broadcast %143 : vector<1x1x32xf32> to vector<2x8x32xf32>
    %145 = arith.mulf %140, %144 : vector<2x8x32xf32>
    %146 = arith.addf %115, %145 : vector<2x8x32xf32>
    %147 = vector.shape_cast %146 : vector<2x8x32xf32> to vector<16x32xf32>
    %148 = arith.truncf %147 : vector<16x32xf32> to vector<16x32xbf16>
    %c0_33 = arith.constant 0 : index
    %c0_34 = arith.constant 0 : index
    %c0_35 = arith.constant 0 : index
    %149 = vector.load %arg5[%c0_33, %c0_34, %c0_35] : memref<1x32x32xbf16, #tpu.memory_space<vmem>>, vector<1x32x32xbf16>
    %150 = vector.shape_cast %149 : vector<1x32x32xbf16> to vector<32x32xbf16>
    %cst_36 = arith.constant dense<0.000000e+00> : vector<16x32xf32>
    %151 = tpu.matmul %148, %150, %cst_36 {dimension_numbers = #tpu.dot_dimension_numbers<[1], [0], [0], [1], [0, 0, 1, 1], [], []>} : vector<16x32xbf16>, vector<32x32xbf16>, vector<16x32xf32> -> vector<16x32xf32>
    %c0_37 = arith.constant 0 : index
    %c0_38 = arith.constant 0 : index
    %c0_39 = arith.constant 0 : index
    %152 = vector.load %arg6[%c0_37, %c0_38, %c0_39] : memref<1x1x32xf32, #tpu.memory_space<vmem>>, vector<1x1x32xf32>
    %153 = vector.shape_cast %152 : vector<1x1x32xf32> to vector<1x32xf32>
    %154 = vector.broadcast %153 : vector<1x32xf32> to vector<16x32xf32>
    %155 = arith.addf %151, %154 : vector<16x32xf32>
    %156 = arith.addf %3, %155 : vector<16x32xf32>
    %c0_40 = arith.constant 0 : index
    %c0_41 = arith.constant 0 : index
    %c0_42 = arith.constant 0 : index
    %157 = vector.load %arg7[%c0_40, %c0_41, %c0_42] : memref<1x1x32xf32, #tpu.memory_space<vmem>>, vector<1x1x32xf32>
    %158 = vector.shape_cast %157 : vector<1x1x32xf32> to vector<1x32xf32>
    %c0_43 = arith.constant 0 : index
    %c0_44 = arith.constant 0 : index
    %c0_45 = arith.constant 0 : index
    %159 = vector.load %arg8[%c0_43, %c0_44, %c0_45] : memref<1x1x32xf32, #tpu.memory_space<vmem>>, vector<1x1x32xf32>
    %160 = vector.shape_cast %159 : vector<1x1x32xf32> to vector<1x32xf32>
    %cst_46 = arith.constant dense<0.000000e+00> : vector<16xf32>
    %161 = vector.multi_reduction <add>, %156, %cst_46 [1] : vector<16x32xf32> to vector<16xf32>
    %162 = vector.shape_cast %161 : vector<16xf32> to vector<16x1xf32>
    %cst_47 = arith.constant 3.200000e+01 : f32
    %163 = vector.broadcast %cst_47 : f32 to vector<16x1xf32>
    %164 = arith.divf %162, %163 : vector<16x1xf32>
    %165 = vector.broadcast %164 : vector<16x1xf32> to vector<16x32xf32>
    %166 = arith.subf %156, %165 : vector<16x32xf32>
    %167 = arith.mulf %166, %166 : vector<16x32xf32>
    %cst_48 = arith.constant dense<0.000000e+00> : vector<16xf32>
    %168 = vector.multi_reduction <add>, %167, %cst_48 [1] : vector<16x32xf32> to vector<16xf32>
    %169 = vector.shape_cast %168 : vector<16xf32> to vector<16x1xf32>
    %cst_49 = arith.constant 3.200000e+01 : f32
    %170 = vector.broadcast %cst_49 : f32 to vector<16x1xf32>
    %171 = arith.divf %169, %170 : vector<16x1xf32>
    %172 = vector.broadcast %164 : vector<16x1xf32> to vector<16x32xf32>
    %173 = arith.subf %156, %172 : vector<16x32xf32>
    %cst_50 = arith.constant 9.99999974E-6 : f32
    %174 = vector.broadcast %cst_50 : f32 to vector<16x1xf32>
    %175 = arith.addf %171, %174 : vector<16x1xf32>
    %176 = math.rsqrt %175 : vector<16x1xf32>
    %177 = vector.broadcast %176 : vector<16x1xf32> to vector<16x32xf32>
    %178 = arith.mulf %173, %177 : vector<16x32xf32>
    %179 = vector.broadcast %158 : vector<1x32xf32> to vector<16x32xf32>
    %180 = arith.mulf %178, %179 : vector<16x32xf32>
    %181 = vector.broadcast %160 : vector<1x32xf32> to vector<16x32xf32>
    %182 = arith.addf %180, %181 : vector<16x32xf32>
    %183 = arith.truncf %182 : vector<16x32xf32> to vector<16x32xbf16>
    %c0_51 = arith.constant 0 : index
    %c0_52 = arith.constant 0 : index
    %c0_53 = arith.constant 0 : index
    %184 = vector.load %arg9[%c0_51, %c0_52, %c0_53] : memref<1x32x64xbf16, #tpu.memory_space<vmem>>, vector<1x32x64xbf16>
    %185 = vector.shape_cast %184 : vector<1x32x64xbf16> to vector<32x64xbf16>
    %cst_54 = arith.constant dense<0.000000e+00> : vector<16x64xf32>
    %186 = tpu.matmul %183, %185, %cst_54 {dimension_numbers = #tpu.dot_dimension_numbers<[1], [0], [0], [1], [0, 0, 1, 1], [], []>} : vector<16x32xbf16>, vector<32x64xbf16>, vector<16x64xf32> -> vector<16x64xf32>
    %c0_55 = arith.constant 0 : index
    %c0_56 = arith.constant 0 : index
    %c0_57 = arith.constant 0 : index
    %187 = vector.load %arg10[%c0_55, %c0_56, %c0_57] : memref<1x1x64xf32, #tpu.memory_space<vmem>>, vector<1x1x64xf32>
    %188 = vector.shape_cast %187 : vector<1x1x64xf32> to vector<1x64xf32>
    %189 = vector.broadcast %188 : vector<1x64xf32> to vector<16x64xf32>
    %190 = arith.addf %186, %189 : vector<16x64xf32>
    %cst_58 = arith.constant 0.000000e+00 : f32
    %191 = vector.broadcast %cst_58 : f32 to vector<16x64xf32>
    %192 = arith.maximumf %190, %191 : vector<16x64xf32>
    %193 = arith.truncf %192 : vector<16x64xf32> to vector<16x64xbf16>
    %c0_59 = arith.constant 0 : index
    %c0_60 = arith.constant 0 : index
    %c0_61 = arith.constant 0 : index
    %194 = vector.load %arg11[%c0_59, %c0_60, %c0_61] : memref<1x64x32xbf16, #tpu.memory_space<vmem>>, vector<1x64x32xbf16>
    %195 = vector.shape_cast %194 : vector<1x64x32xbf16> to vector<64x32xbf16>
    %cst_62 = arith.constant dense<0.000000e+00> : vector<16x32xf32>
    %196 = tpu.matmul %193, %195, %cst_62 {dimension_numbers = #tpu.dot_dimension_numbers<[1], [0], [0], [1], [0, 0, 1, 1], [], []>} : vector<16x64xbf16>, vector<64x32xbf16>, vector<16x32xf32> -> vector<16x32xf32>
    %c0_63 = arith.constant 0 : index
    %c0_64 = arith.constant 0 : index
    %c0_65 = arith.constant 0 : index
    %197 = vector.load %arg12[%c0_63, %c0_64, %c0_65] : memref<1x1x32xf32, #tpu.memory_space<vmem>>, vector<1x1x32xf32>
    %198 = vector.shape_cast %197 : vector<1x1x32xf32> to vector<1x32xf32>
    %199 = vector.broadcast %198 : vector<1x32xf32> to vector<16x32xf32>
    %200 = arith.addf %196, %199 : vector<16x32xf32>
    %201 = arith.addf %182, %200 : vector<16x32xf32>
    %c0_66 = arith.constant 0 : index
    %c0_67 = arith.constant 0 : index
    %c0_68 = arith.constant 0 : index
    %202 = vector.load %arg13[%c0_66, %c0_67, %c0_68] : memref<1x1x32xf32, #tpu.memory_space<vmem>>, vector<1x1x32xf32>
    %203 = vector.shape_cast %202 : vector<1x1x32xf32> to vector<1x32xf32>
    %c0_69 = arith.constant 0 : index
    %c0_70 = arith.constant 0 : index
    %c0_71 = arith.constant 0 : index
    %204 = vector.load %arg14[%c0_69, %c0_70, %c0_71] : memref<1x1x32xf32, #tpu.memory_space<vmem>>, vector<1x1x32xf32>
    %205 = vector.shape_cast %204 : vector<1x1x32xf32> to vector<1x32xf32>
    %cst_72 = arith.constant dense<0.000000e+00> : vector<16xf32>
    %206 = vector.multi_reduction <add>, %201, %cst_72 [1] : vector<16x32xf32> to vector<16xf32>
    %207 = vector.shape_cast %206 : vector<16xf32> to vector<16x1xf32>
    %cst_73 = arith.constant 3.200000e+01 : f32
    %208 = vector.broadcast %cst_73 : f32 to vector<16x1xf32>
    %209 = arith.divf %207, %208 : vector<16x1xf32>
    %210 = vector.broadcast %209 : vector<16x1xf32> to vector<16x32xf32>
    %211 = arith.subf %201, %210 : vector<16x32xf32>
    %212 = arith.mulf %211, %211 : vector<16x32xf32>
    %cst_74 = arith.constant dense<0.000000e+00> : vector<16xf32>
    %213 = vector.multi_reduction <add>, %212, %cst_74 [1] : vector<16x32xf32> to vector<16xf32>
    %214 = vector.shape_cast %213 : vector<16xf32> to vector<16x1xf32>
    %cst_75 = arith.constant 3.200000e+01 : f32
    %215 = vector.broadcast %cst_75 : f32 to vector<16x1xf32>
    %216 = arith.divf %214, %215 : vector<16x1xf32>
    %217 = vector.broadcast %209 : vector<16x1xf32> to vector<16x32xf32>
    %218 = arith.subf %201, %217 : vector<16x32xf32>
    %cst_76 = arith.constant 9.99999974E-6 : f32
    %219 = vector.broadcast %cst_76 : f32 to vector<16x1xf32>
    %220 = arith.addf %216, %219 : vector<16x1xf32>
    %221 = math.rsqrt %220 : vector<16x1xf32>
    %222 = vector.broadcast %221 : vector<16x1xf32> to vector<16x32xf32>
    %223 = arith.mulf %218, %222 : vector<16x32xf32>
    %224 = vector.broadcast %203 : vector<1x32xf32> to vector<16x32xf32>
    %225 = arith.mulf %223, %224 : vector<16x32xf32>
    %226 = vector.broadcast %205 : vector<1x32xf32> to vector<16x32xf32>
    %227 = arith.addf %225, %226 : vector<16x32xf32>
    %c0_77 = arith.constant 0 : index
    %c0_78 = arith.constant 0 : index
    %228 = vector.load %arg16[%c0_77, %c0_78] : memref<16x32xf32, #tpu.memory_space<vmem>>, vector<16x32xf32>
    tpu.vector_store %arg16[%c0_77, %c0_78], %227 {strides = array<i32>} : memref<16x32xf32, #tpu.memory_space<vmem>>, vector<16x32xf32>,
    %c1_i32 = arith.constant 1 : i32
    %229 = arith.cmpi eq, %arg1, %c1_i32 : i32
    %230 = arith.extui %229 : i1 to i32
    %c0_i32_79 = arith.constant 0 : i32
    %231 = arith.cmpi ne, %230, %c0_i32_79 : i32
    scf.if %231 {
      %232 = vector.shape_cast %227 : vector<16x32xf32> to vector<2x8x32xf32>
      %c0_80 = arith.constant 0 : index
      %c0_81 = arith.constant 0 : index
      %c0_82 = arith.constant 0 : index
      %233 = vector.load %arg15[%c0_80, %c0_81, %c0_82] : memref<2x8x32xf32, #tpu.memory_space<vmem>>, vector<2x8x32xf32>
      tpu.vector_store %arg15[%c0_80, %c0_81, %c0_82], %232 {strides = array<i32>} : memref<2x8x32xf32, #tpu.memory_space<vmem>>, vector<2x8x32xf32>,
    } else {
    }
    return
  }
  func.func @transform_0(%arg0: i32, %arg1: i32) -> (i32, i32, i32) {
    %c0_i32 = arith.constant 0 : i32
    %c0_i32_0 = arith.constant 0 : i32
    %c0_i32_1 = arith.constant 0 : i32
    return %arg0, %c0_i32, %c0_i32_0 : i32, i32, i32
  }
  func.func @transform_1(%arg0: i32, %arg1: i32) -> (i32, i32, i32) {
    %c0_i32 = arith.constant 0 : i32
    %c0_i32_0 = arith.constant 0 : i32
    %c0_i32_1 = arith.constant 0 : i32
    return %arg1, %c0_i32, %c0_i32_0 : i32, i32, i32
  }
  func.func @transform_2(%arg0: i32, %arg1: i32) -> (i32, i32, i32) {
    %c0_i32 = arith.constant 0 : i32
    %c0_i32_0 = arith.constant 0 : i32
    %c0_i32_1 = arith.constant 0 : i32
    return %arg1, %c0_i32, %c0_i32_0 : i32, i32, i32
  }
  func.func @transform_3(%arg0: i32, %arg1: i32) -> (i32, i32, i32) {
    %c0_i32 = arith.constant 0 : i32
    %c0_i32_0 = arith.constant 0 : i32
    %c0_i32_1 = arith.constant 0 : i32
    return %arg1, %c0_i32, %c0_i32_0 : i32, i32, i32
  }
  func.func @transform_4(%arg0: i32, %arg1: i32) -> (i32, i32, i32) {
    %c0_i32 = arith.constant 0 : i32
    %c0_i32_0 = arith.constant 0 : i32
    %c0_i32_1 = arith.constant 0 : i32
    return %arg1, %c0_i32, %c0_i32_0 : i32, i32, i32
  }
  func.func @transform_5(%arg0: i32, %arg1: i32) -> (i32, i32, i32) {
    %c0_i32 = arith.constant 0 : i32
    %c0_i32_0 = arith.constant 0 : i32
    %c0_i32_1 = arith.constant 0 : i32
    return %arg1, %c0_i32, %c0_i32_0 : i32, i32, i32
  }
  func.func @transform_6(%arg0: i32, %arg1: i32) -> (i32, i32, i32) {
    %c0_i32 = arith.constant 0 : i32
    %c0_i32_0 = arith.constant 0 : i32
    %c0_i32_1 = arith.constant 0 : i32
    return %arg1, %c0_i32, %c0_i32_0 : i32, i32, i32
  }
  func.func @transform_7(%arg0: i32, %arg1: i32) -> (i32, i32, i32) {
    %c0_i32 = arith.constant 0 : i32
    %c0_i32_0 = arith.constant 0 : i32
    %c0_i32_1 = arith.constant 0 : i32
    return %arg1, %c0_i32, %c0_i32_0 : i32, i32, i32
  }
  func.func @transform_8(%arg0: i32, %arg1: i32) -> (i32, i32, i32) {
    %c0_i32 = arith.constant 0 : i32
    %c0_i32_0 = arith.constant 0 : i32
    %c0_i32_1 = arith.constant 0 : i32
    return %arg1, %c0_i32, %c0_i32_0 : i32, i32, i32
  }
  func.func @transform_9(%arg0: i32, %arg1: i32) -> (i32, i32, i32) {
    %c0_i32 = arith.constant 0 : i32
    %c0_i32_0 = arith.constant 0 : i32
    %c0_i32_1 = arith.constant 0 : i32
    return %arg1, %c0_i32, %c0_i32_0 : i32, i32, i32
  }
  func.func @transform_10(%arg0: i32, %arg1: i32) -> (i32, i32, i32) {
    %c0_i32 = arith.constant 0 : i32
    %c0_i32_0 = arith.constant 0 : i32
    %c0_i32_1 = arith.constant 0 : i32
    return %arg1, %c0_i32, %c0_i32_0 : i32, i32, i32
  }
  func.func @transform_11(%arg0: i32, %arg1: i32) -> (i32, i32, i32) {
    %c0_i32 = arith.constant 0 : i32
    %c0_i32_0 = arith.constant 0 : i32
    %c0_i32_1 = arith.constant 0 : i32
    return %arg1, %c0_i32, %c0_i32_0 : i32, i32, i32
  }
  func.func @transform_12(%arg0: i32, %arg1: i32) -> (i32, i32, i32) {
    %c0_i32 = arith.constant 0 : i32
    %c0_i32_0 = arith.constant 0 : i32
    %c0_i32_1 = arith.constant 0 : i32
    return %arg1, %c0_i32, %c0_i32_0 : i32, i32, i32
  }
  func.func @transform_13(%arg0: i32, %arg1: i32) -> (i32, i32, i32) {
    %c0_i32 = arith.constant 0 : i32
    %c0_i32_0 = arith.constant 0 : i32
    %c0_i32_1 = arith.constant 0 : i32
    return %arg0, %c0_i32, %c0_i32_0 : i32, i32, i32
  }
}

module attributes {stable_mosaic.version = 11 : i64} {
  func.func @_decoder_stack_kernel(%arg0: i32, %arg1: i32, %arg2: memref<2x8x32xf32, #tpu.memory_space<vmem>>, %arg3: memref<2x8x32xf32, #tpu.memory_space<vmem>>, %arg4: memref<1x32x96xbf16, #tpu.memory_space<vmem>>, %arg5: memref<1x1x96xf32, #tpu.memory_space<vmem>>, %arg6: memref<1x32x32xbf16, #tpu.memory_space<vmem>>, %arg7: memref<1x1x32xf32, #tpu.memory_space<vmem>>, %arg8: memref<1x1x32xf32, #tpu.memory_space<vmem>>, %arg9: memref<1x1x32xf32, #tpu.memory_space<vmem>>, %arg10: memref<1x32x32xbf16, #tpu.memory_space<vmem>>, %arg11: memref<1x1x32xf32, #tpu.memory_space<vmem>>, %arg12: memref<1x32x64xbf16, #tpu.memory_space<vmem>>, %arg13: memref<1x1x64xf32, #tpu.memory_space<vmem>>, %arg14: memref<1x32x32xbf16, #tpu.memory_space<vmem>>, %arg15: memref<1x1x32xf32, #tpu.memory_space<vmem>>, %arg16: memref<1x1x32xf32, #tpu.memory_space<vmem>>, %arg17: memref<1x1x32xf32, #tpu.memory_space<vmem>>, %arg18: memref<1x32x64xbf16, #tpu.memory_space<vmem>>, %arg19: memref<1x1x64xf32, #tpu.memory_space<vmem>>, %arg20: memref<1x64x32xbf16, #tpu.memory_space<vmem>>, %arg21: memref<1x1x32xf32, #tpu.memory_space<vmem>>, %arg22: memref<1x1x32xf32, #tpu.memory_space<vmem>>, %arg23: memref<1x1x32xf32, #tpu.memory_space<vmem>>, %arg24: memref<32x512xbf16, #tpu.memory_space<vmem>>, %arg25: memref<1x512xf32, #tpu.memory_space<vmem>>, %arg26: memref<2x512xf32, #tpu.memory_space<vmem>>, %arg27: memref<16x32xf32, #tpu.memory_space<vmem>>) attributes {dimension_semantics = [#tpu.dimension_semantics<parallel>, #tpu.dimension_semantics<arbitrary>], iteration_bounds = array<i64: 1, 2>, scalar_prefetch = 0 : i64, scratch_operands = 1 : i64, tpu.core_type = #tpu.core_type<tc>, window_params = [{transform_indices = @transform_0, window_bounds = array<i64: 2, 8, 32>}, {transform_indices = @transform_1, window_bounds = array<i64: 2, 8, 32>}, {transform_indices = @transform_2, window_bounds = array<i64: 1, 32, 96>}, {transform_indices = @transform_3, window_bounds = array<i64: 1, 1, 96>}, {transform_indices = @transform_4, window_bounds = array<i64: 1, 32, 32>}, {transform_indices = @transform_5, window_bounds = array<i64: 1, 1, 32>}, {transform_indices = @transform_6, window_bounds = array<i64: 1, 1, 32>}, {transform_indices = @transform_7, window_bounds = array<i64: 1, 1, 32>}, {transform_indices = @transform_8, window_bounds = array<i64: 1, 32, 32>}, {transform_indices = @transform_9, window_bounds = array<i64: 1, 1, 32>}, {transform_indices = @transform_10, window_bounds = array<i64: 1, 32, 64>}, {transform_indices = @transform_11, window_bounds = array<i64: 1, 1, 64>}, {transform_indices = @transform_12, window_bounds = array<i64: 1, 32, 32>}, {transform_indices = @transform_13, window_bounds = array<i64: 1, 1, 32>}, {transform_indices = @transform_14, window_bounds = array<i64: 1, 1, 32>}, {transform_indices = @transform_15, window_bounds = array<i64: 1, 1, 32>}, {transform_indices = @transform_16, window_bounds = array<i64: 1, 32, 64>}, {transform_indices = @transform_17, window_bounds = array<i64: 1, 1, 64>}, {transform_indices = @transform_18, window_bounds = array<i64: 1, 64, 32>}, {transform_indices = @transform_19, window_bounds = array<i64: 1, 1, 32>}, {transform_indices = @transform_20, window_bounds = array<i64: 1, 1, 32>}, {transform_indices = @transform_21, window_bounds = array<i64: 1, 1, 32>}, {pipeline_mode = #tpu.pipeline_mode<synchronous>, transform_indices = @transform_22, window_bounds = array<i64: 32, 512>}, {pipeline_mode = #tpu.pipeline_mode<synchronous>, transform_indices = @transform_23, window_bounds = array<i64: 1, 512>}, {transform_indices = @transform_24, window_bounds = array<i64: 2, 512>}]} {
    %c0_i32 = arith.constant 0 : i32
    %0 = arith.cmpi eq, %arg1, %c0_i32 : i32
    %1 = arith.extui %0 : i1 to i32
    %c0_i32_0 = arith.constant 0 : i32
    %2 = arith.cmpi ne, %1, %c0_i32_0 : i32
    scf.if %2 {
      %c0_144 = arith.constant 0 : index
      %c0_145 = arith.constant 0 : index
      %c0_146 = arith.constant 0 : index
      %420 = vector.load %arg2[%c0_144, %c0_145, %c0_146] : memref<2x8x32xf32, #tpu.memory_space<vmem>>, vector<2x8x32xf32>
      %421 = vector.shape_cast %420 : vector<2x8x32xf32> to vector<16x32xf32>
      %c0_147 = arith.constant 0 : index
      %c0_148 = arith.constant 0 : index
      %422 = vector.load %arg27[%c0_147, %c0_148] : memref<16x32xf32, #tpu.memory_space<vmem>>, vector<16x32xf32>
      tpu.vector_store %arg27[%c0_147, %c0_148], %421 {strides = array<i32>} : memref<16x32xf32, #tpu.memory_space<vmem>>, vector<16x32xf32>,
    } else {
    }
    %c0 = arith.constant 0 : index
    %c0_1 = arith.constant 0 : index
    %3 = vector.load %arg27[%c0, %c0_1] : memref<16x32xf32, #tpu.memory_space<vmem>>, vector<16x32xf32>
    %4 = arith.truncf %3 : vector<16x32xf32> to vector<16x32xbf16>
    %c0_2 = arith.constant 0 : index
    %c0_3 = arith.constant 0 : index
    %c0_4 = arith.constant 0 : index
    %5 = vector.load %arg4[%c0_2, %c0_3, %c0_4] : memref<1x32x96xbf16, #tpu.memory_space<vmem>>, vector<1x32x96xbf16>
    %6 = vector.shape_cast %5 : vector<1x32x96xbf16> to vector<32x96xbf16>
    %cst = arith.constant dense<0.000000e+00> : vector<16x96xf32>
    %7 = tpu.matmul %4, %6, %cst {dimension_numbers = #tpu.dot_dimension_numbers<[1], [0], [0], [1], [0, 0, 1, 1], [], []>} : vector<16x32xbf16>, vector<32x96xbf16>, vector<16x96xf32> -> vector<16x96xf32>
    %c0_5 = arith.constant 0 : index
    %c0_6 = arith.constant 0 : index
    %c0_7 = arith.constant 0 : index
    %8 = vector.load %arg5[%c0_5, %c0_6, %c0_7] : memref<1x1x96xf32, #tpu.memory_space<vmem>>, vector<1x1x96xf32>
    %9 = vector.shape_cast %8 : vector<1x1x96xf32> to vector<1x96xf32>
    %10 = vector.broadcast %9 : vector<1x96xf32> to vector<16x96xf32>
    %11 = arith.addf %7, %10 : vector<16x96xf32>
    %12 = vector.extract_strided_slice %11 {offsets = [0, 0], sizes = [16, 32], strides = [1, 1]} : vector<16x96xf32> to vector<16x32xf32>
    %13 = vector.shape_cast %12 : vector<16x32xf32> to vector<2x8x32xf32>
    %14 = vector.extract_strided_slice %11 {offsets = [0, 32], sizes = [16, 32], strides = [1, 1]} : vector<16x96xf32> to vector<16x32xf32>
    %15 = vector.shape_cast %14 : vector<16x32xf32> to vector<2x8x32xf32>
    %16 = vector.extract_strided_slice %11 {offsets = [0, 64], sizes = [16, 32], strides = [1, 1]} : vector<16x96xf32> to vector<16x32xf32>
    %17 = vector.shape_cast %16 : vector<16x32xf32> to vector<2x8x32xf32>
    %18 = tpu.iota {dimensions = array<i32: 1>} : vector<1x32xi32>
    %19 = arith.truncf %13 : vector<2x8x32xf32> to vector<2x8x32xbf16>
    %20 = arith.truncf %15 : vector<2x8x32xf32> to vector<2x8x32xbf16>
    %21 = arith.truncf %17 : vector<2x8x32xf32> to vector<2x8x32xbf16>
    %cst_8 = arith.constant 0.000000e+00 : f32
    %22 = vector.broadcast %cst_8 : f32 to vector<2x8x32xf32>
    %c0_i32_9 = arith.constant 0 : i32
    %23 = vector.broadcast %c0_i32_9 : i32 to vector<1x32xi32>
    %24 = arith.cmpi sge, %18, %23 : vector<1x32xi32>
    %c8_i32 = arith.constant 8 : i32
    %25 = vector.broadcast %c8_i32 : i32 to vector<1x32xi32>
    %26 = arith.cmpi slt, %18, %25 : vector<1x32xi32>
    %27 = arith.andi %24, %26 : vector<1x32xi1>
    %28 = arith.extui %27 : vector<1x32xi1> to vector<1x32xi32>
    %29 = arith.sitofp %28 : vector<1x32xi32> to vector<1x32xf32>
    %30 = arith.truncf %29 : vector<1x32xf32> to vector<1x32xbf16>
    %31 = vector.shape_cast %30 : vector<1x32xbf16> to vector<1x1x32xbf16>
    %32 = vector.broadcast %31 : vector<1x1x32xbf16> to vector<2x8x32xbf16>
    %33 = arith.mulf %19, %32 : vector<2x8x32xbf16>
    "tpu.trace_start"() <{level = 10 : i32, message = "bqd,bkd->bqk"}> : () -> ()
    %cst_10 = arith.constant dense<0.000000e+00> : vector<2x8x8xf32>
    %34 = tpu.matmul %33, %20, %cst_10 {dimension_numbers = #tpu.dot_dimension_numbers<[2], [2], [1], [1], [0, 0, 0, 1, 1, 1], [0], [0]>} : vector<2x8x32xbf16>, vector<2x8x32xbf16>, vector<2x8x8xf32> -> vector<2x8x8xf32>
    "tpu.trace_stop"() : () -> ()
    %cst_11 = arith.constant 0.353553385 : f32
    %35 = vector.broadcast %cst_11 : f32 to vector<2x8x8xf32>
    %36 = arith.mulf %34, %35 : vector<2x8x8xf32>
    %cst_12 = arith.constant dense<0xFF800000> : vector<2x8xf32>
    %37 = vector.multi_reduction <maximumf>, %36, %cst_12 [2] : vector<2x8x8xf32> to vector<2x8xf32>
    %38 = vector.shape_cast %37 : vector<2x8xf32> to vector<2x8x1xf32>
    %39 = vector.broadcast %38 : vector<2x8x1xf32> to vector<2x8x8xf32>
    %40 = arith.subf %36, %39 : vector<2x8x8xf32>
    %41 = math.exp %40 : vector<2x8x8xf32>
    %cst_13 = arith.constant dense<0.000000e+00> : vector<2x8xf32>
    %42 = vector.multi_reduction <add>, %41, %cst_13 [2] : vector<2x8x8xf32> to vector<2x8xf32>
    %43 = vector.shape_cast %42 : vector<2x8xf32> to vector<2x8x1xf32>
    %44 = vector.broadcast %43 : vector<2x8x1xf32> to vector<2x8x8xf32>
    %45 = arith.divf %41, %44 : vector<2x8x8xf32>
    %46 = arith.truncf %45 : vector<2x8x8xf32> to vector<2x8x8xbf16>
    "tpu.trace_start"() <{level = 10 : i32, message = "bqk,bkd->bqd"}> : () -> ()
    %cst_14 = arith.constant dense<0.000000e+00> : vector<2x8x32xf32>
    %47 = tpu.matmul %46, %21, %cst_14 {dimension_numbers = #tpu.dot_dimension_numbers<[2], [1], [1], [2], [0, 0, 0, 1, 1, 2], [0], [0]>} : vector<2x8x8xbf16>, vector<2x8x32xbf16>, vector<2x8x32xf32> -> vector<2x8x32xf32>
    "tpu.trace_stop"() : () -> ()
    %48 = arith.extui %27 : vector<1x32xi1> to vector<1x32xi32>
    %49 = arith.sitofp %48 : vector<1x32xi32> to vector<1x32xf32>
    %50 = vector.shape_cast %49 : vector<1x32xf32> to vector<1x1x32xf32>
    %51 = vector.broadcast %50 : vector<1x1x32xf32> to vector<2x8x32xf32>
    %52 = arith.mulf %47, %51 : vector<2x8x32xf32>
    %53 = arith.addf %22, %52 : vector<2x8x32xf32>
    %c8_i32_15 = arith.constant 8 : i32
    %54 = vector.broadcast %c8_i32_15 : i32 to vector<1x32xi32>
    %55 = arith.cmpi sge, %18, %54 : vector<1x32xi32>
    %c16_i32 = arith.constant 16 : i32
    %56 = vector.broadcast %c16_i32 : i32 to vector<1x32xi32>
    %57 = arith.cmpi slt, %18, %56 : vector<1x32xi32>
    %58 = arith.andi %55, %57 : vector<1x32xi1>
    %59 = arith.extui %58 : vector<1x32xi1> to vector<1x32xi32>
    %60 = arith.sitofp %59 : vector<1x32xi32> to vector<1x32xf32>
    %61 = arith.truncf %60 : vector<1x32xf32> to vector<1x32xbf16>
    %62 = vector.shape_cast %61 : vector<1x32xbf16> to vector<1x1x32xbf16>
    %63 = vector.broadcast %62 : vector<1x1x32xbf16> to vector<2x8x32xbf16>
    %64 = arith.mulf %19, %63 : vector<2x8x32xbf16>
    "tpu.trace_start"() <{level = 10 : i32, message = "bqd,bkd->bqk"}> : () -> ()
    %cst_16 = arith.constant dense<0.000000e+00> : vector<2x8x8xf32>
    %65 = tpu.matmul %64, %20, %cst_16 {dimension_numbers = #tpu.dot_dimension_numbers<[2], [2], [1], [1], [0, 0, 0, 1, 1, 1], [0], [0]>} : vector<2x8x32xbf16>, vector<2x8x32xbf16>, vector<2x8x8xf32> -> vector<2x8x8xf32>
    "tpu.trace_stop"() : () -> ()
    %cst_17 = arith.constant 0.353553385 : f32
    %66 = vector.broadcast %cst_17 : f32 to vector<2x8x8xf32>
    %67 = arith.mulf %65, %66 : vector<2x8x8xf32>
    %cst_18 = arith.constant dense<0xFF800000> : vector<2x8xf32>
    %68 = vector.multi_reduction <maximumf>, %67, %cst_18 [2] : vector<2x8x8xf32> to vector<2x8xf32>
    %69 = vector.shape_cast %68 : vector<2x8xf32> to vector<2x8x1xf32>
    %70 = vector.broadcast %69 : vector<2x8x1xf32> to vector<2x8x8xf32>
    %71 = arith.subf %67, %70 : vector<2x8x8xf32>
    %72 = math.exp %71 : vector<2x8x8xf32>
    %cst_19 = arith.constant dense<0.000000e+00> : vector<2x8xf32>
    %73 = vector.multi_reduction <add>, %72, %cst_19 [2] : vector<2x8x8xf32> to vector<2x8xf32>
    %74 = vector.shape_cast %73 : vector<2x8xf32> to vector<2x8x1xf32>
    %75 = vector.broadcast %74 : vector<2x8x1xf32> to vector<2x8x8xf32>
    %76 = arith.divf %72, %75 : vector<2x8x8xf32>
    %77 = arith.truncf %76 : vector<2x8x8xf32> to vector<2x8x8xbf16>
    "tpu.trace_start"() <{level = 10 : i32, message = "bqk,bkd->bqd"}> : () -> ()
    %cst_20 = arith.constant dense<0.000000e+00> : vector<2x8x32xf32>
    %78 = tpu.matmul %77, %21, %cst_20 {dimension_numbers = #tpu.dot_dimension_numbers<[2], [1], [1], [2], [0, 0, 0, 1, 1, 2], [0], [0]>} : vector<2x8x8xbf16>, vector<2x8x32xbf16>, vector<2x8x32xf32> -> vector<2x8x32xf32>
    "tpu.trace_stop"() : () -> ()
    %79 = arith.extui %58 : vector<1x32xi1> to vector<1x32xi32>
    %80 = arith.sitofp %79 : vector<1x32xi32> to vector<1x32xf32>
    %81 = vector.shape_cast %80 : vector<1x32xf32> to vector<1x1x32xf32>
    %82 = vector.broadcast %81 : vector<1x1x32xf32> to vector<2x8x32xf32>
    %83 = arith.mulf %78, %82 : vector<2x8x32xf32>
    %84 = arith.addf %53, %83 : vector<2x8x32xf32>
    %c16_i32_21 = arith.constant 16 : i32
    %85 = vector.broadcast %c16_i32_21 : i32 to vector<1x32xi32>
    %86 = arith.cmpi sge, %18, %85 : vector<1x32xi32>
    %c24_i32 = arith.constant 24 : i32
    %87 = vector.broadcast %c24_i32 : i32 to vector<1x32xi32>
    %88 = arith.cmpi slt, %18, %87 : vector<1x32xi32>
    %89 = arith.andi %86, %88 : vector<1x32xi1>
    %90 = arith.extui %89 : vector<1x32xi1> to vector<1x32xi32>
    %91 = arith.sitofp %90 : vector<1x32xi32> to vector<1x32xf32>
    %92 = arith.truncf %91 : vector<1x32xf32> to vector<1x32xbf16>
    %93 = vector.shape_cast %92 : vector<1x32xbf16> to vector<1x1x32xbf16>
    %94 = vector.broadcast %93 : vector<1x1x32xbf16> to vector<2x8x32xbf16>
    %95 = arith.mulf %19, %94 : vector<2x8x32xbf16>
    "tpu.trace_start"() <{level = 10 : i32, message = "bqd,bkd->bqk"}> : () -> ()
    %cst_22 = arith.constant dense<0.000000e+00> : vector<2x8x8xf32>
    %96 = tpu.matmul %95, %20, %cst_22 {dimension_numbers = #tpu.dot_dimension_numbers<[2], [2], [1], [1], [0, 0, 0, 1, 1, 1], [0], [0]>} : vector<2x8x32xbf16>, vector<2x8x32xbf16>, vector<2x8x8xf32> -> vector<2x8x8xf32>
    "tpu.trace_stop"() : () -> ()
    %cst_23 = arith.constant 0.353553385 : f32
    %97 = vector.broadcast %cst_23 : f32 to vector<2x8x8xf32>
    %98 = arith.mulf %96, %97 : vector<2x8x8xf32>
    %cst_24 = arith.constant dense<0xFF800000> : vector<2x8xf32>
    %99 = vector.multi_reduction <maximumf>, %98, %cst_24 [2] : vector<2x8x8xf32> to vector<2x8xf32>
    %100 = vector.shape_cast %99 : vector<2x8xf32> to vector<2x8x1xf32>
    %101 = vector.broadcast %100 : vector<2x8x1xf32> to vector<2x8x8xf32>
    %102 = arith.subf %98, %101 : vector<2x8x8xf32>
    %103 = math.exp %102 : vector<2x8x8xf32>
    %cst_25 = arith.constant dense<0.000000e+00> : vector<2x8xf32>
    %104 = vector.multi_reduction <add>, %103, %cst_25 [2] : vector<2x8x8xf32> to vector<2x8xf32>
    %105 = vector.shape_cast %104 : vector<2x8xf32> to vector<2x8x1xf32>
    %106 = vector.broadcast %105 : vector<2x8x1xf32> to vector<2x8x8xf32>
    %107 = arith.divf %103, %106 : vector<2x8x8xf32>
    %108 = arith.truncf %107 : vector<2x8x8xf32> to vector<2x8x8xbf16>
    "tpu.trace_start"() <{level = 10 : i32, message = "bqk,bkd->bqd"}> : () -> ()
    %cst_26 = arith.constant dense<0.000000e+00> : vector<2x8x32xf32>
    %109 = tpu.matmul %108, %21, %cst_26 {dimension_numbers = #tpu.dot_dimension_numbers<[2], [1], [1], [2], [0, 0, 0, 1, 1, 2], [0], [0]>} : vector<2x8x8xbf16>, vector<2x8x32xbf16>, vector<2x8x32xf32> -> vector<2x8x32xf32>
    "tpu.trace_stop"() : () -> ()
    %110 = arith.extui %89 : vector<1x32xi1> to vector<1x32xi32>
    %111 = arith.sitofp %110 : vector<1x32xi32> to vector<1x32xf32>
    %112 = vector.shape_cast %111 : vector<1x32xf32> to vector<1x1x32xf32>
    %113 = vector.broadcast %112 : vector<1x1x32xf32> to vector<2x8x32xf32>
    %114 = arith.mulf %109, %113 : vector<2x8x32xf32>
    %115 = arith.addf %84, %114 : vector<2x8x32xf32>
    %c24_i32_27 = arith.constant 24 : i32
    %116 = vector.broadcast %c24_i32_27 : i32 to vector<1x32xi32>
    %117 = arith.cmpi sge, %18, %116 : vector<1x32xi32>
    %c32_i32 = arith.constant 32 : i32
    %118 = vector.broadcast %c32_i32 : i32 to vector<1x32xi32>
    %119 = arith.cmpi slt, %18, %118 : vector<1x32xi32>
    %120 = arith.andi %117, %119 : vector<1x32xi1>
    %121 = arith.extui %120 : vector<1x32xi1> to vector<1x32xi32>
    %122 = arith.sitofp %121 : vector<1x32xi32> to vector<1x32xf32>
    %123 = arith.truncf %122 : vector<1x32xf32> to vector<1x32xbf16>
    %124 = vector.shape_cast %123 : vector<1x32xbf16> to vector<1x1x32xbf16>
    %125 = vector.broadcast %124 : vector<1x1x32xbf16> to vector<2x8x32xbf16>
    %126 = arith.mulf %19, %125 : vector<2x8x32xbf16>
    "tpu.trace_start"() <{level = 10 : i32, message = "bqd,bkd->bqk"}> : () -> ()
    %cst_28 = arith.constant dense<0.000000e+00> : vector<2x8x8xf32>
    %127 = tpu.matmul %126, %20, %cst_28 {dimension_numbers = #tpu.dot_dimension_numbers<[2], [2], [1], [1], [0, 0, 0, 1, 1, 1], [0], [0]>} : vector<2x8x32xbf16>, vector<2x8x32xbf16>, vector<2x8x8xf32> -> vector<2x8x8xf32>
    "tpu.trace_stop"() : () -> ()
    %cst_29 = arith.constant 0.353553385 : f32
    %128 = vector.broadcast %cst_29 : f32 to vector<2x8x8xf32>
    %129 = arith.mulf %127, %128 : vector<2x8x8xf32>
    %cst_30 = arith.constant dense<0xFF800000> : vector<2x8xf32>
    %130 = vector.multi_reduction <maximumf>, %129, %cst_30 [2] : vector<2x8x8xf32> to vector<2x8xf32>
    %131 = vector.shape_cast %130 : vector<2x8xf32> to vector<2x8x1xf32>
    %132 = vector.broadcast %131 : vector<2x8x1xf32> to vector<2x8x8xf32>
    %133 = arith.subf %129, %132 : vector<2x8x8xf32>
    %134 = math.exp %133 : vector<2x8x8xf32>
    %cst_31 = arith.constant dense<0.000000e+00> : vector<2x8xf32>
    %135 = vector.multi_reduction <add>, %134, %cst_31 [2] : vector<2x8x8xf32> to vector<2x8xf32>
    %136 = vector.shape_cast %135 : vector<2x8xf32> to vector<2x8x1xf32>
    %137 = vector.broadcast %136 : vector<2x8x1xf32> to vector<2x8x8xf32>
    %138 = arith.divf %134, %137 : vector<2x8x8xf32>
    %139 = arith.truncf %138 : vector<2x8x8xf32> to vector<2x8x8xbf16>
    "tpu.trace_start"() <{level = 10 : i32, message = "bqk,bkd->bqd"}> : () -> ()
    %cst_32 = arith.constant dense<0.000000e+00> : vector<2x8x32xf32>
    %140 = tpu.matmul %139, %21, %cst_32 {dimension_numbers = #tpu.dot_dimension_numbers<[2], [1], [1], [2], [0, 0, 0, 1, 1, 2], [0], [0]>} : vector<2x8x8xbf16>, vector<2x8x32xbf16>, vector<2x8x32xf32> -> vector<2x8x32xf32>
    "tpu.trace_stop"() : () -> ()
    %141 = arith.extui %120 : vector<1x32xi1> to vector<1x32xi32>
    %142 = arith.sitofp %141 : vector<1x32xi32> to vector<1x32xf32>
    %143 = vector.shape_cast %142 : vector<1x32xf32> to vector<1x1x32xf32>
    %144 = vector.broadcast %143 : vector<1x1x32xf32> to vector<2x8x32xf32>
    %145 = arith.mulf %140, %144 : vector<2x8x32xf32>
    %146 = arith.addf %115, %145 : vector<2x8x32xf32>
    %147 = vector.shape_cast %146 : vector<2x8x32xf32> to vector<16x32xf32>
    %148 = arith.truncf %147 : vector<16x32xf32> to vector<16x32xbf16>
    %c0_33 = arith.constant 0 : index
    %c0_34 = arith.constant 0 : index
    %c0_35 = arith.constant 0 : index
    %149 = vector.load %arg6[%c0_33, %c0_34, %c0_35] : memref<1x32x32xbf16, #tpu.memory_space<vmem>>, vector<1x32x32xbf16>
    %150 = vector.shape_cast %149 : vector<1x32x32xbf16> to vector<32x32xbf16>
    %cst_36 = arith.constant dense<0.000000e+00> : vector<16x32xf32>
    %151 = tpu.matmul %148, %150, %cst_36 {dimension_numbers = #tpu.dot_dimension_numbers<[1], [0], [0], [1], [0, 0, 1, 1], [], []>} : vector<16x32xbf16>, vector<32x32xbf16>, vector<16x32xf32> -> vector<16x32xf32>
    %c0_37 = arith.constant 0 : index
    %c0_38 = arith.constant 0 : index
    %c0_39 = arith.constant 0 : index
    %152 = vector.load %arg7[%c0_37, %c0_38, %c0_39] : memref<1x1x32xf32, #tpu.memory_space<vmem>>, vector<1x1x32xf32>
    %153 = vector.shape_cast %152 : vector<1x1x32xf32> to vector<1x32xf32>
    %154 = vector.broadcast %153 : vector<1x32xf32> to vector<16x32xf32>
    %155 = arith.addf %151, %154 : vector<16x32xf32>
    %156 = arith.addf %3, %155 : vector<16x32xf32>
    %c0_40 = arith.constant 0 : index
    %c0_41 = arith.constant 0 : index
    %c0_42 = arith.constant 0 : index
    %157 = vector.load %arg8[%c0_40, %c0_41, %c0_42] : memref<1x1x32xf32, #tpu.memory_space<vmem>>, vector<1x1x32xf32>
    %158 = vector.shape_cast %157 : vector<1x1x32xf32> to vector<1x32xf32>
    %c0_43 = arith.constant 0 : index
    %c0_44 = arith.constant 0 : index
    %c0_45 = arith.constant 0 : index
    %159 = vector.load %arg9[%c0_43, %c0_44, %c0_45] : memref<1x1x32xf32, #tpu.memory_space<vmem>>, vector<1x1x32xf32>
    %160 = vector.shape_cast %159 : vector<1x1x32xf32> to vector<1x32xf32>
    %cst_46 = arith.constant dense<0.000000e+00> : vector<16xf32>
    %161 = vector.multi_reduction <add>, %156, %cst_46 [1] : vector<16x32xf32> to vector<16xf32>
    %162 = vector.shape_cast %161 : vector<16xf32> to vector<16x1xf32>
    %cst_47 = arith.constant 3.200000e+01 : f32
    %163 = vector.broadcast %cst_47 : f32 to vector<16x1xf32>
    %164 = arith.divf %162, %163 : vector<16x1xf32>
    %165 = vector.broadcast %164 : vector<16x1xf32> to vector<16x32xf32>
    %166 = arith.subf %156, %165 : vector<16x32xf32>
    %167 = arith.mulf %166, %166 : vector<16x32xf32>
    %cst_48 = arith.constant dense<0.000000e+00> : vector<16xf32>
    %168 = vector.multi_reduction <add>, %167, %cst_48 [1] : vector<16x32xf32> to vector<16xf32>
    %169 = vector.shape_cast %168 : vector<16xf32> to vector<16x1xf32>
    %cst_49 = arith.constant 3.200000e+01 : f32
    %170 = vector.broadcast %cst_49 : f32 to vector<16x1xf32>
    %171 = arith.divf %169, %170 : vector<16x1xf32>
    %172 = vector.broadcast %164 : vector<16x1xf32> to vector<16x32xf32>
    %173 = arith.subf %156, %172 : vector<16x32xf32>
    %cst_50 = arith.constant 9.99999974E-6 : f32
    %174 = vector.broadcast %cst_50 : f32 to vector<16x1xf32>
    %175 = arith.addf %171, %174 : vector<16x1xf32>
    %176 = math.rsqrt %175 : vector<16x1xf32>
    %177 = vector.broadcast %176 : vector<16x1xf32> to vector<16x32xf32>
    %178 = arith.mulf %173, %177 : vector<16x32xf32>
    %179 = vector.broadcast %158 : vector<1x32xf32> to vector<16x32xf32>
    %180 = arith.mulf %178, %179 : vector<16x32xf32>
    %181 = vector.broadcast %160 : vector<1x32xf32> to vector<16x32xf32>
    %182 = arith.addf %180, %181 : vector<16x32xf32>
    %c0_51 = arith.constant 0 : index
    %c0_52 = arith.constant 0 : index
    %c0_53 = arith.constant 0 : index
    %183 = vector.load %arg3[%c0_51, %c0_52, %c0_53] : memref<2x8x32xf32, #tpu.memory_space<vmem>>, vector<2x8x32xf32>
    %184 = vector.shape_cast %183 : vector<2x8x32xf32> to vector<16x32xf32>
    %185 = arith.truncf %184 : vector<16x32xf32> to vector<16x32xbf16>
    %186 = arith.truncf %182 : vector<16x32xf32> to vector<16x32xbf16>
    %c0_54 = arith.constant 0 : index
    %c0_55 = arith.constant 0 : index
    %c0_56 = arith.constant 0 : index
    %187 = vector.load %arg10[%c0_54, %c0_55, %c0_56] : memref<1x32x32xbf16, #tpu.memory_space<vmem>>, vector<1x32x32xbf16>
    %188 = vector.shape_cast %187 : vector<1x32x32xbf16> to vector<32x32xbf16>
    %cst_57 = arith.constant dense<0.000000e+00> : vector<16x32xf32>
    %189 = tpu.matmul %186, %188, %cst_57 {dimension_numbers = #tpu.dot_dimension_numbers<[1], [0], [0], [1], [0, 0, 1, 1], [], []>} : vector<16x32xbf16>, vector<32x32xbf16>, vector<16x32xf32> -> vector<16x32xf32>
    %c0_58 = arith.constant 0 : index
    %c0_59 = arith.constant 0 : index
    %c0_60 = arith.constant 0 : index
    %190 = vector.load %arg11[%c0_58, %c0_59, %c0_60] : memref<1x1x32xf32, #tpu.memory_space<vmem>>, vector<1x1x32xf32>
    %191 = vector.shape_cast %190 : vector<1x1x32xf32> to vector<1x32xf32>
    %192 = vector.broadcast %191 : vector<1x32xf32> to vector<16x32xf32>
    %193 = arith.addf %189, %192 : vector<16x32xf32>
    %c0_61 = arith.constant 0 : index
    %c0_62 = arith.constant 0 : index
    %c0_63 = arith.constant 0 : index
    %194 = vector.load %arg12[%c0_61, %c0_62, %c0_63] : memref<1x32x64xbf16, #tpu.memory_space<vmem>>, vector<1x32x64xbf16>
    %195 = vector.shape_cast %194 : vector<1x32x64xbf16> to vector<32x64xbf16>
    %cst_64 = arith.constant dense<0.000000e+00> : vector<16x64xf32>
    %196 = tpu.matmul %185, %195, %cst_64 {dimension_numbers = #tpu.dot_dimension_numbers<[1], [0], [0], [1], [0, 0, 1, 1], [], []>} : vector<16x32xbf16>, vector<32x64xbf16>, vector<16x64xf32> -> vector<16x64xf32>
    %c0_65 = arith.constant 0 : index
    %c0_66 = arith.constant 0 : index
    %c0_67 = arith.constant 0 : index
    %197 = vector.load %arg13[%c0_65, %c0_66, %c0_67] : memref<1x1x64xf32, #tpu.memory_space<vmem>>, vector<1x1x64xf32>
    %198 = vector.shape_cast %197 : vector<1x1x64xf32> to vector<1x64xf32>
    %199 = vector.broadcast %198 : vector<1x64xf32> to vector<16x64xf32>
    %200 = arith.addf %196, %199 : vector<16x64xf32>
    %201 = vector.shape_cast %193 : vector<16x32xf32> to vector<2x8x32xf32>
    %202 = vector.extract_strided_slice %200 {offsets = [0, 0], sizes = [16, 32], strides = [1, 1]} : vector<16x64xf32> to vector<16x32xf32>
    %203 = vector.shape_cast %202 : vector<16x32xf32> to vector<2x8x32xf32>
    %204 = vector.extract_strided_slice %200 {offsets = [0, 32], sizes = [16, 32], strides = [1, 1]} : vector<16x64xf32> to vector<16x32xf32>
    %205 = vector.shape_cast %204 : vector<16x32xf32> to vector<2x8x32xf32>
    %206 = tpu.iota {dimensions = array<i32: 1>} : vector<1x32xi32>
    %207 = arith.truncf %201 : vector<2x8x32xf32> to vector<2x8x32xbf16>
    %208 = arith.truncf %203 : vector<2x8x32xf32> to vector<2x8x32xbf16>
    %209 = arith.truncf %205 : vector<2x8x32xf32> to vector<2x8x32xbf16>
    %cst_68 = arith.constant 0.000000e+00 : f32
    %210 = vector.broadcast %cst_68 : f32 to vector<2x8x32xf32>
    %c0_i32_69 = arith.constant 0 : i32
    %211 = vector.broadcast %c0_i32_69 : i32 to vector<1x32xi32>
    %212 = arith.cmpi sge, %206, %211 : vector<1x32xi32>
    %c8_i32_70 = arith.constant 8 : i32
    %213 = vector.broadcast %c8_i32_70 : i32 to vector<1x32xi32>
    %214 = arith.cmpi slt, %206, %213 : vector<1x32xi32>
    %215 = arith.andi %212, %214 : vector<1x32xi1>
    %216 = arith.extui %215 : vector<1x32xi1> to vector<1x32xi32>
    %217 = arith.sitofp %216 : vector<1x32xi32> to vector<1x32xf32>
    %218 = arith.truncf %217 : vector<1x32xf32> to vector<1x32xbf16>
    %219 = vector.shape_cast %218 : vector<1x32xbf16> to vector<1x1x32xbf16>
    %220 = vector.broadcast %219 : vector<1x1x32xbf16> to vector<2x8x32xbf16>
    %221 = arith.mulf %207, %220 : vector<2x8x32xbf16>
    "tpu.trace_start"() <{level = 10 : i32, message = "bqd,bkd->bqk"}> : () -> ()
    %cst_71 = arith.constant dense<0.000000e+00> : vector<2x8x8xf32>
    %222 = tpu.matmul %221, %208, %cst_71 {dimension_numbers = #tpu.dot_dimension_numbers<[2], [2], [1], [1], [0, 0, 0, 1, 1, 1], [0], [0]>} : vector<2x8x32xbf16>, vector<2x8x32xbf16>, vector<2x8x8xf32> -> vector<2x8x8xf32>
    "tpu.trace_stop"() : () -> ()
    %cst_72 = arith.constant 0.353553385 : f32
    %223 = vector.broadcast %cst_72 : f32 to vector<2x8x8xf32>
    %224 = arith.mulf %222, %223 : vector<2x8x8xf32>
    %cst_73 = arith.constant dense<0xFF800000> : vector<2x8xf32>
    %225 = vector.multi_reduction <maximumf>, %224, %cst_73 [2] : vector<2x8x8xf32> to vector<2x8xf32>
    %226 = vector.shape_cast %225 : vector<2x8xf32> to vector<2x8x1xf32>
    %227 = vector.broadcast %226 : vector<2x8x1xf32> to vector<2x8x8xf32>
    %228 = arith.subf %224, %227 : vector<2x8x8xf32>
    %229 = math.exp %228 : vector<2x8x8xf32>
    %cst_74 = arith.constant dense<0.000000e+00> : vector<2x8xf32>
    %230 = vector.multi_reduction <add>, %229, %cst_74 [2] : vector<2x8x8xf32> to vector<2x8xf32>
    %231 = vector.shape_cast %230 : vector<2x8xf32> to vector<2x8x1xf32>
    %232 = vector.broadcast %231 : vector<2x8x1xf32> to vector<2x8x8xf32>
    %233 = arith.divf %229, %232 : vector<2x8x8xf32>
    %234 = arith.truncf %233 : vector<2x8x8xf32> to vector<2x8x8xbf16>
    "tpu.trace_start"() <{level = 10 : i32, message = "bqk,bkd->bqd"}> : () -> ()
    %cst_75 = arith.constant dense<0.000000e+00> : vector<2x8x32xf32>
    %235 = tpu.matmul %234, %209, %cst_75 {dimension_numbers = #tpu.dot_dimension_numbers<[2], [1], [1], [2], [0, 0, 0, 1, 1, 2], [0], [0]>} : vector<2x8x8xbf16>, vector<2x8x32xbf16>, vector<2x8x32xf32> -> vector<2x8x32xf32>
    "tpu.trace_stop"() : () -> ()
    %236 = arith.extui %215 : vector<1x32xi1> to vector<1x32xi32>
    %237 = arith.sitofp %236 : vector<1x32xi32> to vector<1x32xf32>
    %238 = vector.shape_cast %237 : vector<1x32xf32> to vector<1x1x32xf32>
    %239 = vector.broadcast %238 : vector<1x1x32xf32> to vector<2x8x32xf32>
    %240 = arith.mulf %235, %239 : vector<2x8x32xf32>
    %241 = arith.addf %210, %240 : vector<2x8x32xf32>
    %c8_i32_76 = arith.constant 8 : i32
    %242 = vector.broadcast %c8_i32_76 : i32 to vector<1x32xi32>
    %243 = arith.cmpi sge, %206, %242 : vector<1x32xi32>
    %c16_i32_77 = arith.constant 16 : i32
    %244 = vector.broadcast %c16_i32_77 : i32 to vector<1x32xi32>
    %245 = arith.cmpi slt, %206, %244 : vector<1x32xi32>
    %246 = arith.andi %243, %245 : vector<1x32xi1>
    %247 = arith.extui %246 : vector<1x32xi1> to vector<1x32xi32>
    %248 = arith.sitofp %247 : vector<1x32xi32> to vector<1x32xf32>
    %249 = arith.truncf %248 : vector<1x32xf32> to vector<1x32xbf16>
    %250 = vector.shape_cast %249 : vector<1x32xbf16> to vector<1x1x32xbf16>
    %251 = vector.broadcast %250 : vector<1x1x32xbf16> to vector<2x8x32xbf16>
    %252 = arith.mulf %207, %251 : vector<2x8x32xbf16>
    "tpu.trace_start"() <{level = 10 : i32, message = "bqd,bkd->bqk"}> : () -> ()
    %cst_78 = arith.constant dense<0.000000e+00> : vector<2x8x8xf32>
    %253 = tpu.matmul %252, %208, %cst_78 {dimension_numbers = #tpu.dot_dimension_numbers<[2], [2], [1], [1], [0, 0, 0, 1, 1, 1], [0], [0]>} : vector<2x8x32xbf16>, vector<2x8x32xbf16>, vector<2x8x8xf32> -> vector<2x8x8xf32>
    "tpu.trace_stop"() : () -> ()
    %cst_79 = arith.constant 0.353553385 : f32
    %254 = vector.broadcast %cst_79 : f32 to vector<2x8x8xf32>
    %255 = arith.mulf %253, %254 : vector<2x8x8xf32>
    %cst_80 = arith.constant dense<0xFF800000> : vector<2x8xf32>
    %256 = vector.multi_reduction <maximumf>, %255, %cst_80 [2] : vector<2x8x8xf32> to vector<2x8xf32>
    %257 = vector.shape_cast %256 : vector<2x8xf32> to vector<2x8x1xf32>
    %258 = vector.broadcast %257 : vector<2x8x1xf32> to vector<2x8x8xf32>
    %259 = arith.subf %255, %258 : vector<2x8x8xf32>
    %260 = math.exp %259 : vector<2x8x8xf32>
    %cst_81 = arith.constant dense<0.000000e+00> : vector<2x8xf32>
    %261 = vector.multi_reduction <add>, %260, %cst_81 [2] : vector<2x8x8xf32> to vector<2x8xf32>
    %262 = vector.shape_cast %261 : vector<2x8xf32> to vector<2x8x1xf32>
    %263 = vector.broadcast %262 : vector<2x8x1xf32> to vector<2x8x8xf32>
    %264 = arith.divf %260, %263 : vector<2x8x8xf32>
    %265 = arith.truncf %264 : vector<2x8x8xf32> to vector<2x8x8xbf16>
    "tpu.trace_start"() <{level = 10 : i32, message = "bqk,bkd->bqd"}> : () -> ()
    %cst_82 = arith.constant dense<0.000000e+00> : vector<2x8x32xf32>
    %266 = tpu.matmul %265, %209, %cst_82 {dimension_numbers = #tpu.dot_dimension_numbers<[2], [1], [1], [2], [0, 0, 0, 1, 1, 2], [0], [0]>} : vector<2x8x8xbf16>, vector<2x8x32xbf16>, vector<2x8x32xf32> -> vector<2x8x32xf32>
    "tpu.trace_stop"() : () -> ()
    %267 = arith.extui %246 : vector<1x32xi1> to vector<1x32xi32>
    %268 = arith.sitofp %267 : vector<1x32xi32> to vector<1x32xf32>
    %269 = vector.shape_cast %268 : vector<1x32xf32> to vector<1x1x32xf32>
    %270 = vector.broadcast %269 : vector<1x1x32xf32> to vector<2x8x32xf32>
    %271 = arith.mulf %266, %270 : vector<2x8x32xf32>
    %272 = arith.addf %241, %271 : vector<2x8x32xf32>
    %c16_i32_83 = arith.constant 16 : i32
    %273 = vector.broadcast %c16_i32_83 : i32 to vector<1x32xi32>
    %274 = arith.cmpi sge, %206, %273 : vector<1x32xi32>
    %c24_i32_84 = arith.constant 24 : i32
    %275 = vector.broadcast %c24_i32_84 : i32 to vector<1x32xi32>
    %276 = arith.cmpi slt, %206, %275 : vector<1x32xi32>
    %277 = arith.andi %274, %276 : vector<1x32xi1>
    %278 = arith.extui %277 : vector<1x32xi1> to vector<1x32xi32>
    %279 = arith.sitofp %278 : vector<1x32xi32> to vector<1x32xf32>
    %280 = arith.truncf %279 : vector<1x32xf32> to vector<1x32xbf16>
    %281 = vector.shape_cast %280 : vector<1x32xbf16> to vector<1x1x32xbf16>
    %282 = vector.broadcast %281 : vector<1x1x32xbf16> to vector<2x8x32xbf16>
    %283 = arith.mulf %207, %282 : vector<2x8x32xbf16>
    "tpu.trace_start"() <{level = 10 : i32, message = "bqd,bkd->bqk"}> : () -> ()
    %cst_85 = arith.constant dense<0.000000e+00> : vector<2x8x8xf32>
    %284 = tpu.matmul %283, %208, %cst_85 {dimension_numbers = #tpu.dot_dimension_numbers<[2], [2], [1], [1], [0, 0, 0, 1, 1, 1], [0], [0]>} : vector<2x8x32xbf16>, vector<2x8x32xbf16>, vector<2x8x8xf32> -> vector<2x8x8xf32>
    "tpu.trace_stop"() : () -> ()
    %cst_86 = arith.constant 0.353553385 : f32
    %285 = vector.broadcast %cst_86 : f32 to vector<2x8x8xf32>
    %286 = arith.mulf %284, %285 : vector<2x8x8xf32>
    %cst_87 = arith.constant dense<0xFF800000> : vector<2x8xf32>
    %287 = vector.multi_reduction <maximumf>, %286, %cst_87 [2] : vector<2x8x8xf32> to vector<2x8xf32>
    %288 = vector.shape_cast %287 : vector<2x8xf32> to vector<2x8x1xf32>
    %289 = vector.broadcast %288 : vector<2x8x1xf32> to vector<2x8x8xf32>
    %290 = arith.subf %286, %289 : vector<2x8x8xf32>
    %291 = math.exp %290 : vector<2x8x8xf32>
    %cst_88 = arith.constant dense<0.000000e+00> : vector<2x8xf32>
    %292 = vector.multi_reduction <add>, %291, %cst_88 [2] : vector<2x8x8xf32> to vector<2x8xf32>
    %293 = vector.shape_cast %292 : vector<2x8xf32> to vector<2x8x1xf32>
    %294 = vector.broadcast %293 : vector<2x8x1xf32> to vector<2x8x8xf32>
    %295 = arith.divf %291, %294 : vector<2x8x8xf32>
    %296 = arith.truncf %295 : vector<2x8x8xf32> to vector<2x8x8xbf16>
    "tpu.trace_start"() <{level = 10 : i32, message = "bqk,bkd->bqd"}> : () -> ()
    %cst_89 = arith.constant dense<0.000000e+00> : vector<2x8x32xf32>
    %297 = tpu.matmul %296, %209, %cst_89 {dimension_numbers = #tpu.dot_dimension_numbers<[2], [1], [1], [2], [0, 0, 0, 1, 1, 2], [0], [0]>} : vector<2x8x8xbf16>, vector<2x8x32xbf16>, vector<2x8x32xf32> -> vector<2x8x32xf32>
    "tpu.trace_stop"() : () -> ()
    %298 = arith.extui %277 : vector<1x32xi1> to vector<1x32xi32>
    %299 = arith.sitofp %298 : vector<1x32xi32> to vector<1x32xf32>
    %300 = vector.shape_cast %299 : vector<1x32xf32> to vector<1x1x32xf32>
    %301 = vector.broadcast %300 : vector<1x1x32xf32> to vector<2x8x32xf32>
    %302 = arith.mulf %297, %301 : vector<2x8x32xf32>
    %303 = arith.addf %272, %302 : vector<2x8x32xf32>
    %c24_i32_90 = arith.constant 24 : i32
    %304 = vector.broadcast %c24_i32_90 : i32 to vector<1x32xi32>
    %305 = arith.cmpi sge, %206, %304 : vector<1x32xi32>
    %c32_i32_91 = arith.constant 32 : i32
    %306 = vector.broadcast %c32_i32_91 : i32 to vector<1x32xi32>
    %307 = arith.cmpi slt, %206, %306 : vector<1x32xi32>
    %308 = arith.andi %305, %307 : vector<1x32xi1>
    %309 = arith.extui %308 : vector<1x32xi1> to vector<1x32xi32>
    %310 = arith.sitofp %309 : vector<1x32xi32> to vector<1x32xf32>
    %311 = arith.truncf %310 : vector<1x32xf32> to vector<1x32xbf16>
    %312 = vector.shape_cast %311 : vector<1x32xbf16> to vector<1x1x32xbf16>
    %313 = vector.broadcast %312 : vector<1x1x32xbf16> to vector<2x8x32xbf16>
    %314 = arith.mulf %207, %313 : vector<2x8x32xbf16>
    "tpu.trace_start"() <{level = 10 : i32, message = "bqd,bkd->bqk"}> : () -> ()
    %cst_92 = arith.constant dense<0.000000e+00> : vector<2x8x8xf32>
    %315 = tpu.matmul %314, %208, %cst_92 {dimension_numbers = #tpu.dot_dimension_numbers<[2], [2], [1], [1], [0, 0, 0, 1, 1, 1], [0], [0]>} : vector<2x8x32xbf16>, vector<2x8x32xbf16>, vector<2x8x8xf32> -> vector<2x8x8xf32>
    "tpu.trace_stop"() : () -> ()
    %cst_93 = arith.constant 0.353553385 : f32
    %316 = vector.broadcast %cst_93 : f32 to vector<2x8x8xf32>
    %317 = arith.mulf %315, %316 : vector<2x8x8xf32>
    %cst_94 = arith.constant dense<0xFF800000> : vector<2x8xf32>
    %318 = vector.multi_reduction <maximumf>, %317, %cst_94 [2] : vector<2x8x8xf32> to vector<2x8xf32>
    %319 = vector.shape_cast %318 : vector<2x8xf32> to vector<2x8x1xf32>
    %320 = vector.broadcast %319 : vector<2x8x1xf32> to vector<2x8x8xf32>
    %321 = arith.subf %317, %320 : vector<2x8x8xf32>
    %322 = math.exp %321 : vector<2x8x8xf32>
    %cst_95 = arith.constant dense<0.000000e+00> : vector<2x8xf32>
    %323 = vector.multi_reduction <add>, %322, %cst_95 [2] : vector<2x8x8xf32> to vector<2x8xf32>
    %324 = vector.shape_cast %323 : vector<2x8xf32> to vector<2x8x1xf32>
    %325 = vector.broadcast %324 : vector<2x8x1xf32> to vector<2x8x8xf32>
    %326 = arith.divf %322, %325 : vector<2x8x8xf32>
    %327 = arith.truncf %326 : vector<2x8x8xf32> to vector<2x8x8xbf16>
    "tpu.trace_start"() <{level = 10 : i32, message = "bqk,bkd->bqd"}> : () -> ()
    %cst_96 = arith.constant dense<0.000000e+00> : vector<2x8x32xf32>
    %328 = tpu.matmul %327, %209, %cst_96 {dimension_numbers = #tpu.dot_dimension_numbers<[2], [1], [1], [2], [0, 0, 0, 1, 1, 2], [0], [0]>} : vector<2x8x8xbf16>, vector<2x8x32xbf16>, vector<2x8x32xf32> -> vector<2x8x32xf32>
    "tpu.trace_stop"() : () -> ()
    %329 = arith.extui %308 : vector<1x32xi1> to vector<1x32xi32>
    %330 = arith.sitofp %329 : vector<1x32xi32> to vector<1x32xf32>
    %331 = vector.shape_cast %330 : vector<1x32xf32> to vector<1x1x32xf32>
    %332 = vector.broadcast %331 : vector<1x1x32xf32> to vector<2x8x32xf32>
    %333 = arith.mulf %328, %332 : vector<2x8x32xf32>
    %334 = arith.addf %303, %333 : vector<2x8x32xf32>
    %335 = vector.shape_cast %334 : vector<2x8x32xf32> to vector<16x32xf32>
    %336 = arith.truncf %335 : vector<16x32xf32> to vector<16x32xbf16>
    %c0_97 = arith.constant 0 : index
    %c0_98 = arith.constant 0 : index
    %c0_99 = arith.constant 0 : index
    %337 = vector.load %arg14[%c0_97, %c0_98, %c0_99] : memref<1x32x32xbf16, #tpu.memory_space<vmem>>, vector<1x32x32xbf16>
    %338 = vector.shape_cast %337 : vector<1x32x32xbf16> to vector<32x32xbf16>
    %cst_100 = arith.constant dense<0.000000e+00> : vector<16x32xf32>
    %339 = tpu.matmul %336, %338, %cst_100 {dimension_numbers = #tpu.dot_dimension_numbers<[1], [0], [0], [1], [0, 0, 1, 1], [], []>} : vector<16x32xbf16>, vector<32x32xbf16>, vector<16x32xf32> -> vector<16x32xf32>
    %c0_101 = arith.constant 0 : index
    %c0_102 = arith.constant 0 : index
    %c0_103 = arith.constant 0 : index
    %340 = vector.load %arg15[%c0_101, %c0_102, %c0_103] : memref<1x1x32xf32, #tpu.memory_space<vmem>>, vector<1x1x32xf32>
    %341 = vector.shape_cast %340 : vector<1x1x32xf32> to vector<1x32xf32>
    %342 = vector.broadcast %341 : vector<1x32xf32> to vector<16x32xf32>
    %343 = arith.addf %339, %342 : vector<16x32xf32>
    %344 = arith.addf %182, %343 : vector<16x32xf32>
    %c0_104 = arith.constant 0 : index
    %c0_105 = arith.constant 0 : index
    %c0_106 = arith.constant 0 : index
    %345 = vector.load %arg16[%c0_104, %c0_105, %c0_106] : memref<1x1x32xf32, #tpu.memory_space<vmem>>, vector<1x1x32xf32>
    %346 = vector.shape_cast %345 : vector<1x1x32xf32> to vector<1x32xf32>
    %c0_107 = arith.constant 0 : index
    %c0_108 = arith.constant 0 : index
    %c0_109 = arith.constant 0 : index
    %347 = vector.load %arg17[%c0_107, %c0_108, %c0_109] : memref<1x1x32xf32, #tpu.memory_space<vmem>>, vector<1x1x32xf32>
    %348 = vector.shape_cast %347 : vector<1x1x32xf32> to vector<1x32xf32>
    %cst_110 = arith.constant dense<0.000000e+00> : vector<16xf32>
    %349 = vector.multi_reduction <add>, %344, %cst_110 [1] : vector<16x32xf32> to vector<16xf32>
    %350 = vector.shape_cast %349 : vector<16xf32> to vector<16x1xf32>
    %cst_111 = arith.constant 3.200000e+01 : f32
    %351 = vector.broadcast %cst_111 : f32 to vector<16x1xf32>
    %352 = arith.divf %350, %351 : vector<16x1xf32>
    %353 = vector.broadcast %352 : vector<16x1xf32> to vector<16x32xf32>
    %354 = arith.subf %344, %353 : vector<16x32xf32>
    %355 = arith.mulf %354, %354 : vector<16x32xf32>
    %cst_112 = arith.constant dense<0.000000e+00> : vector<16xf32>
    %356 = vector.multi_reduction <add>, %355, %cst_112 [1] : vector<16x32xf32> to vector<16xf32>
    %357 = vector.shape_cast %356 : vector<16xf32> to vector<16x1xf32>
    %cst_113 = arith.constant 3.200000e+01 : f32
    %358 = vector.broadcast %cst_113 : f32 to vector<16x1xf32>
    %359 = arith.divf %357, %358 : vector<16x1xf32>
    %360 = vector.broadcast %352 : vector<16x1xf32> to vector<16x32xf32>
    %361 = arith.subf %344, %360 : vector<16x32xf32>
    %cst_114 = arith.constant 9.99999974E-6 : f32
    %362 = vector.broadcast %cst_114 : f32 to vector<16x1xf32>
    %363 = arith.addf %359, %362 : vector<16x1xf32>
    %364 = math.rsqrt %363 : vector<16x1xf32>
    %365 = vector.broadcast %364 : vector<16x1xf32> to vector<16x32xf32>
    %366 = arith.mulf %361, %365 : vector<16x32xf32>
    %367 = vector.broadcast %346 : vector<1x32xf32> to vector<16x32xf32>
    %368 = arith.mulf %366, %367 : vector<16x32xf32>
    %369 = vector.broadcast %348 : vector<1x32xf32> to vector<16x32xf32>
    %370 = arith.addf %368, %369 : vector<16x32xf32>
    %371 = arith.truncf %370 : vector<16x32xf32> to vector<16x32xbf16>
    %c0_115 = arith.constant 0 : index
    %c0_116 = arith.constant 0 : index
    %c0_117 = arith.constant 0 : index
    %372 = vector.load %arg18[%c0_115, %c0_116, %c0_117] : memref<1x32x64xbf16, #tpu.memory_space<vmem>>, vector<1x32x64xbf16>
    %373 = vector.shape_cast %372 : vector<1x32x64xbf16> to vector<32x64xbf16>
    %cst_118 = arith.constant dense<0.000000e+00> : vector<16x64xf32>
    %374 = tpu.matmul %371, %373, %cst_118 {dimension_numbers = #tpu.dot_dimension_numbers<[1], [0], [0], [1], [0, 0, 1, 1], [], []>} : vector<16x32xbf16>, vector<32x64xbf16>, vector<16x64xf32> -> vector<16x64xf32>
    %c0_119 = arith.constant 0 : index
    %c0_120 = arith.constant 0 : index
    %c0_121 = arith.constant 0 : index
    %375 = vector.load %arg19[%c0_119, %c0_120, %c0_121] : memref<1x1x64xf32, #tpu.memory_space<vmem>>, vector<1x1x64xf32>
    %376 = vector.shape_cast %375 : vector<1x1x64xf32> to vector<1x64xf32>
    %377 = vector.broadcast %376 : vector<1x64xf32> to vector<16x64xf32>
    %378 = arith.addf %374, %377 : vector<16x64xf32>
    %cst_122 = arith.constant 0.000000e+00 : f32
    %379 = vector.broadcast %cst_122 : f32 to vector<16x64xf32>
    %380 = arith.maximumf %378, %379 : vector<16x64xf32>
    %381 = arith.truncf %380 : vector<16x64xf32> to vector<16x64xbf16>
    %c0_123 = arith.constant 0 : index
    %c0_124 = arith.constant 0 : index
    %c0_125 = arith.constant 0 : index
    %382 = vector.load %arg20[%c0_123, %c0_124, %c0_125] : memref<1x64x32xbf16, #tpu.memory_space<vmem>>, vector<1x64x32xbf16>
    %383 = vector.shape_cast %382 : vector<1x64x32xbf16> to vector<64x32xbf16>
    %cst_126 = arith.constant dense<0.000000e+00> : vector<16x32xf32>
    %384 = tpu.matmul %381, %383, %cst_126 {dimension_numbers = #tpu.dot_dimension_numbers<[1], [0], [0], [1], [0, 0, 1, 1], [], []>} : vector<16x64xbf16>, vector<64x32xbf16>, vector<16x32xf32> -> vector<16x32xf32>
    %c0_127 = arith.constant 0 : index
    %c0_128 = arith.constant 0 : index
    %c0_129 = arith.constant 0 : index
    %385 = vector.load %arg21[%c0_127, %c0_128, %c0_129] : memref<1x1x32xf32, #tpu.memory_space<vmem>>, vector<1x1x32xf32>
    %386 = vector.shape_cast %385 : vector<1x1x32xf32> to vector<1x32xf32>
    %387 = vector.broadcast %386 : vector<1x32xf32> to vector<16x32xf32>
    %388 = arith.addf %384, %387 : vector<16x32xf32>
    %389 = arith.addf %370, %388 : vector<16x32xf32>
    %c0_130 = arith.constant 0 : index
    %c0_131 = arith.constant 0 : index
    %c0_132 = arith.constant 0 : index
    %390 = vector.load %arg22[%c0_130, %c0_131, %c0_132] : memref<1x1x32xf32, #tpu.memory_space<vmem>>, vector<1x1x32xf32>
    %391 = vector.shape_cast %390 : vector<1x1x32xf32> to vector<1x32xf32>
    %c0_133 = arith.constant 0 : index
    %c0_134 = arith.constant 0 : index
    %c0_135 = arith.constant 0 : index
    %392 = vector.load %arg23[%c0_133, %c0_134, %c0_135] : memref<1x1x32xf32, #tpu.memory_space<vmem>>, vector<1x1x32xf32>
    %393 = vector.shape_cast %392 : vector<1x1x32xf32> to vector<1x32xf32>
    %cst_136 = arith.constant dense<0.000000e+00> : vector<16xf32>
    %394 = vector.multi_reduction <add>, %389, %cst_136 [1] : vector<16x32xf32> to vector<16xf32>
    %395 = vector.shape_cast %394 : vector<16xf32> to vector<16x1xf32>
    %cst_137 = arith.constant 3.200000e+01 : f32
    %396 = vector.broadcast %cst_137 : f32 to vector<16x1xf32>
    %397 = arith.divf %395, %396 : vector<16x1xf32>
    %398 = vector.broadcast %397 : vector<16x1xf32> to vector<16x32xf32>
    %399 = arith.subf %389, %398 : vector<16x32xf32>
    %400 = arith.mulf %399, %399 : vector<16x32xf32>
    %cst_138 = arith.constant dense<0.000000e+00> : vector<16xf32>
    %401 = vector.multi_reduction <add>, %400, %cst_138 [1] : vector<16x32xf32> to vector<16xf32>
    %402 = vector.shape_cast %401 : vector<16xf32> to vector<16x1xf32>
    %cst_139 = arith.constant 3.200000e+01 : f32
    %403 = vector.broadcast %cst_139 : f32 to vector<16x1xf32>
    %404 = arith.divf %402, %403 : vector<16x1xf32>
    %405 = vector.broadcast %397 : vector<16x1xf32> to vector<16x32xf32>
    %406 = arith.subf %389, %405 : vector<16x32xf32>
    %cst_140 = arith.constant 9.99999974E-6 : f32
    %407 = vector.broadcast %cst_140 : f32 to vector<16x1xf32>
    %408 = arith.addf %404, %407 : vector<16x1xf32>
    %409 = math.rsqrt %408 : vector<16x1xf32>
    %410 = vector.broadcast %409 : vector<16x1xf32> to vector<16x32xf32>
    %411 = arith.mulf %406, %410 : vector<16x32xf32>
    %412 = vector.broadcast %391 : vector<1x32xf32> to vector<16x32xf32>
    %413 = arith.mulf %411, %412 : vector<16x32xf32>
    %414 = vector.broadcast %393 : vector<1x32xf32> to vector<16x32xf32>
    %415 = arith.addf %413, %414 : vector<16x32xf32>
    %c0_141 = arith.constant 0 : index
    %c0_142 = arith.constant 0 : index
    %416 = vector.load %arg27[%c0_141, %c0_142] : memref<16x32xf32, #tpu.memory_space<vmem>>, vector<16x32xf32>
    tpu.vector_store %arg27[%c0_141, %c0_142], %415 {strides = array<i32>} : memref<16x32xf32, #tpu.memory_space<vmem>>, vector<16x32xf32>,
    %c1_i32 = arith.constant 1 : i32
    %417 = arith.cmpi eq, %arg1, %c1_i32 : i32
    %418 = arith.extui %417 : i1 to i32
    %c0_i32_143 = arith.constant 0 : i32
    %419 = arith.cmpi ne, %418, %c0_i32_143 : i32
    scf.if %419 {
      %420 = vector.shape_cast %415 : vector<16x32xf32> to vector<2x8x32xf32>
      %cst_144 = arith.constant dense<0.000000e+00> : vector<2x32xf32>
      %421 = vector.multi_reduction <add>, %420, %cst_144 [1] : vector<2x8x32xf32> to vector<2x32xf32>
      %cst_145 = arith.constant 8.000000e+00 : f32
      %422 = vector.broadcast %cst_145 : f32 to vector<2x32xf32>
      %423 = arith.divf %421, %422 : vector<2x32xf32>
      %424 = arith.truncf %423 : vector<2x32xf32> to vector<2x32xbf16>
      %c0_146 = arith.constant 0 : index
      %c0_147 = arith.constant 0 : index
      %425 = vector.load %arg24[%c0_146, %c0_147] : memref<32x512xbf16, #tpu.memory_space<vmem>>, vector<32x512xbf16>
      %cst_148 = arith.constant dense<0.000000e+00> : vector<2x512xf32>
      %426 = tpu.matmul %424, %425, %cst_148 {dimension_numbers = #tpu.dot_dimension_numbers<[1], [0], [0], [1], [0, 0, 1, 1], [], []>} : vector<2x32xbf16>, vector<32x512xbf16>, vector<2x512xf32> -> vector<2x512xf32>
      %c0_149 = arith.constant 0 : index
      %c0_150 = arith.constant 0 : index
      %427 = vector.load %arg25[%c0_149, %c0_150] : memref<1x512xf32, #tpu.memory_space<vmem>>, vector<1x512xf32>
      %428 = vector.broadcast %427 : vector<1x512xf32> to vector<2x512xf32>
      %429 = arith.addf %426, %428 : vector<2x512xf32>
      %c0_151 = arith.constant 0 : index
      %c0_152 = arith.constant 0 : index
      %430 = vector.load %arg26[%c0_151, %c0_152] : memref<2x512xf32, #tpu.memory_space<vmem>>, vector<2x512xf32>
      tpu.vector_store %arg26[%c0_151, %c0_152], %429 {strides = array<i32>} : memref<2x512xf32, #tpu.memory_space<vmem>>, vector<2x512xf32>,
    } else {
    }
    return
  }
  func.func @transform_0(%arg0: i32, %arg1: i32) -> (i32, i32, i32) {
    %c0_i32 = arith.constant 0 : i32
    %c0_i32_0 = arith.constant 0 : i32
    %c0_i32_1 = arith.constant 0 : i32
    return %arg0, %c0_i32, %c0_i32_0 : i32, i32, i32
  }
  func.func @transform_1(%arg0: i32, %arg1: i32) -> (i32, i32, i32) {
    %c0_i32 = arith.constant 0 : i32
    %c0_i32_0 = arith.constant 0 : i32
    %c0_i32_1 = arith.constant 0 : i32
    return %arg0, %c0_i32, %c0_i32_0 : i32, i32, i32
  }
  func.func @transform_2(%arg0: i32, %arg1: i32) -> (i32, i32, i32) {
    %c0_i32 = arith.constant 0 : i32
    %c0_i32_0 = arith.constant 0 : i32
    %c0_i32_1 = arith.constant 0 : i32
    return %arg1, %c0_i32, %c0_i32_0 : i32, i32, i32
  }
  func.func @transform_3(%arg0: i32, %arg1: i32) -> (i32, i32, i32) {
    %c0_i32 = arith.constant 0 : i32
    %c0_i32_0 = arith.constant 0 : i32
    %c0_i32_1 = arith.constant 0 : i32
    return %arg1, %c0_i32, %c0_i32_0 : i32, i32, i32
  }
  func.func @transform_4(%arg0: i32, %arg1: i32) -> (i32, i32, i32) {
    %c0_i32 = arith.constant 0 : i32
    %c0_i32_0 = arith.constant 0 : i32
    %c0_i32_1 = arith.constant 0 : i32
    return %arg1, %c0_i32, %c0_i32_0 : i32, i32, i32
  }
  func.func @transform_5(%arg0: i32, %arg1: i32) -> (i32, i32, i32) {
    %c0_i32 = arith.constant 0 : i32
    %c0_i32_0 = arith.constant 0 : i32
    %c0_i32_1 = arith.constant 0 : i32
    return %arg1, %c0_i32, %c0_i32_0 : i32, i32, i32
  }
  func.func @transform_6(%arg0: i32, %arg1: i32) -> (i32, i32, i32) {
    %c0_i32 = arith.constant 0 : i32
    %c0_i32_0 = arith.constant 0 : i32
    %c0_i32_1 = arith.constant 0 : i32
    return %arg1, %c0_i32, %c0_i32_0 : i32, i32, i32
  }
  func.func @transform_7(%arg0: i32, %arg1: i32) -> (i32, i32, i32) {
    %c0_i32 = arith.constant 0 : i32
    %c0_i32_0 = arith.constant 0 : i32
    %c0_i32_1 = arith.constant 0 : i32
    return %arg1, %c0_i32, %c0_i32_0 : i32, i32, i32
  }
  func.func @transform_8(%arg0: i32, %arg1: i32) -> (i32, i32, i32) {
    %c0_i32 = arith.constant 0 : i32
    %c0_i32_0 = arith.constant 0 : i32
    %c0_i32_1 = arith.constant 0 : i32
    return %arg1, %c0_i32, %c0_i32_0 : i32, i32, i32
  }
  func.func @transform_9(%arg0: i32, %arg1: i32) -> (i32, i32, i32) {
    %c0_i32 = arith.constant 0 : i32
    %c0_i32_0 = arith.constant 0 : i32
    %c0_i32_1 = arith.constant 0 : i32
    return %arg1, %c0_i32, %c0_i32_0 : i32, i32, i32
  }
  func.func @transform_10(%arg0: i32, %arg1: i32) -> (i32, i32, i32) {
    %c0_i32 = arith.constant 0 : i32
    %c0_i32_0 = arith.constant 0 : i32
    %c0_i32_1 = arith.constant 0 : i32
    return %arg1, %c0_i32, %c0_i32_0 : i32, i32, i32
  }
  func.func @transform_11(%arg0: i32, %arg1: i32) -> (i32, i32, i32) {
    %c0_i32 = arith.constant 0 : i32
    %c0_i32_0 = arith.constant 0 : i32
    %c0_i32_1 = arith.constant 0 : i32
    return %arg1, %c0_i32, %c0_i32_0 : i32, i32, i32
  }
  func.func @transform_12(%arg0: i32, %arg1: i32) -> (i32, i32, i32) {
    %c0_i32 = arith.constant 0 : i32
    %c0_i32_0 = arith.constant 0 : i32
    %c0_i32_1 = arith.constant 0 : i32
    return %arg1, %c0_i32, %c0_i32_0 : i32, i32, i32
  }
  func.func @transform_13(%arg0: i32, %arg1: i32) -> (i32, i32, i32) {
    %c0_i32 = arith.constant 0 : i32
    %c0_i32_0 = arith.constant 0 : i32
    %c0_i32_1 = arith.constant 0 : i32
    return %arg1, %c0_i32, %c0_i32_0 : i32, i32, i32
  }
  func.func @transform_14(%arg0: i32, %arg1: i32) -> (i32, i32, i32) {
    %c0_i32 = arith.constant 0 : i32
    %c0_i32_0 = arith.constant 0 : i32
    %c0_i32_1 = arith.constant 0 : i32
    return %arg1, %c0_i32, %c0_i32_0 : i32, i32, i32
  }
  func.func @transform_15(%arg0: i32, %arg1: i32) -> (i32, i32, i32) {
    %c0_i32 = arith.constant 0 : i32
    %c0_i32_0 = arith.constant 0 : i32
    %c0_i32_1 = arith.constant 0 : i32
    return %arg1, %c0_i32, %c0_i32_0 : i32, i32, i32
  }
  func.func @transform_16(%arg0: i32, %arg1: i32) -> (i32, i32, i32) {
    %c0_i32 = arith.constant 0 : i32
    %c0_i32_0 = arith.constant 0 : i32
    %c0_i32_1 = arith.constant 0 : i32
    return %arg1, %c0_i32, %c0_i32_0 : i32, i32, i32
  }
  func.func @transform_17(%arg0: i32, %arg1: i32) -> (i32, i32, i32) {
    %c0_i32 = arith.constant 0 : i32
    %c0_i32_0 = arith.constant 0 : i32
    %c0_i32_1 = arith.constant 0 : i32
    return %arg1, %c0_i32, %c0_i32_0 : i32, i32, i32
  }
  func.func @transform_18(%arg0: i32, %arg1: i32) -> (i32, i32, i32) {
    %c0_i32 = arith.constant 0 : i32
    %c0_i32_0 = arith.constant 0 : i32
    %c0_i32_1 = arith.constant 0 : i32
    return %arg1, %c0_i32, %c0_i32_0 : i32, i32, i32
  }
  func.func @transform_19(%arg0: i32, %arg1: i32) -> (i32, i32, i32) {
    %c0_i32 = arith.constant 0 : i32
    %c0_i32_0 = arith.constant 0 : i32
    %c0_i32_1 = arith.constant 0 : i32
    return %arg1, %c0_i32, %c0_i32_0 : i32, i32, i32
  }
  func.func @transform_20(%arg0: i32, %arg1: i32) -> (i32, i32, i32) {
    %c0_i32 = arith.constant 0 : i32
    %c0_i32_0 = arith.constant 0 : i32
    %c0_i32_1 = arith.constant 0 : i32
    return %arg1, %c0_i32, %c0_i32_0 : i32, i32, i32
  }
  func.func @transform_21(%arg0: i32, %arg1: i32) -> (i32, i32, i32) {
    %c0_i32 = arith.constant 0 : i32
    %c0_i32_0 = arith.constant 0 : i32
    %c0_i32_1 = arith.constant 0 : i32
    return %arg1, %c0_i32, %c0_i32_0 : i32, i32, i32
  }
  func.func @transform_22(%arg0: i32, %arg1: i32) -> (i32, i32) {
    %c0_i32 = arith.constant 0 : i32
    %c0_i32_0 = arith.constant 0 : i32
    %c0_i32_1 = arith.constant 0 : i32
    return %c0_i32, %c0_i32_0 : i32, i32
  }
  func.func @transform_23(%arg0: i32, %arg1: i32) -> (i32, i32) {
    %c0_i32 = arith.constant 0 : i32
    %c0_i32_0 = arith.constant 0 : i32
    %c0_i32_1 = arith.constant 0 : i32
    return %c0_i32, %c0_i32_0 : i32, i32
  }
  func.func @transform_24(%arg0: i32, %arg1: i32) -> (i32, i32) {
    %c0_i32 = arith.constant 0 : i32
    %c0_i32_0 = arith.constant 0 : i32
    return %arg0, %c0_i32 : i32, i32
  }
}

</mosaic_0001>

<bundles_post_ra>
// kernel: action_prediction_transformer_forward.2
= control target key start
LH: loop header
LB: loop body
LE: loop exit
PB: predicated region body
PF: predicated region fallthrough
CT: control target
= control target key end

     0   :  { %s2525_s25 = smov 0   ;;  %s2527_s26 = smov 0   ;;  %s2886_s0 = inlined_call_operand.vmem [shape: f32[2,8,32], index: 0, kind: input, shape index: {}]   ;;  %s2887_s1 = inlined_call_operand.vmem [shape: bf16[2,32,96], index: 1, kind: input, shape index: {}]   ;;  %s2888_s2 = inlined_call_operand.vmem [shape: f32[2,1,96], index: 2, kind: input, shape index: {}]   ;;  %s2889_s3 = inlined_call_operand.vmem [shape: bf16[2,32,32], index: 3, kind: input, shape index: {}]   ;;  %s2890_s4 = inlined_call_operand.vmem [shape: f32[2,1,32], index: 4, kind: input, shape index: {}]   ;;  %s2891_s5 = inlined_call_operand.vmem [shape: f32[2,1,32], index: 5, kind: input, shape index: {}]   ;;  %s2892_s6 = inlined_call_operand.vmem [shape: f32[2,1,32], index: 6, kind: input, shape index: {}]   ;;  %s2893_s7 = inlined_call_operand.vmem [shape: bf16[2,32,64], index: 7, kind: input, shape index: {}]   ;;  %s2894_s8 = inlined_call_operand.vmem [shape: f32[2,1,64], index: 8, kind: input, shape index: {}]   ;;  %s2895_s9 = inlined_call_operand.vmem [shape: bf16[2,64,32], index: 9, kind: input, shape index: {}]   ;;  %s2896_s10 = inlined_call_operand.vmem [shape: f32[2,1,32], index: 10, kind: input, shape index: {}]   ;;  %s2897_s11 = inlined_call_operand.vmem [shape: f32[2,1,32], index: 11, kind: input, shape index: {}]   ;;  %s2898_s12 = inlined_call_operand.vmem [shape: f32[2,1,32], index: 12, kind: input, shape index: {}]   ;;  %s2899_s13 = inlined_call_operand.vmem [shape: f32[2,8,32], index: 13, kind: output, shape index: {}]  }
   0x1   :  { %2904 = sst [smem:[#allocation6_spill]] %s2886_s0  ;;  %s2529_s27 = smov 0  }
   0x2   :  { %2905 = sst [smem:[#allocation7_spill]] %s2887_s1 }
   0x3   :  { %2906 = sst [smem:[#allocation8_spill]] %s2889_s3 }
   0x4   :  { %2907 = sst [smem:[#allocation9_spill]] %s2899_s13 }
   0x5 LB: > { %2908 = sst [smem:[#allocation3_spill]] %s2445_s26  ;;  %s32_s28 = sadd.s32 1, %s2445_s26  ;;  %s2449_s27 = sphi %s2529_s27, %s23_s27   ;;  %s2445_s26 = sphi %s2527_s26, %s2921_s26   ;;  %s2441_s25 = sphi %s2525_s25, %s2920_s25  }
   0x6   : > { %2909 = sst [smem:[#allocation4_spill]] %s2449_s27  ;;  %p2110_p0 = scmp.ge.s32.totalorder %s2449_s27, 1 }
   0x7   : > { %p33_p1 = scmp.ge.s32.totalorder %s32_s28, 2  ;;  %p504_p2 = scmp.lt.s32.totalorder %s2449_s27, 3 }
   0x9   : > { %s2923_s28 = smov (%p33_p1, %s32_s28), 0  ;;  %p505_p3 = pnand %p2110_p0, %p504_p2 }
   0xa   : > { %2910 = sst [smem:[#allocation5_spill]] %s2923_s28  ;;  %p598_p4 = scmp.lt.s32.totalorder (!%p505_p3), %s2441_s25, 1 }
   0xb   : > { %508 = sbr.rel (%p505_p3) target bundleno = 4026 (0xfba), region = 72  ;;  %s2911_s1 = sld [smem:[#allocation7_spill]] (!%p505_p3) }
   0xc   : > { %s2912_s3 = sld [smem:[#allocation8_spill]] (!%p505_p3)  ;;  %p2119_p5 = scmp.ne.s32.totalorder (!%p505_p3), %s2441_s25, 0 }
  0x12   : > { %s2547_s29 = scalar_select %p598_p4, %s2441_s25, 1 }
  0x13   : > { %652 = sbr.rel (%p2119_p5) target bundleno = 27 (0x1b), region = 76  ;;  %s2913_s23 = sld [smem:[#allocation6_spill]] (!%p2119_p5)  ;;  %vm655_vm0 = vcmask (!%p2119_p5), 261120  }
  0x14   : > { %s2167_s30 = sshll.u32 %s2547_s29, 4  ;;  %s635_s0 = scalar_lea.vmem %s2896_s10, %s2547_s29 }
  0x15   : > { %s602_s19 = scalar_lea.vmem %s2911_s1, %s2167_s30  ;;  %s2560_s22 = scalar_lea.vmem %s2912_s3, %s2167_s30 }
  0x16   : > { %s2577_s18 = scalar_lea.vmem %s2893_s7, %s2167_s30  ;;  %s627_s1 = scalar_lea.vmem %s2894_s8, %s2547_s29 }
  0x17   : > { %s2170_s3 = sshll.u32 %s2547_s29, 5  ;;  %s638_s16 = scalar_lea.vmem %s2897_s11, %s2547_s29 }
  0x18   : > { %s2587_s28 = scalar_lea.vmem %s2895_s9, %s2170_s3  ;;  %s641_s13 = scalar_lea.vmem %s2898_s12, %s2547_s29 }
  0x19   : > { %v653_v0 = vld [vmem:[%s2913_s23] sm:$0xff] (!%p2119_p5)  ;;  %v654_v1 = vld [vmem:[%s2913_s23 + $0x8] sm:$0xff] (!%p2119_p5) }
  0x1a   : > { %656 = vst.msk [vmem:[#allocation2] sm:$0xff] %vm655_vm0, %v653_v0  ;;  %657 = vst.msk [vmem:[#allocation2 + $0x8] sm:$0xff] %vm655_vm0, %v654_v1 }
  0x1b PF: > { %v2377_v2 = vld [vmem:[%s602_s19] sm:$0xff]   ;;  %v2451_v3 = vmov 0.0   ;;  %v2378_v4 = vld [vmem:[%s602_s19 + $0x8] sm:$0xff]   ;;  %vm2452_vm1 = vmmov 0   ;;  %vm684_vm2 = vcmask 261120   ;;  %s2914_s26 = scalar_lea.vmem %s2888_s2, %s2547_s29  ;;  %s2453_s27 = smov 96   ;;  %v729_v17 = vlaneseq }
  0x1c   : > { %2217 = vmatprep.subr.bf16.mxu0 %v2451_v3  ;;  %2225 = vmatprep.subr.bf16.mxu1 %v2451_v3  ;;  %v2120_v8 = vld [vmem:[%s2914_s26] ss:$0 sm:$0xff]  ;;  %vm841_vm4 = vcmask 64512   ;;  %s2454_s14 = smov 64   ;;  %vm871_vm5 = vcmask 1043456   ;;  %s2915_s17 = scalar_lea.vmem %s2890_s4, %s2547_s29  ;;  %vm1822_vm15 = vcmask 523264  }
  0x1d   : > { %2218 = vmatpush3.bf16.msra.mxu0 %v2377_v2  ;;  %2221 = vmatprep.mubr.msk.bf16.mxu0 %vm2452_vm1, %v2451_v3  ;;  %v2636_v18 = vand.u32 127, %v729_v17  ;;  %s2916_s21 = scalar_lea.vmem %s2891_s5, %s2547_s29  ;;  %s2917_s19 = scalar_lea.vmem %s2892_s6, %s2547_s29 }
  0x1e   : > { %2219 = vmatprep.subr.bf16.mxu0 %v2451_v3  ;;  %2227 = vmatprep.mubr.msk.bf16.mxu1 %vm2452_vm1, %v2451_v3  ;;  %p2162_p6 = scmp.ne.s32.totalorder %s2441_s25, 1 }
  0x1f   : > { %vm734_vm3 = vcmp.lt.s32.totalorder %v2636_v18, 8  ;;  %vm967_vm6 = vcmp.ge.s32.totalorder %v2636_v18, 8  ;;  %vm968_vm7 = vcmp.lt.s32.totalorder %v2636_v18, 16  ;;  %vm1177_vm9 = vcmp.ge.s32.totalorder %v2636_v18, 16 }
  0x20   : > { %v2640_v20 = vsel %vm734_vm3, 1.0, %v2451_v3  ;;  %vm969_vm8 = vmand %vm967_vm6, %vm968_vm7  ;;  %vm1178_vm10 = vcmp.lt.s32.totalorder %v2636_v18, 24  ;;  %vm1387_vm12 = vcmp.ge.s32.totalorder %v2636_v18, 24  ;;  %vm1388_vm13 = vcmp.lt.s32.totalorder %v2636_v18, 32 }
  0x21   : > { %v2612_v5 = vld [vmem:[#allocation2] sm:$0xff]  ;;  %v2614_v6 = vld [vmem:[#allocation2 + $0x8] sm:$0xff]  ;;  %2220 = vmatpush3.bf16.msra.mxu0 %v2378_v4  ;;  %v738_v22 = vpack.c.bf16 %v2640_v20, %v2640_v20  ;;  %v2681_v59 = vsel %vm969_vm8, 1.0, %v2451_v3  ;;  %vm1179_vm11 = vmand %vm1177_vm9, %vm1178_vm10 }
  0x22   : > { %v660_v7 = vpack.c.bf16 %v2614_v6, %v2612_v5  ;;  %2231 = vmatprep.subr.bf16.mxu0 %v2451_v3  ;;  %v972_v62 = vpack.c.bf16 %v2681_v59, %v2681_v59  ;;  %vm1389_vm14 = vmand %vm1387_vm12, %vm1388_vm13 }
  0x24   : > { %2222 = vmatmul.mubr.msk.bf16.vlgmr.msra.gmra.mrb[0].mxu0 %vm684_vm2, %v660_v7 }
  0x25   : > { %2233 = vmatprep.mubr.msk.bf16.mxu0 %vm2452_vm1, %v2451_v3 }
  0xf7   : > { %v722_v9 = vpop.f32.mrb[0].mxu0 }
  0xf8   : > { %v723_v10 = vadd.f32 %v2120_v8, %v722_v9  ;;  %v2223_v11 = vpop.f32.mrb[1].mxu0 }
  0xf9   : > { %v725_v12 = vpop.f32.mrb[2].mxu0 }
  0xfa   : > { %v2630_v13 = vpack.c.bf16 %v723_v10, %v723_v10  ;;  %v726_v14 = vadd.f32 %v2120_v8, %v725_v12  ;;  %v2224_v15 = vpop.f32.mrb[3].mxu0 }
  0xfc   : > { %742 = vrot.lane.b32.xlu0 %v2630_v13, %s2453_s27  ;;  %v2633_v16 = vpack.c.bf16 %v726_v14, %v726_v14  ;;  %v739_v25 = vmul.bf16 %v738_v22, %v2630_v13  ;;  %v973_v63 = vmul.bf16 %v972_v62, %v2630_v13 }
  0xfe   : > { %v740_v26 = vmul.bf16 %v738_v22, %v2633_v16  ;;  %v974_v0 = vmul.bf16 %v972_v62, %v2633_v16 }
 0x100   : > { %791 = vrot.lane.b32.xlu0 %v2633_v16, %s2453_s27 }
 0x16e   : > { %v743_v19 = vpop.permute.xlu0 %742 }
 0x16f   : > { %v2643_v21 = vsel %vm684_vm2, %v743_v19, 0 }
 0x170   : > { %2226 = vmatpush3.bf16.xpose.msra.mxu1 %v2643_v21 }
 0x171   : > { %2237 = vmatprep.subr.bf16.mxu1 %v2451_v3 }
 0x172   : > { %v792_v23 = vpop.permute.xlu0 %791 }
 0x173   : > { %v2650_v24 = vsel %vm684_vm2, %v792_v23, 0 }
 0x174   : > { %2232 = vmatpush3.bf16.xpose.msra.mxu0 %v2650_v24 }
 0x175   : > { %2243 = vmatprep.subr.bf16.mxu0 %v2451_v3 }
 0x177   : > { %2228 = vmatmul.mubr.msk.bf16.vlgmr.msra.gmra.mrb[0].mxu1 %vm684_vm2, %v739_v25 }
 0x178   : > { %2239 = vmatprep.mubr.msk.bf16.mxu1 %vm2452_vm1, %v2451_v3 }
 0x17b   : > { %2234 = vmatmul.mubr.msk.bf16.vlgmr.msra.gmra.mrb[4].mxu0 %vm684_vm2, %v740_v26 }
 0x17c   : > { %2245 = vmatprep.mubr.msk.bf16.mxu0 %vm2452_vm1, %v2451_v3 }
 0x24a   : > { %v784_v27 = vpop.f32.mrb[0].mxu1 }
 0x24b   : > { %v839_v28 = vmul.f32 0.35355338, %v784_v27  ;;  %v2229_v29 = vpop.f32.mrb[1].mxu1 }
 0x24c   : > { %v787_v30 = vpop.f32.mrb[2].mxu1 }
 0x24d   : > { %v2230_v31 = vpop.f32.mrb[3].mxu1  ;;  %v842_v32 = vsel %vm841_vm4, %v839_v28, -inf }
 0x24e   : > { %843 = vmax.xlane.f32.xlu1 %v842_v32  ;;  %v833_v33 = vpop.f32.mrb[4].mxu0 }
 0x24f   : > { %v840_v34 = vmul.f32 0.35355338, %v833_v33  ;;  %v2235_v35 = vpop.f32.mrb[5].mxu0 }
 0x250   : > { %v836_v36 = vpop.f32.mrb[6].mxu0 }
 0x251   : > { %v2236_v37 = vpop.f32.mrb[7].mxu0  ;;  %v845_v38 = vsel %vm841_vm4, %v840_v34, -inf }
 0x252   : > { %846 = vmax.xlane.f32.xlu1 %v845_v38 }
 0x263   : > { %866 = vrot.lane.b32.xlu1 %v2630_v13, %s2454_s14 }
 0x2db   : > { %v844_v39 = vpop.xlane.xlu1 %843 }
 0x2dc   : > { %v848_v40 = vsub.f32 %v839_v28, %v844_v39 }
 0x2de   : > { %v850_v41 = vmul.f32 1.442695, %v848_v40 }
 0x2df   : > { %v847_v42 = vpop.xlane.xlu1 %846 }
 0x2e0   : > { %2387 = vpow2.f32 %v850_v41  ;;  %v849_v43 = vsub.f32 %v840_v34, %v847_v42 }
 0x2e2   : > { %v852_v44 = vmul.f32 1.442695, %v849_v43 }
 0x2e3   : > { %v867_v45 = vpop.permute.xlu1 %866 }
 0x2e4   : > { %2389 = vpow2.f32 %v852_v44  ;;  %v2666_v46 = vsel %vm871_vm5, %v867_v45, 0 }
 0x2e5   : > { %2238 = vmatpush3.bf16.msra.mxu1 %v2666_v46 }
 0x2e6   : > { %2249 = vmatprep.subr.bf16.mxu1 %v2451_v3 }
 0x2ea   : > { %v2388_v47 = vpop.eup %2387 }
 0x2eb   : > { %v854_v48 = vsel %vm841_vm4, %v2388_v47, 0.0 }
 0x2ec   : > { %855 = vadd.xlane.f32.xlu0 %v854_v48 }
 0x2ee   : > { %v2390_v49 = vpop.eup %2389 }
 0x2ef   : > { %v857_v50 = vsel %vm841_vm4, %v2390_v49, 0.0 }
 0x2f0   : > { %858 = vadd.xlane.f32.xlu1 %v857_v50 }
 0x301   : > { %915 = vrot.lane.b32.xlu1 %v2633_v16, %s2454_s14 }
 0x379   : > { %v856_v51 = vpop.xlane.xlu0 %855 }
 0x37a   : > { %2391 = vrcp.f32 %v856_v51 }
 0x37d   : > { %v859_v52 = vpop.xlane.xlu1 %858 }
 0x37e   : > { %2393 = vrcp.f32 %v859_v52 }
 0x381   : > { %v916_v53 = vpop.permute.xlu1 %915 }
 0x382   : > { %v2674_v54 = vsel %vm871_vm5, %v916_v53, 0 }
 0x383   : > { %2244 = vmatpush3.bf16.msra.mxu0 %v2674_v54 }
 0x384   : > { %v2392_v55 = vpop.eup %2391  ;;  %2255 = vmatprep.subr.bf16.mxu0 %v2451_v3 }
 0x385   : > { %v861_v56 = vmul.f32 %v2392_v55, %v2388_v47  ;;  %v2718_v47 = vsel %vm1179_vm11, 1.0, %v2451_v3 }
 0x386   : > { %v1182_v50 = vpack.c.bf16 %v2718_v47, %v2718_v47 }
 0x387   : > { %v864_v57 = vpack.c.bf16 %v861_v56, %v861_v56 }
 0x388   : > { %v2394_v58 = vpop.eup %2393  ;;  %v1183_v51 = vmul.bf16 %v1182_v50, %v2630_v13  ;;  %v1184_v52 = vmul.bf16 %v1182_v50, %v2633_v16 }
 0x389   : > { %v863_v60 = vmul.f32 %v2394_v58, %v2390_v49  ;;  %2240 = vmatmul.mubr.msk.bf16.vlgmr.msra.gmra.mrb[4].mxu1 %vm841_vm4, %v864_v57 }
 0x38a   : > { %2250 = vmatpush3.bf16.xpose.msra.mxu1 %v2643_v21  ;;  %2251 = vmatprep.mubr.msk.bf16.mxu1 %vm2452_vm1, %v2451_v3 }
 0x38b   : > { %v865_v61 = vpack.c.bf16 %v863_v60, %v863_v60  ;;  %2261 = vmatprep.subr.bf16.mxu1 %v2451_v3 }
 0x38d   : > { %2246 = vmatmul.mubr.msk.bf16.vlgmr.msra.gmra.mrb[8].mxu0 %vm841_vm4, %v865_v61 }
 0x38e   : > { %2256 = vmatpush3.bf16.xpose.msra.mxu0 %v2650_v24  ;;  %2257 = vmatprep.mubr.msk.bf16.mxu0 %vm2452_vm1, %v2451_v3 }
 0x38f   : > { %2267 = vmatprep.subr.bf16.mxu0 %v2451_v3 }
 0x391   : > { %2252 = vmatmul.mubr.msk.bf16.vlgmr.msra.gmra.mrb[8].mxu1 %vm684_vm2, %v973_v63 }
 0x392   : > { %2262 = vmatpush3.bf16.msra.mxu1 %v2666_v46  ;;  %2263 = vmatprep.mubr.msk.bf16.mxu1 %vm2452_vm1, %v2451_v3 }
 0x393   : > { %2273 = vmatprep.subr.bf16.mxu1 %v2451_v3 }
 0x395   : > { %2258 = vmatmul.mubr.msk.bf16.vlgmr.msra.gmra.mrb[12].mxu0 %vm684_vm2, %v974_v0 }
 0x396   : > { %2268 = vmatpush3.bf16.msra.mxu0 %v2674_v54  ;;  %2269 = vmatprep.mubr.msk.bf16.mxu0 %vm2452_vm1, %v2451_v3 }
 0x397   : > { %2279 = vmatprep.subr.bf16.mxu0 %v2451_v3 }
 0x45c   : > { %v2707_v1 = vpop.f32.mrb[4].mxu1 }
 0x45d   : > { %v2241_v2 = vpop.f32.mrb[5].mxu1  ;;  %v963_v55 = vmul.f32 %v2640_v20, %v2707_v1 }
 0x45e   : > { %v912_v4 = vpop.f32.mrb[6].mxu1 }
 0x45f   : > { %v2242_v7 = vpop.f32.mrb[7].mxu1 }
 0x460   : > { %v2709_v8 = vpop.f32.mrb[8].mxu0 }
 0x461   : > { %v2247_v9 = vpop.f32.mrb[9].mxu0  ;;  %v964_v63 = vmul.f32 %v2640_v20, %v2709_v8 }
 0x462   : > { %v960_v10 = vpop.f32.mrb[10].mxu0 }
 0x463   : > { %v2248_v11 = vpop.f32.mrb[11].mxu0 }
 0x464   : > { %v1012_v12 = vpop.f32.mrb[8].mxu1 }
 0x465   : > { %v1061_v14 = vmul.f32 0.35355338, %v1012_v12  ;;  %v2253_v15 = vpop.f32.mrb[9].mxu1 }
 0x466   : > { %v1015_v17 = vpop.f32.mrb[10].mxu1 }
 0x467   : > { %v2254_v19 = vpop.f32.mrb[11].mxu1  ;;  %v1063_v22 = vsel %vm841_vm4, %v1061_v14, -inf }
 0x468   : > { %1064 = vmax.xlane.f32.xlu1 %v1063_v22  ;;  %v1055_v23 = vpop.f32.mrb[12].mxu0 }
 0x469   : > { %v1062_v25 = vmul.f32 0.35355338, %v1055_v23  ;;  %v2259_v26 = vpop.f32.mrb[13].mxu0 }
 0x46a   : > { %v1058_v27 = vpop.f32.mrb[14].mxu0 }
 0x46b   : > { %v2260_v28 = vpop.f32.mrb[15].mxu0  ;;  %v1066_v29 = vsel %vm841_vm4, %v1062_v25, -inf }
 0x46c   : > { %1067 = vmax.xlane.f32.xlu0 %v1066_v29 }
 0x4f5   : > { %v1065_v30 = vpop.xlane.xlu1 %1064 }
 0x4f6   : > { %v1069_v31 = vsub.f32 %v1061_v14, %v1065_v30 }
 0x4f8   : > { %v1071_v32 = vmul.f32 1.442695, %v1069_v31 }
 0x4f9   : > { %v1068_v33 = vpop.xlane.xlu0 %1067 }
 0x4fa   : > { %2395 = vpow2.f32 %v1071_v32  ;;  %v1070_v34 = vsub.f32 %v1062_v25, %v1068_v33 }
 0x4fc   : > { %v1073_v35 = vmul.f32 1.442695, %v1070_v34 }
 0x4fe   : > { %2397 = vpow2.f32 %v1073_v35 }
 0x504   : > { %v2396_v36 = vpop.eup %2395 }
 0x505   : > { %v1075_v37 = vsel %vm841_vm4, %v2396_v36, 0.0 }
 0x506   : > { %1076 = vadd.xlane.f32.xlu0 %v1075_v37 }
 0x508   : > { %v2398_v38 = vpop.eup %2397 }
 0x509   : > { %v1078_v39 = vsel %vm841_vm4, %v2398_v38, 0.0 }
 0x50a   : > { %1079 = vadd.xlane.f32.xlu0 %v1078_v39 }
 0x593   : > { %v1077_v40 = vpop.xlane.xlu0 %1076 }
 0x594   : > { %2399 = vrcp.f32 %v1077_v40  ;;  %v2761_v40 = vsel %vm1389_vm14, 1.0, %v2451_v3 }
 0x595   : > { %v1392_v18 = vpack.c.bf16 %v2761_v40, %v2761_v40 }
 0x597   : > { %v1080_v41 = vpop.xlane.xlu0 %1079 }
 0x598   : > { %2401 = vrcp.f32 %v1080_v41 }
 0x59e   : > { %v2400_v42 = vpop.eup %2399 }
 0x59f   : > { %v1082_v43 = vmul.f32 %v2400_v42, %v2396_v36 }
 0x5a1   : > { %v1085_v44 = vpack.c.bf16 %v1082_v43, %v1082_v43  ;;  %v1393_v43 = vmul.bf16 %v1392_v18, %v2630_v13 }
 0x5a2   : > { %v2402_v45 = vpop.eup %2401 }
 0x5a3   : > { %v1084_v48 = vmul.f32 %v2402_v45, %v2398_v38  ;;  %2264 = vmatmul.mubr.msk.bf16.vlgmr.msra.gmra.mrb[12].mxu1 %vm841_vm4, %v1085_v44 }
 0x5a4   : > { %2274 = vmatpush3.bf16.xpose.msra.mxu1 %v2643_v21  ;;  %2275 = vmatprep.mubr.msk.bf16.mxu1 %vm2452_vm1, %v2451_v3 }
 0x5a5   : > { %v1086_v49 = vpack.c.bf16 %v1084_v48, %v1084_v48  ;;  %2285 = vmatprep.subr.bf16.mxu1 %v2451_v3 }
 0x5a7   : > { %2270 = vmatmul.mubr.msk.bf16.vlgmr.msra.gmra.mrb[16].mxu0 %vm841_vm4, %v1086_v49 }
 0x5a8   : > { %2280 = vmatpush3.bf16.xpose.msra.mxu0 %v2650_v24  ;;  %2281 = vmatprep.mubr.msk.bf16.mxu0 %vm2452_vm1, %v2451_v3 }
 0x5a9   : > { %2291 = vmatprep.subr.bf16.mxu0 %v2451_v3 }
 0x5ab   : > { %2276 = vmatmul.mubr.msk.bf16.vlgmr.msra.gmra.mrb[16].mxu1 %vm684_vm2, %v1183_v51 }
 0x5ac   : > { %2286 = vmatpush3.bf16.msra.mxu1 %v2666_v46  ;;  %2287 = vmatprep.mubr.msk.bf16.mxu1 %vm2452_vm1, %v2451_v3 }
 0x5ad   : > { %2297 = vmatprep.subr.bf16.mxu1 %v2451_v3 }
 0x5af   : > { %2282 = vmatmul.mubr.msk.bf16.vlgmr.msra.gmra.mrb[20].mxu0 %vm684_vm2, %v1184_v52 }
 0x5b0   : > { %2292 = vmatpush3.bf16.msra.mxu0 %v2674_v54  ;;  %2293 = vmatprep.mubr.msk.bf16.mxu0 %vm2452_vm1, %v2451_v3 }
 0x5b1   : > { %2303 = vmatprep.subr.bf16.mxu0 %v2451_v3 }
 0x676   : > { %v1124_v53 = vpop.f32.mrb[12].mxu1 }
 0x677   : > { %v1173_v56 = vmul.f32 %v2681_v59, %v1124_v53  ;;  %v2265_v57 = vpop.f32.mrb[13].mxu1 }
 0x678   : > { %v1127_v58 = vpop.f32.mrb[14].mxu1 }
 0x679   : > { %v2747_v60 = vadd.f32 %v1173_v56, %v963_v55  ;;  %v2266_v61 = vpop.f32.mrb[15].mxu1 }
 0x67a   : > { %v1167_v62 = vpop.f32.mrb[16].mxu0 }
 0x67b   : > { %v1174_v0 = vmul.f32 %v2681_v59, %v1167_v62  ;;  %v2271_v2 = vpop.f32.mrb[17].mxu0 }
 0x67c   : > { %v1170_v4 = vpop.f32.mrb[18].mxu0 }
 0x67d   : > { %v2752_v7 = vadd.f32 %v1174_v0, %v964_v63  ;;  %v2272_v9 = vpop.f32.mrb[19].mxu0 }
 0x67e   : > { %v1222_v10 = vpop.f32.mrb[16].mxu1 }
 0x67f   : > { %v1271_v1 = vmul.f32 0.35355338, %v1222_v10  ;;  %v2277_v11 = vpop.f32.mrb[17].mxu1 }
 0x680   : > { %v1225_v12 = vpop.f32.mrb[18].mxu1 }
 0x681   : > { %v2278_v14 = vpop.f32.mrb[19].mxu1  ;;  %v1273_v15 = vsel %vm841_vm4, %v1271_v1, -inf }
 0x682   : > { %1274 = vmax.xlane.f32.xlu0 %v1273_v15  ;;  %v1265_v17 = vpop.f32.mrb[20].mxu0 }
 0x683   : > { %v1272_v19 = vmul.f32 0.35355338, %v1265_v17  ;;  %v2283_v22 = vpop.f32.mrb[21].mxu0 }
 0x684   : > { %v1268_v23 = vpop.f32.mrb[22].mxu0 }
 0x685   : > { %v2284_v20 = vpop.f32.mrb[23].mxu0  ;;  %v1276_v59 = vsel %vm841_vm4, %v1272_v19, -inf }
 0x686   : > { %1277 = vmax.xlane.f32.xlu0 %v1276_v59 }
 0x70f   : > { %v1275_v8 = vpop.xlane.xlu0 %1274 }
 0x710   : > { %v1279_v25 = vsub.f32 %v1271_v1, %v1275_v8 }
 0x712   : > { %v1281_v26 = vmul.f32 1.442695, %v1279_v25 }
 0x713   : > { %v1278_v27 = vpop.xlane.xlu0 %1277 }
 0x714   : > { %2403 = vpow2.f32 %v1281_v26  ;;  %v1280_v28 = vsub.f32 %v1272_v19, %v1278_v27  ;;  %v2379_v27 = vld [vmem:[%s2560_s22] sm:$0xff]  }
 0x716   : > { %v1283_v29 = vmul.f32 1.442695, %v1280_v28  ;;  %v2380_v28 = vld [vmem:[%s2560_s22 + $0x8] sm:$0xff]  }
 0x718   : > { %2405 = vpow2.f32 %v1283_v29 }
 0x71e   : > { %v2404_v30 = vpop.eup %2403 }
 0x71f   : > { %v1285_v31 = vsel %vm841_vm4, %v2404_v30, 0.0 }
 0x720   : > { %1286 = vadd.xlane.f32.xlu0 %v1285_v31 }
 0x722   : > { %v2406_v32 = vpop.eup %2405 }
 0x723   : > { %v1288_v33 = vsel %vm841_vm4, %v2406_v32, 0.0 }
 0x724   : > { %1289 = vadd.xlane.f32.xlu0 %v1288_v33 }
 0x7ad   : > { %v1287_v34 = vpop.xlane.xlu0 %1286 }
 0x7ae   : > { %2407 = vrcp.f32 %v1287_v34 }
 0x7b1   : > { %v1290_v35 = vpop.xlane.xlu0 %1289 }
 0x7b2   : > { %2409 = vrcp.f32 %v1290_v35 }
 0x7b8   : > { %v2408_v36 = vpop.eup %2407 }
 0x7b9   : > { %v1292_v37 = vmul.f32 %v2408_v36, %v2404_v30 }
 0x7bb   : > { %v1295_v38 = vpack.c.bf16 %v1292_v37, %v1292_v37 }
 0x7bc   : > { %v2410_v39 = vpop.eup %2409 }
 0x7bd   : > { %v1294_v41 = vmul.f32 %v2410_v39, %v2406_v32  ;;  %2288 = vmatmul.mubr.msk.bf16.vlgmr.msra.gmra.mrb[20].mxu1 %vm841_vm4, %v1295_v38 }
 0x7be   : > { %2298 = vmatpush3.bf16.xpose.msra.mxu1 %v2643_v21  ;;  %2299 = vmatprep.mubr.msk.bf16.mxu1 %vm2452_vm1, %v2451_v3  ;;  %v1394_v21 = vmul.bf16 %v1392_v18, %v2633_v16  ;;  %v2144_v18 = vld [vmem:[%s2915_s17] ss:$0 sm:$0xff]  ;;  %s2918_s17 = sld [smem:[#allocation9_spill]] (!%p2162_p6) }
 0x7bf   : > { %v1296_v42 = vpack.c.bf16 %v1294_v41, %v1294_v41  ;;  %2309 = vmatprep.subr.bf16.mxu1 %v2451_v3 }
 0x7c1   : > { %2294 = vmatmul.mubr.msk.bf16.vlgmr.msra.gmra.mrb[24].mxu0 %vm841_vm4, %v1296_v42 }
 0x7c2   : > { %2304 = vmatpush3.bf16.xpose.msra.mxu0 %v2650_v24  ;;  %2305 = vmatprep.mubr.msk.bf16.mxu0 %vm2452_vm1, %v2451_v3 }
 0x7c3   : > { %2315 = vmatprep.subr.bf16.mxu0 %v2451_v3 }
 0x7c5   : > { %2300 = vmatmul.mubr.msk.bf16.vlgmr.msra.gmra.mrb[24].mxu1 %vm684_vm2, %v1393_v43 }
 0x7c6   : > { %2310 = vmatpush3.bf16.msra.mxu1 %v2666_v46  ;;  %2311 = vmatprep.mubr.msk.bf16.mxu1 %vm2452_vm1, %v2451_v3 }
 0x7c7   : > { %2321 = vmatprep.subr.bf16.mxu1 %v2451_v3 }
 0x7c9   : > { %2306 = vmatmul.mubr.msk.bf16.vlgmr.msra.gmra.mrb[28].mxu0 %vm684_vm2, %v1394_v21 }
 0x7ca   : > { %2316 = vmatpush3.bf16.msra.mxu0 %v2674_v54  ;;  %2317 = vmatprep.mubr.msk.bf16.mxu0 %vm2452_vm1, %v2451_v3 }
 0x7cb   : > { %2329 = vmatprep.subr.bf16.mxu0 %v2451_v3 }
 0x890   : > { %v1334_v13 = vpop.f32.mrb[20].mxu1 }
 0x891   : > { %v1383_v24 = vmul.f32 %v2718_v47, %v1334_v13  ;;  %v2289_v46 = vpop.f32.mrb[21].mxu1 }
 0x892   : > { %v1337_v44 = vpop.f32.mrb[22].mxu1 }
 0x893   : > { %v1385_v45 = vadd.f32 %v1383_v24, %v2747_v60  ;;  %v2290_v48 = vpop.f32.mrb[23].mxu1 }
 0x894   : > { %v1377_v16 = vpop.f32.mrb[24].mxu0 }
 0x895   : > { %v1384_v49 = vmul.f32 %v2718_v47, %v1377_v16  ;;  %v2295_v50 = vpop.f32.mrb[25].mxu0 }
 0x896   : > { %v1380_v51 = vpop.f32.mrb[26].mxu0 }
 0x897   : > { %v1386_v54 = vadd.f32 %v1384_v49, %v2752_v7  ;;  %v2296_v52 = vpop.f32.mrb[27].mxu0 }
 0x898   : > { %v1432_v53 = vpop.f32.mrb[24].mxu1 }
 0x899   : > { %v1481_v55 = vmul.f32 0.35355338, %v1432_v53  ;;  %v2301_v56 = vpop.f32.mrb[25].mxu1 }
 0x89a   : > { %v1435_v57 = vpop.f32.mrb[26].mxu1 }
 0x89b   : > { %v2302_v58 = vpop.f32.mrb[27].mxu1  ;;  %v1483_v61 = vsel %vm841_vm4, %v1481_v55, -inf  ;;  %v2381_v57 = vld [vmem:[%s2577_s18] sm:$0xff]  }
 0x89c   : > { %1484 = vmax.xlane.f32.xlu0 %v1483_v61  ;;  %v1475_v62 = vpop.f32.mrb[28].mxu0  ;;  %v2382_v58 = vld [vmem:[%s2577_s18 + $0x8] sm:$0xff]   ;;  %v2383_v61 = vld [vmem:[%s2587_s28] sm:$0xff]  }
 0x89d   : > { %v1482_v63 = vmul.f32 0.35355338, %v1475_v62  ;;  %v2307_v60 = vpop.f32.mrb[29].mxu0  ;;  %v2384_v62 = vld [vmem:[%s2587_s28 + $0x8] sm:$0xff]  }
 0x89e   : > { %v1478_v0 = vpop.f32.mrb[30].mxu0 }
 0x89f   : > { %v2308_v2 = vpop.f32.mrb[31].mxu0  ;;  %v1486_v47 = vsel %vm841_vm4, %v1482_v63, -inf }
 0x8a0   : > { %1487 = vmax.xlane.f32.xlu1 %v1486_v47 }
 0x929   : > { %v1485_v4 = vpop.xlane.xlu0 %1484 }
 0x92a   : > { %v1489_v9 = vsub.f32 %v1481_v55, %v1485_v4 }
 0x92c   : > { %v1491_v7 = vmul.f32 1.442695, %v1489_v9 }
 0x92d   : > { %v1488_v10 = vpop.xlane.xlu1 %1487 }
 0x92e   : > { %2411 = vpow2.f32 %v1491_v7  ;;  %v1490_v1 = vsub.f32 %v1482_v63, %v1488_v10  ;;  %v2148_v7 = vld [vmem:[%s2916_s21] ss:$0 sm:$0xff] }
 0x930   : > { %v1493_v11 = vmul.f32 1.442695, %v1490_v1 }
 0x932   : > { %2413 = vpow2.f32 %v1493_v11 }
 0x938   : > { %v2412_v12 = vpop.eup %2411 }
 0x939   : > { %v1495_v14 = vsel %vm841_vm4, %v2412_v12, 0.0 }
 0x93a   : > { %1496 = vadd.xlane.f32.xlu0 %v1495_v14  ;;  %v2149_v14 = vld [vmem:[%s2917_s19] ss:$0 sm:$0xff] }
 0x93c   : > { %v2414_v15 = vpop.eup %2413 }
 0x93d   : > { %v1498_v17 = vsel %vm841_vm4, %v2414_v15, 0.0 }
 0x93e   : > { %1499 = vadd.xlane.f32.xlu1 %v1498_v17 }
 0x9c7   : > { %v1497_v19 = vpop.xlane.xlu0 %1496 }
 0x9c8   : > { %2415 = vrcp.f32 %v1497_v19 }
 0x9cb   : > { %v1500_v22 = vpop.xlane.xlu1 %1499 }
 0x9cc   : > { %2417 = vrcp.f32 %v1500_v22 }
 0x9d2   : > { %v2416_v23 = vpop.eup %2415 }
 0x9d3   : > { %v1502_v20 = vmul.f32 %v2416_v23, %v2412_v12  ;;  %v2385_v23 = vld [vmem:[%s2587_s28 + $0x10] sm:$0xff]  }
 0x9d5   : > { %v1505_v59 = vpack.c.bf16 %v1502_v20, %v1502_v20  ;;  %v2386_v20 = vld [vmem:[%s2587_s28 + $0x18] sm:$0xff]  }
 0x9d6   : > { %v2418_v8 = vpop.eup %2417 }
 0x9d7   : > { %v1504_v25 = vmul.f32 %v2418_v8, %v2414_v15  ;;  %2312 = vmatmul.mubr.msk.bf16.vlgmr.msra.gmra.mrb[28].mxu1 %vm841_vm4, %v1505_v59  ;;  %v2150_v59 = vld [vmem:[%s627_s1] ss:$0 sm:$0xff] }
 0x9d8   : > { %2325 = vmatprep.mubr.msk.bf16.mxu1 %vm2452_vm1, %v2451_v3  ;;  %2322 = vmatpush3.bf16.msra.mxu1 %v2379_v27 }
 0x9d9   : > { %v1506_v26 = vpack.c.bf16 %v1504_v25, %v1504_v25  ;;  %2323 = vmatprep.subr.bf16.mxu1 %v2451_v3 }
 0x9db   : > { %2318 = vmatmul.mubr.msk.bf16.vlgmr.msra.gmra.mrb[32].mxu0 %vm841_vm4, %v1506_v26 }
 0x9dc   : > { %2333 = vmatprep.mubr.msk.bf16.mxu0 %vm2452_vm1, %v2451_v3  ;;  %2324 = vmatpush3.bf16.msra.mxu1 %v2380_v28 }
 0x9dd   : > { %2337 = vmatprep.subr.bf16.mxu1 %v2451_v3  ;;  %2330 = vmatpush3.bf16.msra.mxu0 %v2381_v57  ;;  %v2161_v57 = vld [vmem:[%s641_s13] ss:$0 sm:$0xff] }
 0x9de   : > { %2331 = vmatprep.subr.bf16.mxu0 %v2451_v3 }
 0x9e1   : > { %2332 = vmatpush3.bf16.msra.mxu0 %v2382_v58 }
 0xaaa   : > { %v1544_v29 = vpop.f32.mrb[28].mxu1 }
 0xaab   : > { %v1593_v30 = vmul.f32 %v2761_v40, %v1544_v29  ;;  %v2313_v31 = vpop.f32.mrb[29].mxu1 }
 0xaac   : > { %v1547_v32 = vpop.f32.mrb[30].mxu1 }
 0xaad   : > { %v1595_v33 = vadd.f32 %v1593_v30, %v1385_v45  ;;  %v2314_v34 = vpop.f32.mrb[31].mxu1 }
 0xaae   : > { %v1587_v35 = vpop.f32.mrb[32].mxu0 }
 0xaaf   : > { %v1594_v36 = vmul.f32 %v2761_v40, %v1587_v35  ;;  %v2319_v37 = vpop.f32.mrb[33].mxu0 }
 0xab0   : > { %v1590_v38 = vpop.f32.mrb[34].mxu0 }
 0xab1   : > { %v1596_v39 = vadd.f32 %v1594_v36, %v1386_v54  ;;  %v2320_v41 = vpop.f32.mrb[35].mxu0 }
 0xab3   : > { %v1597_v42 = vpack.c.bf16 %v1596_v39, %v1595_v33 }
 0xab5   : > { %2326 = vmatmul.mubr.msk.bf16.vlgmr.msra.gmra.mrb[32].mxu1 %vm684_vm2, %v1597_v42 }
 0xab6   : > { %2345 = vmatprep.mubr.msk.bf16.mxu1 %vm2452_vm1, %v2451_v3  ;;  %2338 = vmatpush3.bf16.msra.mxu1 %v2383_v61 }
 0xab7   : > { %2339 = vmatprep.subr.bf16.mxu1 %v2451_v3 }
 0xaba   : > { %2340 = vmatpush3.bf16.msra.mxu1 %v2384_v62 }
 0xabb   : > { %2341 = vmatprep.subr.bf16.mxu1 %v2451_v3 }
 0xabe   : > { %2342 = vmatpush3.bf16.msra.mxu1 %v2385_v23 }
 0xabf   : > { %2343 = vmatprep.subr.bf16.mxu1 %v2451_v3  ;;  %v2154_v3 = vld [vmem:[%s635_s0] ss:$0 sm:$0xff] }
 0xac2   : > { %2344 = vmatpush3.bf16.msra.mxu1 %v2386_v20 }
 0xb88   : > { %v1658_v43 = vpop.f32.mrb[32].mxu1 }
 0xb89   : > { %v1659_v21 = vadd.f32 %v2144_v18, %v1658_v43  ;;  %v2327_v13 = vpop.f32.mrb[33].mxu1 }
 0xb8a   : > { %v1661_v24 = vpop.f32.mrb[34].mxu1 }
 0xb8b   : > { %v1662_v40 = vadd.f32 %v2144_v18, %v1661_v24  ;;  %v2328_v46 = vpop.f32.mrb[35].mxu1  ;;  %v1665_v44 = vadd.f32 %v1659_v21, %v2612_v5 }
 0xb8d   : > { %v1669_v45 = vsel %vm684_vm2, %v1665_v44, 0.0  ;;  %v1666_v48 = vadd.f32 %v1662_v40, %v2614_v6 }
 0xb8e   : > { %1670 = vadd.xlane.f32.xlu0 %v1669_v45 }
 0xb8f   : > { %v1672_v16 = vsel %vm684_vm2, %v1666_v48, 0.0 }
 0xb90   : > { %1673 = vadd.xlane.f32.xlu1 %v1672_v16 }
 0xc1b   : > { %v1671_v49 = vpop.xlane.xlu0 %1670 }
 0xc1c   : > { %v1676_v50 = vmul.f32 0.03125, %v1671_v49 }
 0xc1d   : > { %v1674_v51 = vpop.xlane.xlu1 %1673 }
 0xc1e   : > { %v1678_v54 = vsub.f32 %v1665_v44, %v1676_v50  ;;  %v1677_v52 = vmul.f32 0.03125, %v1674_v51 }
 0xc20   : > { %v1679_v53 = vsub.f32 %v1666_v48, %v1677_v52  ;;  %v1680_v55 = vmul.f32 %v1678_v54, %v1678_v54 }
 0xc22   : > { %v1682_v5 = vsel %vm684_vm2, %v1680_v55, 0.0  ;;  %v1681_v56 = vmul.f32 %v1679_v53, %v1679_v53 }
 0xc23   : > { %1683 = vadd.xlane.f32.xlu0 %v1682_v5  ;;  %v2160_v5 = vld [vmem:[%s638_s16] ss:$0 sm:$0xff] }
 0xc24   : > { %v1685_v6 = vsel %vm684_vm2, %v1681_v56, 0.0 }
 0xc25   : > { %1686 = vadd.xlane.f32.xlu1 %v1685_v6 }
 0xcb0   : > { %v1684_v63 = vpop.xlane.xlu0 %1683 }
 0xcb1   : > { %v1688_v60 = vmul.f32 0.03125, %v1684_v63 }
 0xcb2   : > { %v1687_v0 = vpop.xlane.xlu1 %1686 }
 0xcb3   : > { %v1690_v2 = vadd.f32 1e-05, %v1688_v60  ;;  %v1689_v47 = vmul.f32 0.03125, %v1687_v0 }
 0xcb5   : > { %2419 = vrsqrt.f32 %v1690_v2  ;;  %v1691_v4 = vadd.f32 1e-05, %v1689_v47 }
 0xcb7   : > { %2421 = vrsqrt.f32 %v1691_v4 }
 0xcbf   : > { %v2420_v9 = vpop.eup %2419 }
 0xcc0   : > { %v1694_v10 = vmul.f32 %v2420_v9, %v1678_v54 }
 0xcc1   : > { %v2422_v1 = vpop.eup %2421 }
 0xcc2   : > { %v1702_v11 = vmul.f32 %v2148_v7, %v1694_v10  ;;  %v1695_v12 = vmul.f32 %v2422_v1, %v1679_v53 }
 0xcc4   : > { %v1703_v15 = vmul.f32 %v2148_v7, %v1695_v12  ;;  %v1710_v17 = vadd.f32 %v2149_v14, %v1702_v11 }
 0xcc6   : > { %v1711_v19 = vadd.f32 %v2149_v14, %v1703_v15 }
 0xcc8   : > { %v1712_v22 = vpack.c.bf16 %v1711_v19, %v1710_v17 }
 0xcca   : > { %2334 = vmatmul.mubr.msk.bf16.vlgmr.msra.gmra.mrb[36].mxu0 %vm684_vm2, %v1712_v22 }
 0xd9d   : > { %v1773_v8 = vpop.f32.mrb[36].mxu0 }
 0xd9e   : > { %v1774_v25 = vadd.f32 %v2150_v59, %v1773_v8  ;;  %v2335_v26 = vpop.f32.mrb[37].mxu0 }
 0xd9f   : > { %v1776_v27 = vpop.f32.mrb[38].mxu0 }
 0xda0   : > { %v1777_v28 = vadd.f32 %v2150_v59, %v1776_v27  ;;  %v2336_v29 = vpop.f32.mrb[39].mxu0  ;;  %v1780_v30 = vmax.f32 %v1774_v25, 0.0 }
 0xda2   : > { %v1781_v31 = vmax.f32 %v1777_v28, 0.0 }
 0xda4   : > { %v1782_v32 = vpack.c.bf16 %v1781_v31, %v1780_v30 }
 0xda6   : > { %2346 = vmatmul.mubr.msk.bf16.vlgmr.msra.gmra.mrb[36].mxu1 %vm1822_vm15, %v1782_v32 }
 0xe79   : > { %v1860_v33 = vpop.f32.mrb[36].mxu1 }
 0xe7a   : > { %v1861_v34 = vadd.f32 %v2154_v3, %v1860_v33  ;;  %v2347_v35 = vpop.f32.mrb[37].mxu1 }
 0xe7b   : > { %v1863_v36 = vpop.f32.mrb[38].mxu1 }
 0xe7c   : > { %v1864_v37 = vadd.f32 %v2154_v3, %v1863_v36  ;;  %v2348_v38 = vpop.f32.mrb[39].mxu1  ;;  %v1867_v39 = vadd.f32 %v1861_v34, %v1710_v17 }
 0xe7e   : > { %v1871_v41 = vsel %vm684_vm2, %v1867_v39, 0.0  ;;  %v1868_v42 = vadd.f32 %v1864_v37, %v1711_v19 }
 0xe7f   : > { %1872 = vadd.xlane.f32.xlu0 %v1871_v41 }
 0xe80   : > { %v1874_v18 = vsel %vm684_vm2, %v1868_v42, 0.0 }
 0xe81   : > { %1875 = vadd.xlane.f32.xlu1 %v1874_v18 }
 0xf0c   : > { %v1873_v43 = vpop.xlane.xlu0 %1872 }
 0xf0d   : > { %v1877_v21 = vmul.f32 0.03125, %v1873_v43 }
 0xf0e   : > { %v1876_v13 = vpop.xlane.xlu1 %1875 }
 0xf0f   : > { %v1879_v24 = vsub.f32 %v1867_v39, %v1877_v21  ;;  %v1878_v40 = vmul.f32 0.03125, %v1876_v13 }
 0xf11   : > { %v1880_v46 = vsub.f32 %v1868_v42, %v1878_v40  ;;  %v1881_v44 = vmul.f32 %v1879_v24, %v1879_v24 }
 0xf13   : > { %v1883_v45 = vsel %vm684_vm2, %v1881_v44, 0.0  ;;  %v1882_v48 = vmul.f32 %v1880_v46, %v1880_v46 }
 0xf14   : > { %1884 = vadd.xlane.f32.xlu0 %v1883_v45 }
 0xf15   : > { %v1886_v16 = vsel %vm684_vm2, %v1882_v48, 0.0 }
 0xf16   : > { %1887 = vadd.xlane.f32.xlu1 %v1886_v16 }
 0xfa1   : > { %v1885_v49 = vpop.xlane.xlu0 %1884 }
 0xfa2   : > { %v1889_v50 = vmul.f32 0.03125, %v1885_v49 }
 0xfa3   : > { %v1888_v51 = vpop.xlane.xlu1 %1887 }
 0xfa4   : > { %v1891_v54 = vadd.f32 1e-05, %v1889_v50  ;;  %v1890_v52 = vmul.f32 0.03125, %v1888_v51 }
 0xfa6   : > { %2423 = vrsqrt.f32 %v1891_v54  ;;  %v1892_v53 = vadd.f32 1e-05, %v1890_v52 }
 0xfa8   : > { %2425 = vrsqrt.f32 %v1892_v53 }
 0xfb0   : > { %v2424_v55 = vpop.eup %2423 }
 0xfb1   : > { %v1895_v56 = vmul.f32 %v2424_v55, %v1879_v24 }
 0xfb2   : > { %v2426_v6 = vpop.eup %2425 }
 0xfb3   : > { %v1903_v58 = vmul.f32 %v2160_v5, %v1895_v56  ;;  %v1896_v61 = vmul.f32 %v2426_v6, %v1880_v46  ;;  %1918 = sbr.rel (%p2162_p6) target bundleno = 4026 (0xfba), region = 80 }
 0xfb5   : > { %v1911_v62 = vadd.f32 %v2161_v57, %v1903_v58  ;;  %v1904_v63 = vmul.f32 %v2160_v5, %v1896_v61 }
 0xfb7   : > { %1913 = vst.msk [vmem:[#allocation2] sm:$0xff] %vm684_vm2, %v1911_v62  ;;  %v1912_v60 = vadd.f32 %v2161_v57, %v1904_v63  ;;  %1919 = vst.msk [vmem:[%s2918_s17] sm:$0xff] (!%p2162_p6), %vm684_vm2, %v1911_v62 }
 0xfb9   : > { %1914 = vst.msk [vmem:[#allocation2 + $0x8] sm:$0xff] %vm684_vm2, %v1912_v60  ;;  %1920 = vst.msk [vmem:[%s2918_s17 + $0x8] sm:$0xff] (!%p2162_p6), %vm684_vm2, %v1912_v60 }
 0xfba PF: > { %s2919_s18 = sld [smem:[#allocation4_spill]]  ;;  %s2920_s25 = sld [smem:[#allocation3_spill]] }
 0xfbb   : > { %s2921_s26 = sld [smem:[#allocation5_spill]] }
 0xfc0   : > { %s23_s27 = sadd.s32 1, %s2919_s18  }
 0xfc1   : > { %p20_p7 = scmp.ge.s32.totalorder %s23_s27, 4  }
 0xfc3   :  { %22 = sbr.rel (!%p20_p7) target bundleno = 5 (0x5), region = 146 }

// kernel: action_prediction_transformer_forward.3
= control target key start
LH: loop header
LB: loop body
LE: loop exit
PB: predicated region body
PF: predicated region fallthrough
CT: control target
= control target key end

     0   :  { %s4685_s26 = smov 0   ;;  %s4687_s27 = smov 0   ;;  %s5343_s0 = inlined_call_operand.vmem [shape: f32[2,8,32], index: 0, kind: input, shape index: {}]   ;;  %s5344_s1 = inlined_call_operand.vmem [shape: f32[2,8,32], index: 1, kind: input, shape index: {}]   ;;  %s5345_s2 = inlined_call_operand.vmem [shape: bf16[2,32,96], index: 2, kind: input, shape index: {}]   ;;  %s5346_s3 = inlined_call_operand.vmem [shape: f32[2,1,96], index: 3, kind: input, shape index: {}]   ;;  %s5347_s4 = inlined_call_operand.vmem [shape: bf16[2,32,32], index: 4, kind: input, shape index: {}]   ;;  %s5348_s5 = inlined_call_operand.vmem [shape: f32[2,1,32], index: 5, kind: input, shape index: {}]   ;;  %s5349_s6 = inlined_call_operand.vmem [shape: f32[2,1,32], index: 6, kind: input, shape index: {}]   ;;  %s5350_s7 = inlined_call_operand.vmem [shape: f32[2,1,32], index: 7, kind: input, shape index: {}]   ;;  %s5351_s8 = inlined_call_operand.vmem [shape: bf16[2,32,32], index: 8, kind: input, shape index: {}]   ;;  %s5352_s9 = inlined_call_operand.vmem [shape: f32[2,1,32], index: 9, kind: input, shape index: {}]   ;;  %s5353_s10 = inlined_call_operand.vmem [shape: bf16[2,32,64], index: 10, kind: input, shape index: {}]   ;;  %s5354_s11 = inlined_call_operand.vmem [shape: f32[2,1,64], index: 11, kind: input, shape index: {}]   ;;  %s5355_s12 = inlined_call_operand.vmem [shape: bf16[2,32,32], index: 12, kind: input, shape index: {}]   ;;  %s5356_s13 = inlined_call_operand.vmem [shape: f32[2,1,32], index: 13, kind: input, shape index: {}]   ;;  %s5357_s14 = inlined_call_operand.vmem [shape: f32[2,1,32], index: 14, kind: input, shape index: {}]   ;;  %s5358_s15 = inlined_call_operand.vmem [shape: f32[2,1,32], index: 15, kind: input, shape index: {}]   ;;  %s5359_s16 = inlined_call_operand.vmem [shape: bf16[2,32,64], index: 16, kind: input, shape index: {}]   ;;  %s5360_s17 = inlined_call_operand.vmem [shape: f32[2,1,64], index: 17, kind: input, shape index: {}]   ;;  %s5361_s18 = inlined_call_operand.vmem [shape: bf16[2,64,32], index: 18, kind: input, shape index: {}]   ;;  %s5362_s19 = inlined_call_operand.vmem [shape: f32[2,1,32], index: 19, kind: input, shape index: {}]   ;;  %s5363_s20 = inlined_call_operand.vmem [shape: f32[2,1,32], index: 20, kind: input, shape index: {}]   ;;  %s5364_s21 = inlined_call_operand.vmem [shape: f32[2,1,32], index: 21, kind: input, shape index: {}]   ;;  %s5365_s22 = inlined_call_operand.vmem [shape: bf16[32,512], index: 22, kind: input, shape index: {}]   ;;  %s5366_s23 = inlined_call_operand.vmem [shape: f32[1,512], index: 23, kind: input, shape index: {}]   ;;  %s5367_s24 = inlined_call_operand.vmem [shape: f32[2,512], index: 24, kind: output, shape index: {}]  }
   0x1   :  { %5376 = sst [smem:[#allocation9_spill]] %s5343_s0 }
   0x2   :  { %5377 = sst [smem:[#allocation10_spill]] %s5344_s1 }
   0x3   :  { %5378 = sst [smem:[#allocation11_spill]] %s5345_s2 }
   0x4   :  { %5379 = sst [smem:[#allocation12_spill]] %s5346_s3 }
   0x5   :  { %5380 = sst [smem:[#allocation13_spill]] %s5347_s4 }
   0x6   :  { %5381 = sst [smem:[#allocation14_spill]] %s5348_s5  ;;  %s4683_s5 = smov 0  }
   0x7   :  { %5382 = sst [smem:[#allocation15_spill]] %s5349_s6 }
   0x8   :  { %5383 = sst [smem:[#allocation16_spill]] %s5350_s7 }
   0x9   :  { %5384 = sst [smem:[#allocation17_spill]] %s5351_s8 }
   0xa   :  { %5385 = sst [smem:[#allocation18_spill]] %s5353_s10 }
   0xb   :  { %5386 = sst [smem:[#allocation19_spill]] %s5355_s12 }
   0xc   :  { %5387 = sst [smem:[#allocation20_spill]] %s5359_s16 }
   0xd   :  { %5388 = sst [smem:[#allocation21_spill]] %s5363_s20 }
   0xe   :  { %5389 = sst [smem:[#allocation22_spill]] %s5364_s21 }
   0xf   :  { %5390 = sst [smem:[#allocation23_spill]] %s5365_s22 }
  0x10   :  { %5391 = sst [smem:[#allocation24_spill]] %s5366_s23 }
  0x11   :  { %5392 = sst [smem:[#allocation25_spill]] %s5367_s24 }
  0x12 LB: > { %5393 = sst [smem:[#allocation3_spill]] %s4542_s5  ;;  %s43_s28 = sadd.s32 1, %s4546_s26  ;;  %s4550_s27 = sphi %s4687_s27, %s34_s27   ;;  %s4546_s26 = sphi %s4685_s26, %s5438_s26   ;;  %s4542_s5 = sphi %s4683_s5, %s5437_s5  }
  0x13   : > { %5394 = sst [smem:[#allocation4_spill]] %s4546_s26  ;;  %p3946_p0 = scmp.ge.s32.totalorder %s4550_s27, 1 }
  0x14   : > { %5395 = sst [smem:[#allocation5_spill]] %s4550_s27  ;;  %p44_p1 = scmp.ge.s32.totalorder %s43_s28, 2 }
  0x15   : > { %p860_p2 = scmp.lt.s32.totalorder %s4550_s27, 3 }
  0x16   : > { %s5440_s28 = smov (%p44_p1, %s43_s28), 0 }
  0x17   : > { %5396 = sst [smem:[#allocation6_spill]] %s5440_s28  ;;  %p861_p3 = pnand %p3946_p0, %p860_p2 }
  0x19   : > { %864 = sbr.rel (%p861_p3) target bundleno = 7415 (0x1cf7), region = 116 }
  0x20   : > { %p1017_p4 = scmp.lt.s32.totalorder %s4542_s5, 1  ;;  %s5398_s8 = sld [smem:[#allocation11_spill]] }
  0x21   : > { %s5400_s26 = sld [smem:[#allocation13_spill]]  ;;  %s5405_s28 = sld [smem:[#allocation17_spill]] }
  0x22   : > { %s4705_s6 = scalar_select %p1017_p4, %s4542_s5, 1 }
  0x23   : > { %s5406_s10 = sld [smem:[#allocation18_spill]]  ;;  %s5407_s12 = sld [smem:[#allocation19_spill]] }
  0x24   : > { %s4048_s2 = sshll.u32 %s4705_s6, 4  ;;  %s5408_s16 = sld [smem:[#allocation20_spill]] }
  0x25   : > { %s1084_s22 = scalar_lea.vmem %s5362_s19, %s4705_s6  ;;  %s5409_s23 = sld [smem:[#allocation21_spill]] }
  0x26   : > { %s4715_s4 = scalar_lea.vmem %s5398_s8, %s4048_s2  ;;  %s5411_s3 = sld [smem:[#allocation3_spill]] }
  0x27   : > { %5399 = sst [smem:[#allocation7_spill]] %s4715_s4  ;;  %s4720_s27 = scalar_lea.vmem %s5400_s26, %s4048_s2 }
  0x28   : > { %5401 = sst [smem:[#allocation8_spill]] %s4720_s27  ;;  %s4737_s26 = scalar_lea.vmem %s5405_s28, %s4048_s2 }
  0x29   : > { %s4746_s21 = scalar_lea.vmem %s5406_s10, %s4048_s2  ;;  %s4755_s8 = scalar_lea.vmem %s5407_s12, %s4048_s2 }
  0x2a   : > { %s4772_s0 = scalar_lea.vmem %s5408_s16, %s4048_s2  ;;  %s4054_s10 = sshll.u32 %s4705_s6, 5 }
  0x2b   : > { %s4782_s28 = scalar_lea.vmem %s5361_s18, %s4054_s10  ;;  %s1087_s5 = scalar_lea.vmem %s5409_s23, %s4705_s6 }
  0x2c   : > { %s5410_s12 = sld [smem:[#allocation22_spill]]  ;;  %p3961_p5 = scmp.ne.s32.totalorder %s5411_s3, 0 }
  0x2d   : > { %s5412_s20 = sld [smem:[#allocation9_spill]] (!%p3961_p5)  ;;  %vm1103_vm0 = vcmask (!%p3961_p5), 261120  }
  0x2e   : > { %1100 = sbr.rel (%p3961_p5) target bundleno = 53 (0x35), region = 120 }
  0x32   : > { %s1090_s16 = scalar_lea.vmem %s5410_s12, %s4705_s6 }
  0x33   : > { %v1101_v0 = vld [vmem:[%s5412_s20] sm:$0xff] (!%p3961_p5)  ;;  %v1102_v1 = vld [vmem:[%s5412_s20 + $0x8] sm:$0xff] (!%p3961_p5) }
  0x34   : > { %1104 = vst.msk [vmem:[#allocation2] sm:$0xff] (!%p3961_p5), %vm1103_vm0, %v1101_v0  ;;  %1105 = vst.msk [vmem:[#allocation2 + $0x8] sm:$0xff] (!%p3961_p5), %vm1103_vm0, %v1102_v1 }
  0x35 PF: > { %s5413_s7 = sld [smem:[#allocation7_spill]]  ;;  %v4552_v3 = vmov 0.0   ;;  %vm4553_vm1 = vmmov 0   ;;  %vm1132_vm2 = vcmask 261120   ;;  %s5414_s30 = sld [smem:[#allocation12_spill]]  ;;  %v1177_v17 = vlaneseq }
  0x36   : > { %4142 = vmatprep.subr.bf16.mxu1 %v4552_v3  ;;  %4156 = vmatprep.subr.bf16.mxu0 %v4552_v3  ;;  %s4554_s1 = smov 96   ;;  %vm1289_vm4 = vcmask 64512   ;;  %s4555_s24 = smov 64   ;;  %vm1319_vm5 = vcmask 1043456   ;;  %vm3360_vm15 = vcmask 523264  }
  0x37   : > { %4146 = vmatprep.mubr.msk.bf16.mxu1 %vm4553_vm1, %v4552_v3  ;;  %4158 = vmatprep.mubr.msk.bf16.mxu0 %vm4553_vm1, %v4552_v3  ;;  %v4836_v18 = vand.u32 127, %v1177_v17  ;;  %s5416_s2 = sld [smem:[#allocation8_spill]]  ;;  %s5417_s25 = sld [smem:[#allocation14_spill]] }
  0x38   : > { %s5419_s12 = sld [smem:[#allocation10_spill]]  ;;  %s5422_s3 = sld [smem:[#allocation16_spill]] }
  0x39   : > { %vm1182_vm3 = vcmp.lt.s32.totalorder %v4836_v18, 8  ;;  %vm1415_vm6 = vcmp.ge.s32.totalorder %v4836_v18, 8  ;;  %vm1416_vm7 = vcmp.lt.s32.totalorder %v4836_v18, 16  ;;  %vm1625_vm9 = vcmp.ge.s32.totalorder %v4836_v18, 16  ;;  %s5429_s4 = scalar_lea.vmem %s5360_s17, %s4705_s6 }
  0x3a   : > { %v4840_v20 = vsel %vm1182_vm3, 1.0, %v4552_v3  ;;  %vm1417_vm8 = vmand %vm1415_vm6, %vm1416_vm7  ;;  %vm1626_vm10 = vcmp.lt.s32.totalorder %v4836_v18, 24  ;;  %vm1835_vm12 = vcmp.ge.s32.totalorder %v4836_v18, 24  ;;  %vm1836_vm13 = vcmp.lt.s32.totalorder %v4836_v18, 32 }
  0x3b   : > { %v4424_v2 = vld [vmem:[%s5413_s7] sm:$0xff]   ;;  %v4425_v4 = vld [vmem:[%s5413_s7 + $0x8] sm:$0xff]   ;;  %s5415_s27 = scalar_lea.vmem %s5414_s30, %s4705_s6  ;;  %v4848_v22 = vpack.c.bf16 %v4840_v20, %v4840_v20  ;;  %v4885_v59 = vsel %vm1417_vm8, 1.0, %v4552_v3  ;;  %vm1627_vm11 = vmand %vm1625_vm9, %vm1626_vm10  ;;  %s5424_s7 = scalar_lea.vmem %s5354_s11, %s4705_s6 }
  0x3c   : > { %4143 = vmatpush3.bf16.msra.mxu1 %v4424_v2  ;;  %v4809_v5 = vld [vmem:[#allocation2] sm:$0xff]  ;;  %v4811_v6 = vld [vmem:[#allocation2 + $0x8] sm:$0xff]  ;;  %v4894_v62 = vpack.c.bf16 %v4885_v59, %v4885_v59  ;;  %vm1837_vm14 = vmand %vm1835_vm12, %vm1836_vm13 }
  0x3d   : > { %4144 = vmatprep.subr.bf16.mxu1 %v4552_v3  ;;  %v1108_v7 = vpack.c.bf16 %v4811_v6, %v4809_v5  ;;  %v3962_v8 = vld [vmem:[%s5415_s27] ss:$0 sm:$0xff]  ;;  %s5418_s10 = scalar_lea.vmem %s5417_s25, %s4705_s6  ;;  %s5426_s27 = scalar_lea.vmem %s5356_s13, %s4705_s6 }
  0x3e   : > { %s5423_s25 = scalar_lea.vmem %s5422_s3, %s4705_s6  ;;  %s5428_s3 = scalar_lea.vmem %s5358_s15, %s4705_s6 }
  0x40   : > { %4145 = vmatpush3.bf16.msra.mxu1 %v4425_v4 }
  0x41   : > { %4150 = vmatprep.subr.bf16.mxu1 %v4552_v3 }
  0x43   : > { %4147 = vmatmul.mubr.msk.bf16.vlgmr.msra.gmra.mrb[0].mxu1 %vm1132_vm2, %v1108_v7 }
  0x44   : > { %4152 = vmatprep.mubr.msk.bf16.mxu1 %vm4553_vm1, %v4552_v3 }
 0x116   : > { %v1170_v9 = vpop.f32.mrb[0].mxu1 }
 0x117   : > { %v1171_v10 = vadd.f32 %v3962_v8, %v1170_v9  ;;  %v4148_v11 = vpop.f32.mrb[1].mxu1 }
 0x118   : > { %v1173_v12 = vpop.f32.mrb[2].mxu1 }
 0x119   : > { %v4827_v13 = vpack.c.bf16 %v1171_v10, %v1171_v10  ;;  %v1174_v14 = vadd.f32 %v3962_v8, %v1173_v12  ;;  %v4149_v15 = vpop.f32.mrb[3].mxu1 }
 0x11b   : > { %1190 = vrot.lane.b32.xlu0 %v4827_v13, %s4554_s1  ;;  %v4831_v16 = vpack.c.bf16 %v1174_v14, %v1174_v14  ;;  %v1187_v25 = vmul.bf16 %v4848_v22, %v4827_v13  ;;  %v1421_v63 = vmul.bf16 %v4894_v62, %v4827_v13 }
 0x11d   : > { %v1188_v26 = vmul.bf16 %v4848_v22, %v4831_v16  ;;  %v1422_v0 = vmul.bf16 %v4894_v62, %v4831_v16 }
 0x11f   : > { %1239 = vrot.lane.b32.xlu0 %v4831_v16, %s4554_s1 }
 0x18d   : > { %v1191_v19 = vpop.permute.xlu0 %1190 }
 0x18e   : > { %v4843_v21 = vsel %vm1132_vm2, %v1191_v19, 0 }
 0x18f   : > { %4151 = vmatpush3.bf16.xpose.msra.mxu1 %v4843_v21 }
 0x190   : > { %4162 = vmatprep.subr.bf16.mxu1 %v4552_v3 }
 0x191   : > { %v1240_v23 = vpop.permute.xlu0 %1239 }
 0x192   : > { %v4852_v24 = vsel %vm1132_vm2, %v1240_v23, 0 }
 0x193   : > { %4157 = vmatpush3.bf16.xpose.msra.mxu0 %v4852_v24 }
 0x194   : > { %4168 = vmatprep.subr.bf16.mxu0 %v4552_v3 }
 0x196   : > { %4153 = vmatmul.mubr.msk.bf16.vlgmr.msra.gmra.mrb[4].mxu1 %vm1132_vm2, %v1187_v25 }
 0x197   : > { %4164 = vmatprep.mubr.msk.bf16.mxu1 %vm4553_vm1, %v4552_v3 }
 0x19a   : > { %4159 = vmatmul.mubr.msk.bf16.vlgmr.msra.gmra.mrb[0].mxu0 %vm1132_vm2, %v1188_v26 }
 0x19b   : > { %4170 = vmatprep.mubr.msk.bf16.mxu0 %vm4553_vm1, %v4552_v3 }
 0x269   : > { %v1232_v27 = vpop.f32.mrb[4].mxu1 }
 0x26a   : > { %v1287_v28 = vmul.f32 0.35355338, %v1232_v27  ;;  %v4154_v29 = vpop.f32.mrb[5].mxu1 }
 0x26b   : > { %v1235_v30 = vpop.f32.mrb[6].mxu1 }
 0x26c   : > { %v4155_v31 = vpop.f32.mrb[7].mxu1  ;;  %v1290_v32 = vsel %vm1289_vm4, %v1287_v28, -inf }
 0x26d   : > { %v1281_v33 = vpop.f32.mrb[0].mxu0  ;;  %1291 = vmax.xlane.f32.xlu1 %v1290_v32 }
 0x26e   : > { %v1288_v34 = vmul.f32 0.35355338, %v1281_v33  ;;  %v4160_v35 = vpop.f32.mrb[1].mxu0 }
 0x26f   : > { %v1284_v36 = vpop.f32.mrb[2].mxu0 }
 0x270   : > { %v4161_v37 = vpop.f32.mrb[3].mxu0  ;;  %v1293_v38 = vsel %vm1289_vm4, %v1288_v34, -inf }
 0x271   : > { %1294 = vmax.xlane.f32.xlu1 %v1293_v38 }
 0x282   : > { %1314 = vrot.lane.b32.xlu1 %v4827_v13, %s4555_s24 }
 0x2fa   : > { %v1292_v39 = vpop.xlane.xlu1 %1291 }
 0x2fb   : > { %v1296_v40 = vsub.f32 %v1287_v28, %v1292_v39 }
 0x2fd   : > { %v1298_v41 = vmul.f32 1.442695, %v1296_v40 }
 0x2fe   : > { %v1295_v42 = vpop.xlane.xlu1 %1294 }
 0x2ff   : > { %4440 = vpow2.f32 %v1298_v41  ;;  %v1297_v43 = vsub.f32 %v1288_v34, %v1295_v42 }
 0x301   : > { %v1300_v44 = vmul.f32 1.442695, %v1297_v43 }
 0x302   : > { %v1315_v45 = vpop.permute.xlu1 %1314 }
 0x303   : > { %4442 = vpow2.f32 %v1300_v44  ;;  %v4870_v46 = vsel %vm1319_vm5, %v1315_v45, 0 }
 0x304   : > { %4163 = vmatpush3.bf16.msra.mxu1 %v4870_v46 }
 0x305   : > { %4174 = vmatprep.subr.bf16.mxu1 %v4552_v3 }
 0x309   : > { %v4441_v47 = vpop.eup %4440 }
 0x30a   : > { %v1302_v48 = vsel %vm1289_vm4, %v4441_v47, 0.0 }
 0x30b   : > { %1303 = vadd.xlane.f32.xlu0 %v1302_v48 }
 0x30d   : > { %v4443_v49 = vpop.eup %4442 }
 0x30e   : > { %v1305_v50 = vsel %vm1289_vm4, %v4443_v49, 0.0 }
 0x30f   : > { %1306 = vadd.xlane.f32.xlu1 %v1305_v50 }
 0x320   : > { %1363 = vrot.lane.b32.xlu1 %v4831_v16, %s4555_s24  ;;  %s5420_s24 = sld [smem:[#allocation15_spill]] }
 0x398   : > { %v1304_v51 = vpop.xlane.xlu0 %1303 }
 0x399   : > { %4444 = vrcp.f32 %v1304_v51 }
 0x39c   : > { %v1307_v52 = vpop.xlane.xlu1 %1306 }
 0x39d   : > { %4446 = vrcp.f32 %v1307_v52 }
 0x3a0   : > { %v1364_v53 = vpop.permute.xlu1 %1363 }
 0x3a1   : > { %v4878_v54 = vsel %vm1319_vm5, %v1364_v53, 0 }
 0x3a2   : > { %4169 = vmatpush3.bf16.msra.mxu0 %v4878_v54 }
 0x3a3   : > { %v4445_v55 = vpop.eup %4444  ;;  %4180 = vmatprep.subr.bf16.mxu0 %v4552_v3 }
 0x3a4   : > { %v1309_v56 = vmul.f32 %v4445_v55, %v4441_v47 }
 0x3a6   : > { %v1312_v57 = vpack.c.bf16 %v1309_v56, %v1309_v56 }
 0x3a7   : > { %v4447_v58 = vpop.eup %4446 }
 0x3a8   : > { %v1311_v60 = vmul.f32 %v4447_v58, %v4443_v49  ;;  %4165 = vmatmul.mubr.msk.bf16.vlgmr.msra.gmra.mrb[8].mxu1 %vm1289_vm4, %v1312_v57  ;;  %v4926_v49 = vsel %vm1627_vm11, 1.0, %v4552_v3 }
 0x3a9   : > { %4175 = vmatpush3.bf16.xpose.msra.mxu1 %v4843_v21  ;;  %4176 = vmatprep.mubr.msk.bf16.mxu1 %vm4553_vm1, %v4552_v3  ;;  %v4935_v52 = vpack.c.bf16 %v4926_v49, %v4926_v49 }
 0x3aa   : > { %v1313_v61 = vpack.c.bf16 %v1311_v60, %v1311_v60  ;;  %4186 = vmatprep.subr.bf16.mxu1 %v4552_v3 }
 0x3ab   : > { %v1631_v53 = vmul.bf16 %v4935_v52, %v4827_v13  ;;  %v1632_v55 = vmul.bf16 %v4935_v52, %v4831_v16 }
 0x3ac   : > { %4171 = vmatmul.mubr.msk.bf16.vlgmr.msra.gmra.mrb[4].mxu0 %vm1289_vm4, %v1313_v61 }
 0x3ad   : > { %4181 = vmatpush3.bf16.xpose.msra.mxu0 %v4852_v24  ;;  %4182 = vmatprep.mubr.msk.bf16.mxu0 %vm4553_vm1, %v4552_v3 }
 0x3ae   : > { %4192 = vmatprep.subr.bf16.mxu0 %v4552_v3 }
 0x3b0   : > { %4177 = vmatmul.mubr.msk.bf16.vlgmr.msra.gmra.mrb[12].mxu1 %vm1132_vm2, %v1421_v63 }
 0x3b1   : > { %4187 = vmatpush3.bf16.msra.mxu1 %v4870_v46  ;;  %4188 = vmatprep.mubr.msk.bf16.mxu1 %vm4553_vm1, %v4552_v3 }
 0x3b2   : > { %4198 = vmatprep.subr.bf16.mxu1 %v4552_v3 }
 0x3b4   : > { %4183 = vmatmul.mubr.msk.bf16.vlgmr.msra.gmra.mrb[8].mxu0 %vm1132_vm2, %v1422_v0 }
 0x3b5   : > { %4193 = vmatpush3.bf16.msra.mxu0 %v4878_v54  ;;  %4194 = vmatprep.mubr.msk.bf16.mxu0 %vm4553_vm1, %v4552_v3 }
 0x3b6   : > { %4204 = vmatprep.subr.bf16.mxu0 %v4552_v3 }
 0x47b   : > { %v4915_v1 = vpop.f32.mrb[8].mxu1 }
 0x47c   : > { %v4166_v2 = vpop.f32.mrb[9].mxu1  ;;  %v1411_v57 = vmul.f32 %v4840_v20, %v4915_v1 }
 0x47d   : > { %v1360_v4 = vpop.f32.mrb[10].mxu1 }
 0x47e   : > { %v4167_v7 = vpop.f32.mrb[11].mxu1 }
 0x47f   : > { %v4917_v8 = vpop.f32.mrb[4].mxu0 }
 0x480   : > { %v4172_v9 = vpop.f32.mrb[5].mxu0  ;;  %v1412_v4 = vmul.f32 %v4840_v20, %v4917_v8 }
 0x481   : > { %v1408_v10 = vpop.f32.mrb[6].mxu0 }
 0x482   : > { %v4173_v11 = vpop.f32.mrb[7].mxu0 }
 0x483   : > { %v1460_v12 = vpop.f32.mrb[12].mxu1 }
 0x484   : > { %v1509_v14 = vmul.f32 0.35355338, %v1460_v12  ;;  %v4178_v15 = vpop.f32.mrb[13].mxu1 }
 0x485   : > { %v1463_v19 = vpop.f32.mrb[14].mxu1 }
 0x486   : > { %v4179_v23 = vpop.f32.mrb[15].mxu1  ;;  %v1511_v25 = vsel %vm1289_vm4, %v1509_v14, -inf }
 0x487   : > { %v1503_v26 = vpop.f32.mrb[8].mxu0  ;;  %1512 = vmax.xlane.f32.xlu1 %v1511_v25 }
 0x488   : > { %v1510_v27 = vmul.f32 0.35355338, %v1503_v26  ;;  %v4184_v28 = vpop.f32.mrb[9].mxu0 }
 0x489   : > { %v1506_v29 = vpop.f32.mrb[10].mxu0 }
 0x48a   : > { %v4185_v30 = vpop.f32.mrb[11].mxu0  ;;  %v1514_v31 = vsel %vm1289_vm4, %v1510_v27, -inf }
 0x48b   : > { %1515 = vmax.xlane.f32.xlu0 %v1514_v31 }
 0x514   : > { %v1513_v32 = vpop.xlane.xlu1 %1512 }
 0x515   : > { %v1517_v33 = vsub.f32 %v1509_v14, %v1513_v32 }
 0x517   : > { %v1519_v34 = vmul.f32 1.442695, %v1517_v33 }
 0x518   : > { %v1516_v35 = vpop.xlane.xlu0 %1515 }
 0x519   : > { %4448 = vpow2.f32 %v1519_v34  ;;  %v1518_v36 = vsub.f32 %v1510_v27, %v1516_v35 }
 0x51b   : > { %v1521_v37 = vmul.f32 1.442695, %v1518_v36 }
 0x51d   : > { %4450 = vpow2.f32 %v1521_v37 }
 0x523   : > { %v4449_v38 = vpop.eup %4448 }
 0x524   : > { %v1523_v39 = vsel %vm1289_vm4, %v4449_v38, 0.0 }
 0x525   : > { %1524 = vadd.xlane.f32.xlu0 %v1523_v39 }
 0x527   : > { %v4451_v40 = vpop.eup %4450 }
 0x528   : > { %v1526_v41 = vsel %vm1289_vm4, %v4451_v40, 0.0 }
 0x529   : > { %1527 = vadd.xlane.f32.xlu0 %v1526_v41 }
 0x5b2   : > { %v1525_v42 = vpop.xlane.xlu0 %1524 }
 0x5b3   : > { %4452 = vrcp.f32 %v1525_v42 }
 0x5b6   : > { %v1528_v43 = vpop.xlane.xlu0 %1527 }
 0x5b7   : > { %4454 = vrcp.f32 %v1528_v43 }
 0x5bd   : > { %v4453_v44 = vpop.eup %4452 }
 0x5be   : > { %v1530_v45 = vmul.f32 %v4453_v44, %v4449_v38 }
 0x5c0   : > { %v1533_v47 = vpack.c.bf16 %v1530_v45, %v1530_v45 }
 0x5c1   : > { %v4455_v48 = vpop.eup %4454 }
 0x5c2   : > { %v1532_v50 = vmul.f32 %v4455_v48, %v4451_v40  ;;  %4189 = vmatmul.mubr.msk.bf16.vlgmr.msra.gmra.mrb[16].mxu1 %vm1289_vm4, %v1533_v47  ;;  %v4973_v48 = vsel %vm1837_vm14, 1.0, %v4552_v3 }
 0x5c3   : > { %4199 = vmatpush3.bf16.xpose.msra.mxu1 %v4843_v21  ;;  %4200 = vmatprep.mubr.msk.bf16.mxu1 %vm4553_vm1, %v4552_v3  ;;  %v4982_v18 = vpack.c.bf16 %v4973_v48, %v4973_v48 }
 0x5c4   : > { %v1534_v51 = vpack.c.bf16 %v1532_v50, %v1532_v50  ;;  %4210 = vmatprep.subr.bf16.mxu1 %v4552_v3 }
 0x5c6   : > { %4195 = vmatmul.mubr.msk.bf16.vlgmr.msra.gmra.mrb[12].mxu0 %vm1289_vm4, %v1534_v51 }
 0x5c7   : > { %4205 = vmatpush3.bf16.xpose.msra.mxu0 %v4852_v24  ;;  %4206 = vmatprep.mubr.msk.bf16.mxu0 %vm4553_vm1, %v4552_v3 }
 0x5c8   : > { %4216 = vmatprep.subr.bf16.mxu0 %v4552_v3 }
 0x5ca   : > { %4201 = vmatmul.mubr.msk.bf16.vlgmr.msra.gmra.mrb[20].mxu1 %vm1132_vm2, %v1631_v53  ;;  %v1842_v53 = vmul.bf16 %v4982_v18, %v4831_v16 }
 0x5cb   : > { %4211 = vmatpush3.bf16.msra.mxu1 %v4870_v46  ;;  %4212 = vmatprep.mubr.msk.bf16.mxu1 %vm4553_vm1, %v4552_v3 }
 0x5cc   : > { %4222 = vmatprep.subr.bf16.mxu1 %v4552_v3 }
 0x5ce   : > { %4207 = vmatmul.mubr.msk.bf16.vlgmr.msra.gmra.mrb[16].mxu0 %vm1132_vm2, %v1632_v55 }
 0x5cf   : > { %4217 = vmatpush3.bf16.msra.mxu0 %v4878_v54  ;;  %4218 = vmatprep.mubr.msk.bf16.mxu0 %vm4553_vm1, %v4552_v3 }
 0x5d0   : > { %4228 = vmatprep.subr.bf16.mxu0 %v4552_v3 }
 0x695   : > { %v1572_v56 = vpop.f32.mrb[16].mxu1 }
 0x696   : > { %v1621_v58 = vmul.f32 %v4885_v59, %v1572_v56  ;;  %v4190_v60 = vpop.f32.mrb[17].mxu1 }
 0x697   : > { %v1575_v61 = vpop.f32.mrb[18].mxu1 }
 0x698   : > { %v4959_v63 = vadd.f32 %v1621_v58, %v1411_v57  ;;  %v4191_v0 = vpop.f32.mrb[19].mxu1 }
 0x699   : > { %v1615_v2 = vpop.f32.mrb[12].mxu0 }
 0x69a   : > { %v1622_v7 = vmul.f32 %v4885_v59, %v1615_v2  ;;  %v4196_v9 = vpop.f32.mrb[13].mxu0 }
 0x69b   : > { %v1618_v10 = vpop.f32.mrb[14].mxu0 }
 0x69c   : > { %v4964_v11 = vadd.f32 %v1622_v7, %v1412_v4  ;;  %v4197_v12 = vpop.f32.mrb[15].mxu0 }
 0x69d   : > { %v1670_v14 = vpop.f32.mrb[20].mxu1 }
 0x69e   : > { %v1719_v1 = vmul.f32 0.35355338, %v1670_v14  ;;  %v4202_v15 = vpop.f32.mrb[21].mxu1 }
 0x69f   : > { %v1673_v19 = vpop.f32.mrb[22].mxu1 }
 0x6a0   : > { %v4203_v23 = vpop.f32.mrb[23].mxu1  ;;  %v1721_v25 = vsel %vm1289_vm4, %v1719_v1, -inf }
 0x6a1   : > { %v1713_v26 = vpop.f32.mrb[16].mxu0  ;;  %1722 = vmax.xlane.f32.xlu0 %v1721_v25 }
 0x6a2   : > { %v1720_v27 = vmul.f32 0.35355338, %v1713_v26  ;;  %v4208_v28 = vpop.f32.mrb[17].mxu0 }
 0x6a3   : > { %v1716_v29 = vpop.f32.mrb[18].mxu0 }
 0x6a4   : > { %v4209_v8 = vpop.f32.mrb[19].mxu0  ;;  %v1724_v30 = vsel %vm1289_vm4, %v1720_v27, -inf }
 0x6a5   : > { %1725 = vmax.xlane.f32.xlu0 %v1724_v30 }
 0x72e   : > { %v1723_v31 = vpop.xlane.xlu0 %1722 }
 0x72f   : > { %v1727_v32 = vsub.f32 %v1719_v1, %v1723_v31 }
 0x731   : > { %v1729_v33 = vmul.f32 1.442695, %v1727_v32 }
 0x732   : > { %v1726_v34 = vpop.xlane.xlu0 %1725 }
 0x733   : > { %4456 = vpow2.f32 %v1729_v33  ;;  %v1728_v35 = vsub.f32 %v1720_v27, %v1726_v34 }
 0x735   : > { %v1731_v36 = vmul.f32 1.442695, %v1728_v35 }
 0x737   : > { %4458 = vpow2.f32 %v1731_v36 }
 0x73d   : > { %v4457_v37 = vpop.eup %4456 }
 0x73e   : > { %v1733_v38 = vsel %vm1289_vm4, %v4457_v37, 0.0 }
 0x73f   : > { %1734 = vadd.xlane.f32.xlu0 %v1733_v38 }
 0x741   : > { %v4459_v39 = vpop.eup %4458 }
 0x742   : > { %v1736_v40 = vsel %vm1289_vm4, %v4459_v39, 0.0 }
 0x743   : > { %1737 = vadd.xlane.f32.xlu0 %v1736_v40 }
 0x7cc   : > { %v1735_v41 = vpop.xlane.xlu0 %1734 }
 0x7cd   : > { %4460 = vrcp.f32 %v1735_v41  ;;  %v4426_v41 = vld [vmem:[%s5416_s2] sm:$0xff]  }
 0x7d0   : > { %v1738_v42 = vpop.xlane.xlu0 %1737 }
 0x7d1   : > { %4462 = vrcp.f32 %v1738_v42  ;;  %v4427_v42 = vld [vmem:[%s5416_s2 + $0x8] sm:$0xff]  }
 0x7d7   : > { %v4461_v43 = vpop.eup %4460 }
 0x7d8   : > { %v1740_v44 = vmul.f32 %v4461_v43, %v4457_v37 }
 0x7da   : > { %v1743_v45 = vpack.c.bf16 %v1740_v44, %v1740_v44 }
 0x7db   : > { %v4463_v47 = vpop.eup %4462 }
 0x7dc   : > { %v1742_v50 = vmul.f32 %v4463_v47, %v4459_v39  ;;  %4213 = vmatmul.mubr.msk.bf16.vlgmr.msra.gmra.mrb[24].mxu1 %vm1289_vm4, %v1743_v45 }
 0x7dd   : > { %4223 = vmatpush3.bf16.xpose.msra.mxu1 %v4843_v21  ;;  %4224 = vmatprep.mubr.msk.bf16.mxu1 %vm4553_vm1, %v4552_v3  ;;  %v1841_v21 = vmul.bf16 %v4982_v18, %v4827_v13 }
 0x7de   : > { %v1744_v51 = vpack.c.bf16 %v1742_v50, %v1742_v50  ;;  %4234 = vmatprep.subr.bf16.mxu1 %v4552_v3 }
 0x7e0   : > { %4219 = vmatmul.mubr.msk.bf16.vlgmr.msra.gmra.mrb[20].mxu0 %vm1289_vm4, %v1744_v51 }
 0x7e1   : > { %4229 = vmatpush3.bf16.xpose.msra.mxu0 %v4852_v24  ;;  %4230 = vmatprep.mubr.msk.bf16.mxu0 %vm4553_vm1, %v4552_v3 }
 0x7e2   : > { %4240 = vmatprep.subr.bf16.mxu0 %v4552_v3 }
 0x7e4   : > { %4225 = vmatmul.mubr.msk.bf16.vlgmr.msra.gmra.mrb[28].mxu1 %vm1132_vm2, %v1841_v21 }
 0x7e5   : > { %4235 = vmatpush3.bf16.msra.mxu1 %v4870_v46  ;;  %4236 = vmatprep.mubr.msk.bf16.mxu1 %vm4553_vm1, %v4552_v3 }
 0x7e6   : > { %4246 = vmatprep.subr.bf16.mxu1 %v4552_v3 }
 0x7e8   : > { %4231 = vmatmul.mubr.msk.bf16.vlgmr.msra.gmra.mrb[24].mxu0 %vm1132_vm2, %v1842_v53 }
 0x7e9   : > { %4241 = vmatpush3.bf16.msra.mxu0 %v4878_v54  ;;  %4242 = vmatprep.mubr.msk.bf16.mxu0 %vm4553_vm1, %v4552_v3 }
 0x7ea   : > { %4254 = vmatprep.subr.bf16.mxu0 %v4552_v3 }
 0x8af   : > { %v1782_v13 = vpop.f32.mrb[24].mxu1 }
 0x8b0   : > { %v1831_v24 = vmul.f32 %v4926_v49, %v1782_v13  ;;  %v4214_v46 = vpop.f32.mrb[25].mxu1 }
 0x8b1   : > { %v1785_v55 = vpop.f32.mrb[26].mxu1 }
 0x8b2   : > { %v1833_v56 = vadd.f32 %v1831_v24, %v4959_v63  ;;  %v4215_v57 = vpop.f32.mrb[27].mxu1 }
 0x8b3   : > { %v1825_v16 = vpop.f32.mrb[20].mxu0 }
 0x8b4   : > { %v1832_v58 = vmul.f32 %v4926_v49, %v1825_v16  ;;  %v4220_v60 = vpop.f32.mrb[21].mxu0  ;;  %v3986_v16 = vld [vmem:[%s5418_s10] ss:$0 sm:$0xff] }
 0x8b5   : > { %v1828_v61 = vpop.f32.mrb[22].mxu0 }
 0x8b6   : > { %v1834_v54 = vadd.f32 %v1832_v58, %v4964_v11  ;;  %v4221_v0 = vpop.f32.mrb[23].mxu0 }
 0x8b7   : > { %v1880_v2 = vpop.f32.mrb[28].mxu1 }
 0x8b8   : > { %v1929_v4 = vmul.f32 0.35355338, %v1880_v2  ;;  %v4226_v7 = vpop.f32.mrb[29].mxu1 }
 0x8b9   : > { %v1883_v9 = vpop.f32.mrb[30].mxu1 }
 0x8ba   : > { %v4227_v10 = vpop.f32.mrb[31].mxu1  ;;  %v1931_v12 = vsel %vm1289_vm4, %v1929_v4, -inf }
 0x8bb   : > { %v1923_v14 = vpop.f32.mrb[24].mxu0  ;;  %1932 = vmax.xlane.f32.xlu0 %v1931_v12 }
 0x8bc   : > { %v1930_v1 = vmul.f32 0.35355338, %v1923_v14  ;;  %v4232_v63 = vpop.f32.mrb[25].mxu0 }
 0x8bd   : > { %v1926_v15 = vpop.f32.mrb[26].mxu0 }
 0x8be   : > { %v4233_v19 = vpop.f32.mrb[27].mxu0  ;;  %v1934_v23 = vsel %vm1289_vm4, %v1930_v1, -inf }
 0x8bf   : > { %1935 = vmax.xlane.f32.xlu1 %v1934_v23 }
 0x948   : > { %v1933_v25 = vpop.xlane.xlu0 %1932 }
 0x949   : > { %v1937_v26 = vsub.f32 %v1929_v4, %v1933_v25  ;;  %v4428_v25 = vld [vmem:[%s4746_s21] sm:$0xff]  }
 0x94b   : > { %v1939_v11 = vmul.f32 1.442695, %v1937_v26  ;;  %v4429_v26 = vld [vmem:[%s4746_s21 + $0x8] sm:$0xff]   ;;  %s5425_s21 = scalar_lea.vmem %s5352_s9, %s4705_s6 }
 0x94c   : > { %v1936_v27 = vpop.xlane.xlu1 %1935 }
 0x94d   : > { %4464 = vpow2.f32 %v1939_v11  ;;  %v1938_v28 = vsub.f32 %v1930_v1, %v1936_v27  ;;  %v2160_v11 = vld [vmem:[%s5419_s12] sm:$0xff]  ;;  %v2161_v27 = vld [vmem:[%s5419_s12 + $0x8] sm:$0xff] }
 0x94f   : > { %v1941_v29 = vmul.f32 1.442695, %v1938_v28  ;;  %v2162_v28 = vpack.c.bf16 %v2161_v27, %v2160_v11 }
 0x951   : > { %4466 = vpow2.f32 %v1941_v29  ;;  %v4430_v29 = vld [vmem:[%s4737_s26] sm:$0xff]  }
 0x957   : > { %v4465_v8 = vpop.eup %4464 }
 0x958   : > { %v1943_v30 = vsel %vm1289_vm4, %v4465_v8, 0.0 }
 0x959   : > { %1944 = vadd.xlane.f32.xlu0 %v1943_v30 }
 0x95b   : > { %v4467_v31 = vpop.eup %4466 }
 0x95c   : > { %v1946_v32 = vsel %vm1289_vm4, %v4467_v31, 0.0 }
 0x95d   : > { %1947 = vadd.xlane.f32.xlu1 %v1946_v32 }
 0x9e6   : > { %v1945_v33 = vpop.xlane.xlu0 %1944 }
 0x9e7   : > { %4468 = vrcp.f32 %v1945_v33 }
 0x9ea   : > { %v1948_v34 = vpop.xlane.xlu1 %1947 }
 0x9eb   : > { %4470 = vrcp.f32 %v1948_v34 }
 0x9f1   : > { %v4469_v35 = vpop.eup %4468 }
 0x9f2   : > { %v1950_v36 = vmul.f32 %v4469_v35, %v4465_v8  ;;  %v4431_v8 = vld [vmem:[%s4737_s26 + $0x8] sm:$0xff]   ;;  %s5421_s26 = scalar_lea.vmem %s5420_s24, %s4705_s6 }
 0x9f4   : > { %v1953_v37 = vpack.c.bf16 %v1950_v36, %v1950_v36 }
 0x9f5   : > { %v4471_v38 = vpop.eup %4470 }
 0x9f6   : > { %v1952_v39 = vmul.f32 %v4471_v38, %v4467_v31  ;;  %4237 = vmatmul.mubr.msk.bf16.vlgmr.msra.gmra.mrb[32].mxu1 %vm1289_vm4, %v1953_v37  ;;  %v3990_v37 = vld [vmem:[%s5421_s26] ss:$0 sm:$0xff]  ;;  %s5427_s26 = scalar_lea.vmem %s5357_s14, %s4705_s6 }
 0x9f7   : > { %4250 = vmatprep.mubr.msk.bf16.mxu1 %vm4553_vm1, %v4552_v3  ;;  %4247 = vmatpush3.bf16.msra.mxu1 %v4426_v41 }
 0x9f8   : > { %v1954_v40 = vpack.c.bf16 %v1952_v39, %v1952_v39  ;;  %4248 = vmatprep.subr.bf16.mxu1 %v4552_v3 }
 0x9fa   : > { %4243 = vmatmul.mubr.msk.bf16.vlgmr.msra.gmra.mrb[28].mxu0 %vm1289_vm4, %v1954_v40 }
 0x9fb   : > { %4258 = vmatprep.mubr.msk.bf16.mxu0 %vm4553_vm1, %v4552_v3  ;;  %4249 = vmatpush3.bf16.msra.mxu1 %v4427_v42  ;;  %v3991_v42 = vld [vmem:[%s5423_s25] ss:$0 sm:$0xff] }
 0x9fc   : > { %4262 = vmatprep.subr.bf16.mxu1 %v4552_v3  ;;  %4255 = vmatpush3.bf16.msra.mxu0 %v4430_v29 }
 0x9fd   : > { %4256 = vmatprep.subr.bf16.mxu0 %v4552_v3 }
 0xa00   : > { %4257 = vmatpush3.bf16.msra.mxu0 %v4431_v8 }
 0xa01   : > { %4270 = vmatprep.subr.bf16.mxu0 %v4552_v3 }
 0xac9   : > { %v1992_v43 = vpop.f32.mrb[32].mxu1 }
 0xaca   : > { %v2041_v44 = vmul.f32 %v4973_v48, %v1992_v43  ;;  %v4238_v45 = vpop.f32.mrb[33].mxu1 }
 0xacb   : > { %v1995_v47 = vpop.f32.mrb[34].mxu1 }
 0xacc   : > { %v2043_v50 = vadd.f32 %v2041_v44, %v1833_v56  ;;  %v4239_v51 = vpop.f32.mrb[35].mxu1 }
 0xacd   : > { %v2035_v21 = vpop.f32.mrb[28].mxu0 }
 0xace   : > { %v2042_v53 = vmul.f32 %v4973_v48, %v2035_v21  ;;  %v4244_v13 = vpop.f32.mrb[29].mxu0 }
 0xacf   : > { %v2038_v24 = vpop.f32.mrb[30].mxu0 }
 0xad0   : > { %v2044_v46 = vadd.f32 %v2042_v53, %v1834_v54  ;;  %v4245_v55 = vpop.f32.mrb[31].mxu0 }
 0xad2   : > { %v2045_v57 = vpack.c.bf16 %v2044_v46, %v2043_v50  ;;  %v3996_v50 = vld [vmem:[%s5424_s7] ss:$0 sm:$0xff] }
 0xad4   : > { %4251 = vmatmul.mubr.msk.bf16.vlgmr.msra.gmra.mrb[36].mxu1 %vm1132_vm2, %v2045_v57 }
 0xad5   : > { %4266 = vmatprep.mubr.msk.bf16.mxu1 %vm4553_vm1, %v4552_v3  ;;  %4263 = vmatpush3.bf16.msra.mxu1 %v4428_v25 }
 0xad6   : > { %4264 = vmatprep.subr.bf16.mxu1 %v4552_v3 }
 0xad9   : > { %4265 = vmatpush3.bf16.msra.mxu1 %v4429_v26 }
 0xada   : > { %4276 = vmatprep.subr.bf16.mxu1 %v4552_v3 }
 0xadc   : > { %4267 = vmatmul.mubr.msk.bf16.vlgmr.msra.gmra.mrb[40].mxu1 %vm1132_vm2, %v2162_v28 }
 0xadd   : > { %4278 = vmatprep.mubr.msk.bf16.mxu1 %vm4553_vm1, %v4552_v3 }
 0xba7   : > { %v2106_v56 = vpop.f32.mrb[36].mxu1 }
 0xba8   : > { %v2107_v58 = vadd.f32 %v3986_v16, %v2106_v56  ;;  %v4252_v60 = vpop.f32.mrb[37].mxu1 }
 0xba9   : > { %v2109_v61 = vpop.f32.mrb[38].mxu1 }
 0xbaa   : > { %v2110_v0 = vadd.f32 %v3986_v16, %v2109_v61  ;;  %v4253_v2 = vpop.f32.mrb[39].mxu1  ;;  %v2113_v54 = vadd.f32 %v2107_v58, %v4809_v5  ;;  %v3992_v58 = vld [vmem:[%s5425_s21] ss:$0 sm:$0xff] }
 0xbac   : > { %v2117_v4 = vsel %vm1132_vm2, %v2113_v54, 0.0  ;;  %v2114_v7 = vadd.f32 %v2110_v0, %v4811_v6 }
 0xbad   : > { %2118 = vadd.xlane.f32.xlu0 %v2117_v4 }
 0xbae   : > { %v2120_v9 = vsel %vm1132_vm2, %v2114_v7, 0.0 }
 0xbaf   : > { %2121 = vadd.xlane.f32.xlu1 %v2120_v9  ;;  %v2291_v51 = vpop.f32.mrb[40].mxu1 }
 0xbb0   : > { %v2292_v21 = vadd.f32 %v3996_v50, %v2291_v51  ;;  %v4268_v53 = vpop.f32.mrb[41].mxu1 }
 0xbb1   : > { %v2294_v13 = vpop.f32.mrb[42].mxu1 }
 0xbb2   : > { %v2300_v24 = vpack.c.bf16 %v2292_v21, %v2292_v21  ;;  %v2295_v46 = vadd.f32 %v3996_v50, %v2294_v13  ;;  %v4269_v55 = vpop.f32.mrb[43].mxu1 }
 0xbb4   : > { %v5079_v57 = vsel %vm1132_vm2, %v2300_v24, 0  ;;  %v2301_v16 = vpack.c.bf16 %v2295_v46, %v2295_v46 }
 0xbb6   : > { %v5083_v56 = vsel %vm1132_vm2, %v2301_v16, 0 }
 0xbb7   : > { %4277 = vmatpush3.bf16.xpose.msra.mxu1 %v5083_v56 }
 0xbb8   : > { %4288 = vmatprep.subr.bf16.mxu1 %v4552_v3 }
 0xc3a   : > { %v2119_v10 = vpop.xlane.xlu0 %2118 }
 0xc3b   : > { %v2124_v12 = vmul.f32 0.03125, %v2119_v10 }
 0xc3c   : > { %v2122_v14 = vpop.xlane.xlu1 %2121 }
 0xc3d   : > { %v2126_v1 = vsub.f32 %v2113_v54, %v2124_v12  ;;  %v2125_v63 = vmul.f32 0.03125, %v2122_v14 }
 0xc3f   : > { %v2127_v15 = vsub.f32 %v2114_v7, %v2125_v63  ;;  %v2128_v19 = vmul.f32 %v2126_v1, %v2126_v1 }
 0xc41   : > { %v2130_v5 = vsel %vm1132_vm2, %v2128_v19, 0.0  ;;  %v2129_v23 = vmul.f32 %v2127_v15, %v2127_v15 }
 0xc42   : > { %2131 = vadd.xlane.f32.xlu0 %v2130_v5 }
 0xc43   : > { %v2133_v6 = vsel %vm1132_vm2, %v2129_v23, 0.0 }
 0xc44   : > { %2134 = vadd.xlane.f32.xlu1 %v2133_v6 }
 0xccf   : > { %v2132_v30 = vpop.xlane.xlu0 %2131 }
 0xcd0   : > { %v2136_v31 = vmul.f32 0.03125, %v2132_v30 }
 0xcd1   : > { %v2135_v32 = vpop.xlane.xlu1 %2134 }
 0xcd2   : > { %v2138_v33 = vadd.f32 1e-05, %v2136_v31  ;;  %v2137_v34 = vmul.f32 0.03125, %v2135_v32 }
 0xcd4   : > { %4472 = vrsqrt.f32 %v2138_v33  ;;  %v2139_v35 = vadd.f32 1e-05, %v2137_v34 }
 0xcd6   : > { %4474 = vrsqrt.f32 %v2139_v35 }
 0xcde   : > { %v4473_v36 = vpop.eup %4472 }
 0xcdf   : > { %v2142_v38 = vmul.f32 %v4473_v36, %v2126_v1 }
 0xce0   : > { %v4475_v39 = vpop.eup %4474 }
 0xce1   : > { %v2150_v40 = vmul.f32 %v3990_v37, %v2142_v38  ;;  %v2143_v41 = vmul.f32 %v4475_v39, %v2127_v15 }
 0xce3   : > { %v2151_v43 = vmul.f32 %v3990_v37, %v2143_v41  ;;  %v5064_v44 = vadd.f32 %v3991_v42, %v2150_v40 }
 0xce5   : > { %v5066_v45 = vadd.f32 %v3991_v42, %v2151_v43 }
 0xce7   : > { %v2163_v47 = vpack.c.bf16 %v5066_v45, %v5064_v44 }
 0xce9   : > { %4259 = vmatmul.mubr.msk.bf16.vlgmr.msra.gmra.mrb[32].mxu0 %vm1132_vm2, %v2163_v47 }
 0xcea   : > { %4272 = vmatprep.mubr.msk.bf16.mxu0 %vm4553_vm1, %v4552_v3  ;;  %4271 = vmatpush3.bf16.xpose.msra.mxu0 %v5079_v57 }
 0xceb   : > { %4282 = vmatprep.subr.bf16.mxu0 %v4552_v3 }
 0xdbc   : > { %v2224_v60 = vpop.f32.mrb[32].mxu0 }
 0xdbd   : > { %v2225_v61 = vadd.f32 %v3992_v58, %v2224_v60  ;;  %v4260_v0 = vpop.f32.mrb[33].mxu0 }
 0xdbe   : > { %v2227_v2 = vpop.f32.mrb[34].mxu0 }
 0xdbf   : > { %v5093_v54 = vpack.c.bf16 %v2225_v61, %v2225_v61  ;;  %v2228_v4 = vadd.f32 %v3992_v58, %v2227_v2  ;;  %v4261_v7 = vpop.f32.mrb[35].mxu0 }
 0xdc1   : > { %v2302_v9 = vmul.bf16 %v5093_v54, %v4848_v22  ;;  %v5097_v10 = vpack.c.bf16 %v2228_v4, %v2228_v4  ;;  %v2524_v53 = vmul.bf16 %v5093_v54, %v4894_v62 }
 0xdc3   : > { %4273 = vmatmul.mubr.msk.bf16.vlgmr.msra.gmra.mrb[36].mxu0 %vm1132_vm2, %v2302_v9  ;;  %v2303_v12 = vmul.bf16 %v5097_v10, %v4848_v22  ;;  %v2525_v13 = vmul.bf16 %v5097_v10, %v4894_v62 }
 0xdc4   : > { %4284 = vmatprep.mubr.msk.bf16.mxu0 %vm4553_vm1, %v4552_v3 }
 0xdc5   : > { %4279 = vmatmul.mubr.msk.bf16.vlgmr.msra.gmra.mrb[44].mxu1 %vm1132_vm2, %v2303_v12 }
 0xdc6   : > { %4290 = vmatprep.mubr.msk.bf16.mxu1 %vm4553_vm1, %v4552_v3 }
 0xe96   : > { %v2344_v14 = vpop.f32.mrb[36].mxu0 }
 0xe97   : > { %v2396_v1 = vmul.f32 0.35355338, %v2344_v14  ;;  %v4274_v63 = vpop.f32.mrb[37].mxu0 }
 0xe98   : > { %v2347_v15 = vpop.f32.mrb[38].mxu0  ;;  %v2390_v19 = vpop.f32.mrb[44].mxu1 }
 0xe99   : > { %v4275_v5 = vpop.f32.mrb[39].mxu0  ;;  %v2398_v23 = vsel %vm1289_vm4, %v2396_v1, -inf  ;;  %v2397_v6 = vmul.f32 0.35355338, %v2390_v19  ;;  %v4280_v25 = vpop.f32.mrb[45].mxu1 }
 0xe9a   : > { %2399 = vmax.xlane.f32.xlu0 %v2398_v23  ;;  %v2393_v22 = vpop.f32.mrb[46].mxu1 }
 0xe9b   : > { %v4281_v26 = vpop.f32.mrb[47].mxu1  ;;  %v2401_v11 = vsel %vm1289_vm4, %v2397_v6, -inf }
 0xe9c   : > { %2402 = vmax.xlane.f32.xlu1 %v2401_v11 }
 0xf27   : > { %v2400_v27 = vpop.xlane.xlu0 %2399 }
 0xf28   : > { %v2404_v28 = vsub.f32 %v2396_v1, %v2400_v27 }
 0xf29   : > { %v2403_v8 = vpop.xlane.xlu1 %2402 }
 0xf2a   : > { %v2406_v29 = vmul.f32 1.442695, %v2404_v28  ;;  %v2405_v30 = vsub.f32 %v2397_v6, %v2403_v8 }
 0xf2c   : > { %4476 = vpow2.f32 %v2406_v29  ;;  %v2408_v31 = vmul.f32 1.442695, %v2405_v30 }
 0xf2e   : > { %4478 = vpow2.f32 %v2408_v31 }
 0xf36   : > { %v4477_v32 = vpop.eup %4476 }
 0xf37   : > { %v2410_v33 = vsel %vm1289_vm4, %v4477_v32, 0.0 }
 0xf38   : > { %2411 = vadd.xlane.f32.xlu0 %v2410_v33  ;;  %v4479_v34 = vpop.eup %4478 }
 0xf39   : > { %v2413_v35 = vsel %vm1289_vm4, %v4479_v34, 0.0 }
 0xf3a   : > { %2414 = vadd.xlane.f32.xlu1 %v2413_v35 }
 0xf4b   : > { %2472 = vrot.lane.b32.xlu1 %v2301_v16, %s4554_s1 }
 0xf4e   : > { %2423 = vrot.lane.b32.xlu0 %v2300_v24, %s4554_s1 }
 0xfc5   : > { %v2412_v36 = vpop.xlane.xlu0 %2411 }
 0xfc6   : > { %4480 = vrcp.f32 %v2412_v36 }
 0xfc7   : > { %v2415_v37 = vpop.xlane.xlu1 %2414 }
 0xfc8   : > { %4482 = vrcp.f32 %v2415_v37 }
 0xfc9   : > { %v2424_v38 = vpop.permute.xlu0 %2423 }
 0xfca   : > { %v5114_v39 = vsel %vm1319_vm5, %v2424_v38, 0  ;;  %v2728_v38 = vmul.bf16 %v5093_v54, %v4935_v52 }
 0xfcb   : > { %4283 = vmatpush3.bf16.msra.mxu0 %v5114_v39  ;;  %v2473_v40 = vpop.permute.xlu1 %2472 }
 0xfcc   : > { %4294 = vmatprep.subr.bf16.mxu0 %v4552_v3  ;;  %v5119_v41 = vsel %vm1319_vm5, %v2473_v40, 0  ;;  %v2729_v40 = vmul.bf16 %v5097_v10, %v4935_v52 }
 0xfcd   : > { %4289 = vmatpush3.bf16.msra.mxu1 %v5119_v41 }
 0xfce   : > { %4300 = vmatprep.subr.bf16.mxu1 %v4552_v3 }
 0xfd0   : > { %v4481_v42 = vpop.eup %4480 }
 0xfd1   : > { %v2417_v43 = vmul.f32 %v4481_v42, %v4477_v32 }
 0xfd2   : > { %v4483_v47 = vpop.eup %4482 }
 0xfd3   : > { %v2420_v50 = vpack.c.bf16 %v2417_v43, %v2417_v43  ;;  %v2419_v51 = vmul.f32 %v4483_v47, %v4479_v34 }
 0xfd5   : > { %4285 = vmatmul.mubr.msk.bf16.vlgmr.msra.gmra.mrb[40].mxu0 %vm1289_vm4, %v2420_v50  ;;  %v2421_v21 = vpack.c.bf16 %v2419_v51, %v2419_v51 }
 0xfd6   : > { %4295 = vmatpush3.bf16.xpose.msra.mxu0 %v5079_v57  ;;  %4296 = vmatprep.mubr.msk.bf16.mxu0 %vm4553_vm1, %v4552_v3 }
 0xfd7   : > { %4306 = vmatprep.subr.bf16.mxu0 %v4552_v3  ;;  %4291 = vmatmul.mubr.msk.bf16.vlgmr.msra.gmra.mrb[48].mxu1 %vm1289_vm4, %v2421_v21 }
 0xfd8   : > { %4301 = vmatpush3.bf16.xpose.msra.mxu1 %v5083_v56  ;;  %4302 = vmatprep.mubr.msk.bf16.mxu1 %vm4553_vm1, %v4552_v3 }
 0xfd9   : > { %4312 = vmatprep.subr.bf16.mxu1 %v4552_v3 }
 0xfdd   : > { %4297 = vmatmul.mubr.msk.bf16.vlgmr.msra.gmra.mrb[44].mxu0 %vm1132_vm2, %v2524_v53 }
 0xfde   : > { %4307 = vmatpush3.bf16.msra.mxu0 %v5114_v39  ;;  %4308 = vmatprep.mubr.msk.bf16.mxu0 %vm4553_vm1, %v4552_v3 }
 0xfdf   : > { %4318 = vmatprep.subr.bf16.mxu0 %v4552_v3  ;;  %4303 = vmatmul.mubr.msk.bf16.vlgmr.msra.gmra.mrb[52].mxu1 %vm1132_vm2, %v2525_v13 }
 0xfe0   : > { %4313 = vmatpush3.bf16.msra.mxu1 %v5119_v41  ;;  %4314 = vmatprep.mubr.msk.bf16.mxu1 %vm4553_vm1, %v4552_v3 }
 0xfe1   : > { %4324 = vmatprep.subr.bf16.mxu1 %v4552_v3 }
0x10a8   : > { %v5147_v24 = vpop.f32.mrb[40].mxu0 }
0x10a9   : > { %v4286_v46 = vpop.f32.mrb[41].mxu0  ;;  %v2520_v52 = vmul.f32 %v4840_v20, %v5147_v24 }
0x10aa   : > { %v2468_v62 = vpop.f32.mrb[42].mxu0  ;;  %v5149_v55 = vpop.f32.mrb[48].mxu1 }
0x10ab   : > { %v4287_v16 = vpop.f32.mrb[43].mxu0  ;;  %v4292_v58 = vpop.f32.mrb[49].mxu1  ;;  %v2521_v13 = vmul.f32 %v4840_v20, %v5149_v55 }
0x10ac   : > { %v2517_v60 = vpop.f32.mrb[50].mxu1 }
0x10ad   : > { %v4293_v61 = vpop.f32.mrb[51].mxu1 }
0x10b0   : > { %v2563_v0 = vpop.f32.mrb[44].mxu0 }
0x10b1   : > { %v2612_v2 = vmul.f32 0.35355338, %v2563_v0  ;;  %v4298_v4 = vpop.f32.mrb[45].mxu0 }
0x10b2   : > { %v2566_v7 = vpop.f32.mrb[46].mxu0  ;;  %v2606_v9 = vpop.f32.mrb[52].mxu1 }
0x10b3   : > { %v4299_v12 = vpop.f32.mrb[47].mxu0  ;;  %v2614_v14 = vsel %vm1289_vm4, %v2612_v2, -inf  ;;  %v2613_v1 = vmul.f32 0.35355338, %v2606_v9  ;;  %v4304_v63 = vpop.f32.mrb[53].mxu1 }
0x10b4   : > { %2615 = vmax.xlane.f32.xlu1 %v2614_v14  ;;  %v2609_v15 = vpop.f32.mrb[54].mxu1 }
0x10b5   : > { %v4305_v19 = vpop.f32.mrb[55].mxu1  ;;  %v2617_v5 = vsel %vm1289_vm4, %v2613_v1, -inf }
0x10b6   : > { %2618 = vmax.xlane.f32.xlu0 %v2617_v5 }
0x1141   : > { %v2616_v23 = vpop.xlane.xlu1 %2615 }
0x1142   : > { %v2620_v6 = vsub.f32 %v2612_v2, %v2616_v23 }
0x1143   : > { %v2619_v22 = vpop.xlane.xlu0 %2618 }
0x1144   : > { %v2622_v25 = vmul.f32 1.442695, %v2620_v6  ;;  %v2621_v26 = vsub.f32 %v2613_v1, %v2619_v22 }
0x1146   : > { %4484 = vpow2.f32 %v2622_v25  ;;  %v2624_v11 = vmul.f32 1.442695, %v2621_v26 }
0x1148   : > { %4486 = vpow2.f32 %v2624_v11 }
0x1150   : > { %v4485_v27 = vpop.eup %4484 }
0x1151   : > { %v2626_v28 = vsel %vm1289_vm4, %v4485_v27, 0.0 }
0x1152   : > { %2627 = vadd.xlane.f32.xlu0 %v2626_v28  ;;  %v4487_v29 = vpop.eup %4486 }
0x1153   : > { %v2629_v8 = vsel %vm1289_vm4, %v4487_v29, 0.0 }
0x1154   : > { %2630 = vadd.xlane.f32.xlu1 %v2629_v8 }
0x11df   : > { %v2628_v30 = vpop.xlane.xlu0 %2627 }
0x11e0   : > { %4488 = vrcp.f32 %v2628_v30 }
0x11e1   : > { %v2631_v31 = vpop.xlane.xlu1 %2630 }
0x11e2   : > { %4490 = vrcp.f32 %v2631_v31 }
0x11ea   : > { %v4489_v32 = vpop.eup %4488 }
0x11eb   : > { %v2633_v33 = vmul.f32 %v4489_v32, %v4485_v27 }
0x11ec   : > { %v4491_v34 = vpop.eup %4490 }
0x11ed   : > { %v2636_v35 = vpack.c.bf16 %v2633_v33, %v2633_v33  ;;  %v2635_v36 = vmul.f32 %v4491_v34, %v4487_v29  ;;  %v2932_v33 = vmul.bf16 %v5093_v54, %v4982_v18 }
0x11ef   : > { %4309 = vmatmul.mubr.msk.bf16.vlgmr.msra.gmra.mrb[48].mxu0 %vm1289_vm4, %v2636_v35  ;;  %v2637_v37 = vpack.c.bf16 %v2635_v36, %v2635_v36 }
0x11f0   : > { %4319 = vmatpush3.bf16.xpose.msra.mxu0 %v5079_v57  ;;  %4320 = vmatprep.mubr.msk.bf16.mxu0 %vm4553_vm1, %v4552_v3 }
0x11f1   : > { %4330 = vmatprep.subr.bf16.mxu0 %v4552_v3  ;;  %4315 = vmatmul.mubr.msk.bf16.vlgmr.msra.gmra.mrb[56].mxu1 %vm1289_vm4, %v2637_v37 }
0x11f2   : > { %4325 = vmatpush3.bf16.xpose.msra.mxu1 %v5083_v56  ;;  %4326 = vmatprep.mubr.msk.bf16.mxu1 %vm4553_vm1, %v4552_v3 }
0x11f3   : > { %4336 = vmatprep.subr.bf16.mxu1 %v4552_v3 }
0x11f7   : > { %4321 = vmatmul.mubr.msk.bf16.vlgmr.msra.gmra.mrb[52].mxu0 %vm1132_vm2, %v2728_v38 }
0x11f8   : > { %4331 = vmatpush3.bf16.msra.mxu0 %v5114_v39  ;;  %4332 = vmatprep.mubr.msk.bf16.mxu0 %vm4553_vm1, %v4552_v3 }
0x11f9   : > { %4342 = vmatprep.subr.bf16.mxu0 %v4552_v3  ;;  %4327 = vmatmul.mubr.msk.bf16.vlgmr.msra.gmra.mrb[60].mxu1 %vm1132_vm2, %v2729_v40 }
0x11fa   : > { %4337 = vmatpush3.bf16.msra.mxu1 %v5119_v41  ;;  %4338 = vmatprep.mubr.msk.bf16.mxu1 %vm4553_vm1, %v4552_v3 }
0x11fb   : > { %4348 = vmatprep.subr.bf16.mxu1 %v4552_v3 }
0x12c2   : > { %v2675_v42 = vpop.f32.mrb[48].mxu0 }
0x12c3   : > { %v2724_v43 = vmul.f32 %v4885_v59, %v2675_v42  ;;  %v4310_v47 = vpop.f32.mrb[49].mxu0 }
0x12c4   : > { %v2678_v50 = vpop.f32.mrb[50].mxu0  ;;  %v2718_v21 = vpop.f32.mrb[56].mxu1 }
0x12c5   : > { %v5182_v51 = vadd.f32 %v2724_v43, %v2520_v52  ;;  %v4311_v53 = vpop.f32.mrb[51].mxu0  ;;  %v2725_v46 = vmul.f32 %v4885_v59, %v2718_v21  ;;  %v4316_v62 = vpop.f32.mrb[57].mxu1 }
0x12c6   : > { %v2721_v16 = vpop.f32.mrb[58].mxu1 }
0x12c7   : > { %v5187_v58 = vadd.f32 %v2725_v46, %v2521_v13  ;;  %v4317_v60 = vpop.f32.mrb[59].mxu1 }
0x12ca   : > { %v2767_v61 = vpop.f32.mrb[52].mxu0 }
0x12cb   : > { %v2816_v24 = vmul.f32 0.35355338, %v2767_v61  ;;  %v4322_v0 = vpop.f32.mrb[53].mxu0 }
0x12cc   : > { %v2770_v2 = vpop.f32.mrb[54].mxu0  ;;  %v2810_v4 = vpop.f32.mrb[60].mxu1 }
0x12cd   : > { %v4323_v7 = vpop.f32.mrb[55].mxu0  ;;  %v2818_v9 = vsel %vm1289_vm4, %v2816_v24, -inf  ;;  %v2817_v12 = vmul.f32 0.35355338, %v2810_v4  ;;  %v4328_v14 = vpop.f32.mrb[61].mxu1 }
0x12ce   : > { %2819 = vmax.xlane.f32.xlu0 %v2818_v9  ;;  %v2813_v1 = vpop.f32.mrb[62].mxu1 }
0x12cf   : > { %v4329_v20 = vpop.f32.mrb[63].mxu1  ;;  %v2821_v59 = vsel %vm1289_vm4, %v2817_v12, -inf }
0x12d0   : > { %2822 = vmax.xlane.f32.xlu1 %v2821_v59 }
0x135b   : > { %v2820_v55 = vpop.xlane.xlu0 %2819 }
0x135c   : > { %v2824_v63 = vsub.f32 %v2816_v24, %v2820_v55 }
0x135d   : > { %v2823_v19 = vpop.xlane.xlu1 %2822 }
0x135e   : > { %v2826_v15 = vmul.f32 1.442695, %v2824_v63  ;;  %v2825_v5 = vsub.f32 %v2817_v12, %v2823_v19  ;;  %v4432_v19 = vld [vmem:[%s4755_s8] sm:$0xff]  }
0x1360   : > { %4492 = vpow2.f32 %v2826_v15  ;;  %v2828_v23 = vmul.f32 1.442695, %v2825_v5  ;;  %v4433_v5 = vld [vmem:[%s4755_s8 + $0x8] sm:$0xff]  }
0x1362   : > { %4494 = vpow2.f32 %v2828_v23 }
0x136a   : > { %v4493_v6 = vpop.eup %4492 }
0x136b   : > { %v2830_v25 = vsel %vm1289_vm4, %v4493_v6, 0.0 }
0x136c   : > { %2831 = vadd.xlane.f32.xlu0 %v2830_v25  ;;  %v4495_v22 = vpop.eup %4494 }
0x136d   : > { %v2833_v26 = vsel %vm1289_vm4, %v4495_v22, 0.0 }
0x136e   : > { %2834 = vadd.xlane.f32.xlu1 %v2833_v26 }
0x13f9   : > { %v2832_v11 = vpop.xlane.xlu0 %2831 }
0x13fa   : > { %4496 = vrcp.f32 %v2832_v11 }
0x13fb   : > { %v2835_v27 = vpop.xlane.xlu1 %2834 }
0x13fc   : > { %4498 = vrcp.f32 %v2835_v27 }
0x1404   : > { %v4497_v28 = vpop.eup %4496 }
0x1405   : > { %v2837_v29 = vmul.f32 %v4497_v28, %v4493_v6 }
0x1406   : > { %v4499_v8 = vpop.eup %4498 }
0x1407   : > { %v2840_v30 = vpack.c.bf16 %v2837_v29, %v2837_v29  ;;  %v2839_v31 = vmul.f32 %v4499_v8, %v4495_v22 }
0x1409   : > { %4333 = vmatmul.mubr.msk.bf16.vlgmr.msra.gmra.mrb[56].mxu0 %vm1289_vm4, %v2840_v30  ;;  %v2841_v32 = vpack.c.bf16 %v2839_v31, %v2839_v31 }
0x140a   : > { %4343 = vmatpush3.bf16.xpose.msra.mxu0 %v5079_v57  ;;  %4344 = vmatprep.mubr.msk.bf16.mxu0 %vm4553_vm1, %v4552_v3  ;;  %v2933_v57 = vmul.bf16 %v5097_v10, %v4982_v18 }
0x140b   : > { %4354 = vmatprep.subr.bf16.mxu0 %v4552_v3  ;;  %4339 = vmatmul.mubr.msk.bf16.vlgmr.msra.gmra.mrb[64].mxu1 %vm1289_vm4, %v2841_v32 }
0x140c   : > { %4349 = vmatpush3.bf16.xpose.msra.mxu1 %v5083_v56  ;;  %4350 = vmatprep.mubr.msk.bf16.mxu1 %vm4553_vm1, %v4552_v3 }
0x140d   : > { %4360 = vmatprep.subr.bf16.mxu1 %v4552_v3 }
0x1411   : > { %4345 = vmatmul.mubr.msk.bf16.vlgmr.msra.gmra.mrb[60].mxu0 %vm1132_vm2, %v2932_v33  ;;  %v4016_v33 = vld [vmem:[%s5426_s27] ss:$0 sm:$0xff]  ;;  %s5432_s27 = sld [smem:[#allocation3_spill]] }
0x1412   : > { %4355 = vmatpush3.bf16.msra.mxu0 %v5114_v39  ;;  %4356 = vmatprep.mubr.msk.bf16.mxu0 %vm4553_vm1, %v4552_v3 }
0x1413   : > { %4366 = vmatprep.subr.bf16.mxu0 %v4552_v3  ;;  %4351 = vmatmul.mubr.msk.bf16.vlgmr.msra.gmra.mrb[68].mxu1 %vm1132_vm2, %v2933_v57 }
0x1414   : > { %4361 = vmatpush3.bf16.msra.mxu1 %v5119_v41  ;;  %4362 = vmatprep.mubr.msk.bf16.mxu1 %vm4553_vm1, %v4552_v3 }
0x1415   : > { %4374 = vmatprep.subr.bf16.mxu1 %v4552_v3 }
0x1417   : > { %p4034_p6 = scmp.ne.s32.totalorder %s5432_s27, 1 }
0x1418   : > { %s5433_s24 = sld [smem:[#allocation23_spill]] (!%p4034_p6)  ;;  %vm3510_vm0 = vcmask (!%p4034_p6), 1041409   ;;  %s5434_s1 = sld [smem:[#allocation24_spill]] (!%p4034_p6) }
0x14dc   : > { %v2879_v56 = vpop.f32.mrb[56].mxu0 }
0x14dd   : > { %v2928_v54 = vmul.f32 %v4926_v49, %v2879_v56  ;;  %v4334_v18 = vpop.f32.mrb[57].mxu0 }
0x14de   : > { %v2882_v10 = vpop.f32.mrb[58].mxu0  ;;  %v2922_v34 = vpop.f32.mrb[64].mxu1 }
0x14df   : > { %v2930_v39 = vadd.f32 %v2928_v54, %v5182_v51  ;;  %v4335_v35 = vpop.f32.mrb[59].mxu0  ;;  %v2929_v36 = vmul.f32 %v4926_v49, %v2922_v34  ;;  %v4340_v37 = vpop.f32.mrb[65].mxu1 }
0x14e0   : > { %v2925_v38 = vpop.f32.mrb[66].mxu1 }
0x14e1   : > { %v2931_v41 = vadd.f32 %v2929_v36, %v5187_v58  ;;  %v4341_v40 = vpop.f32.mrb[67].mxu1 }
0x14e4   : > { %v2971_v42 = vpop.f32.mrb[60].mxu0 }
0x14e5   : > { %v3020_v52 = vmul.f32 0.35355338, %v2971_v42  ;;  %v4346_v43 = vpop.f32.mrb[61].mxu0 }
0x14e6   : > { %v2974_v47 = vpop.f32.mrb[62].mxu0  ;;  %v3014_v50 = vpop.f32.mrb[68].mxu1 }
0x14e7   : > { %v4347_v21 = vpop.f32.mrb[63].mxu0  ;;  %v3022_v53 = vsel %vm1289_vm4, %v3020_v52, -inf  ;;  %v3021_v13 = vmul.f32 0.35355338, %v3014_v50  ;;  %v4352_v46 = vpop.f32.mrb[69].mxu1  ;;  %v4434_v50 = vld [vmem:[%s4772_s0] sm:$0xff]  }
0x14e8   : > { %3023 = vmax.xlane.f32.xlu0 %v3022_v53  ;;  %v3017_v51 = vpop.f32.mrb[70].mxu1  ;;  %v4435_v21 = vld [vmem:[%s4772_s0 + $0x8] sm:$0xff]   ;;  %v4436_v53 = vld [vmem:[%s4782_s28] sm:$0xff]   ;;  %s5435_s0 = sld [smem:[#allocation25_spill]] (!%p4034_p6) }
0x14e9   : > { %v4353_v62 = vpop.f32.mrb[71].mxu1  ;;  %v3025_v49 = vsel %vm1289_vm4, %v3021_v13, -inf }
0x14ea   : > { %3026 = vmax.xlane.f32.xlu1 %v3025_v49 }
0x1575   : > { %v3024_v16 = vpop.xlane.xlu0 %3023 }
0x1576   : > { %v3028_v60 = vsub.f32 %v3020_v52, %v3024_v16 }
0x1577   : > { %v3027_v61 = vpop.xlane.xlu1 %3026 }
0x1578   : > { %v3030_v58 = vmul.f32 1.442695, %v3028_v60  ;;  %v3029_v24 = vsub.f32 %v3021_v13, %v3027_v61  ;;  %v4437_v13 = vld [vmem:[%s4782_s28 + $0x8] sm:$0xff]   ;;  %v4020_v61 = vld [vmem:[%s5427_s26] ss:$0 sm:$0xff] }
0x157a   : > { %4500 = vpow2.f32 %v3030_v58  ;;  %v3032_v0 = vmul.f32 1.442695, %v3029_v24 }
0x157c   : > { %4502 = vpow2.f32 %v3032_v0 }
0x1584   : > { %v4501_v2 = vpop.eup %4500 }
0x1585   : > { %v3034_v4 = vsel %vm1289_vm4, %v4501_v2, 0.0 }
0x1586   : > { %3035 = vadd.xlane.f32.xlu0 %v3034_v4  ;;  %v4503_v7 = vpop.eup %4502 }
0x1587   : > { %v3037_v9 = vsel %vm1289_vm4, %v4503_v7, 0.0 }
0x1588   : > { %3038 = vadd.xlane.f32.xlu1 %v3037_v9 }
0x1613   : > { %v3036_v12 = vpop.xlane.xlu0 %3035 }
0x1614   : > { %4504 = vrcp.f32 %v3036_v12 }
0x1615   : > { %v3039_v14 = vpop.xlane.xlu1 %3038 }
0x1616   : > { %4506 = vrcp.f32 %v3039_v14 }
0x161e   : > { %v4505_v1 = vpop.eup %4504 }
0x161f   : > { %v3041_v20 = vmul.f32 %v4505_v1, %v4501_v2 }
0x1620   : > { %v4507_v59 = vpop.eup %4506 }
0x1621   : > { %v3044_v55 = vpack.c.bf16 %v3041_v20, %v3041_v20  ;;  %v3043_v63 = vmul.f32 %v4507_v59, %v4503_v7  ;;  %v4021_v7 = vld [vmem:[%s5428_s3] ss:$0 sm:$0xff]  ;;  %v4438_v20 = vld [vmem:[%s4782_s28 + $0x10] sm:$0xff]   ;;  %v4439_v59 = vld [vmem:[%s4782_s28 + $0x18] sm:$0xff]  }
0x1623   : > { %4357 = vmatmul.mubr.msk.bf16.vlgmr.msra.gmra.mrb[64].mxu0 %vm1289_vm4, %v3044_v55  ;;  %v3045_v15 = vpack.c.bf16 %v3043_v63, %v3043_v63  ;;  %v4022_v55 = vld [vmem:[%s5429_s4] ss:$0 sm:$0xff] }
0x1624   : > { %4370 = vmatprep.mubr.msk.bf16.mxu0 %vm4553_vm1, %v4552_v3  ;;  %4367 = vmatpush3.bf16.msra.mxu0 %v4432_v19 }
0x1625   : > { %4363 = vmatmul.mubr.msk.bf16.vlgmr.msra.gmra.mrb[72].mxu1 %vm1289_vm4, %v3045_v15  ;;  %4368 = vmatprep.subr.bf16.mxu0 %v4552_v3 }
0x1626   : > { %4378 = vmatprep.mubr.msk.bf16.mxu1 %vm4553_vm1, %v4552_v3  ;;  %4375 = vmatpush3.bf16.msra.mxu1 %v4434_v50 }
0x1627   : > { %4376 = vmatprep.subr.bf16.mxu1 %v4552_v3 }
0x1628   : > { %4369 = vmatpush3.bf16.msra.mxu0 %v4433_v5 }
0x1629   : > { %4382 = vmatprep.subr.bf16.mxu0 %v4552_v3 }
0x162a   : > { %4377 = vmatpush3.bf16.msra.mxu1 %v4435_v21  ;;  %v4033_v21 = vld [vmem:[%s1090_s16] ss:$0 sm:$0xff] }
0x16f6   : > { %v3083_v23 = vpop.f32.mrb[64].mxu0 }
0x16f7   : > { %v3132_v6 = vmul.f32 %v4973_v48, %v3083_v23  ;;  %v4358_v25 = vpop.f32.mrb[65].mxu0 }
0x16f8   : > { %v3086_v22 = vpop.f32.mrb[66].mxu0  ;;  %v3126_v11 = vpop.f32.mrb[72].mxu1 }
0x16f9   : > { %v3134_v26 = vadd.f32 %v3132_v6, %v2930_v39  ;;  %v4359_v27 = vpop.f32.mrb[67].mxu0  ;;  %v3133_v28 = vmul.f32 %v4973_v48, %v3126_v11  ;;  %v4364_v29 = vpop.f32.mrb[73].mxu1 }
0x16fa   : > { %v3129_v8 = vpop.f32.mrb[74].mxu1 }
0x16fb   : > { %v3135_v30 = vadd.f32 %v3133_v28, %v2931_v41  ;;  %v4365_v31 = vpop.f32.mrb[75].mxu1 }
0x16fd   : > { %v3136_v32 = vpack.c.bf16 %v3135_v30, %v3134_v26 }
0x16ff   : > { %4371 = vmatmul.mubr.msk.bf16.vlgmr.msra.gmra.mrb[68].mxu0 %vm1132_vm2, %v3136_v32 }
0x1700   : > { %4390 = vmatprep.mubr.msk.bf16.mxu0 %vm4553_vm1, %v4552_v3  ;;  %4383 = vmatpush3.bf16.msra.mxu0 %v4436_v53 }
0x1701   : > { %4384 = vmatprep.subr.bf16.mxu0 %v4552_v3 }
0x1704   : > { %4385 = vmatpush3.bf16.msra.mxu0 %v4437_v13 }
0x1705   : > { %4386 = vmatprep.subr.bf16.mxu0 %v4552_v3 }
0x1708   : > { %4387 = vmatpush3.bf16.msra.mxu0 %v4438_v20  ;;  %v4527_v20 = vld [vmem:[%s5433_s24 + $0x28] ss:$16 sps:$4 sm:$0xff] (!%p4034_p6)  }
0x1709   : > { %4388 = vmatprep.subr.bf16.mxu0 %v4552_v3  ;;  %v4026_v3 = vld [vmem:[%s1084_s22] ss:$0 sm:$0xff] }
0x170c   : > { %4389 = vmatpush3.bf16.msra.mxu0 %v4439_v59 }
0x17d2   : > { %v3197_v57 = vpop.f32.mrb[68].mxu0 }
0x17d3   : > { %v3198_v56 = vadd.f32 %v4016_v33, %v3197_v57  ;;  %v4372_v54 = vpop.f32.mrb[69].mxu0 }
0x17d4   : > { %v3200_v18 = vpop.f32.mrb[70].mxu0 }
0x17d5   : > { %v3201_v48 = vadd.f32 %v4016_v33, %v3200_v18  ;;  %v4373_v10 = vpop.f32.mrb[71].mxu0  ;;  %v3204_v39 = vadd.f32 %v3198_v56, %v5064_v44 }
0x17d7   : > { %v3208_v34 = vsel %vm1132_vm2, %v3204_v39, 0.0  ;;  %v3205_v35 = vadd.f32 %v3201_v48, %v5066_v45 }
0x17d8   : > { %3209 = vadd.xlane.f32.xlu0 %v3208_v34 }
0x17d9   : > { %v3211_v36 = vsel %vm1132_vm2, %v3205_v35, 0.0 }
0x17da   : > { %3212 = vadd.xlane.f32.xlu1 %v3211_v36 }
0x1865   : > { %v3210_v37 = vpop.xlane.xlu0 %3209 }
0x1866   : > { %v3214_v38 = vmul.f32 0.03125, %v3210_v37 }
0x1867   : > { %v3213_v41 = vpop.xlane.xlu1 %3212 }
0x1868   : > { %v3216_v40 = vsub.f32 %v3204_v39, %v3214_v38  ;;  %v3215_v42 = vmul.f32 0.03125, %v3213_v41 }
0x186a   : > { %v3217_v52 = vsub.f32 %v3205_v35, %v3215_v42  ;;  %v3218_v43 = vmul.f32 %v3216_v40, %v3216_v40 }
0x186c   : > { %v3220_v44 = vsel %vm1132_vm2, %v3218_v43, 0.0  ;;  %v3219_v47 = vmul.f32 %v3217_v52, %v3217_v52 }
0x186d   : > { %3221 = vadd.xlane.f32.xlu0 %v3220_v44 }
0x186e   : > { %v3223_v45 = vsel %vm1132_vm2, %v3219_v47, 0.0  ;;  %v4032_v47 = vld [vmem:[%s1087_s5] ss:$0 sm:$0xff] }
0x186f   : > { %3224 = vadd.xlane.f32.xlu1 %v3223_v45 }
0x18fa   : > { %v3222_v46 = vpop.xlane.xlu0 %3221 }
0x18fb   : > { %v3226_v51 = vmul.f32 0.03125, %v3222_v46 }
0x18fc   : > { %v3225_v62 = vpop.xlane.xlu1 %3224 }
0x18fd   : > { %v3228_v49 = vadd.f32 1e-05, %v3226_v51  ;;  %v3227_v16 = vmul.f32 0.03125, %v3225_v62 }
0x18ff   : > { %4508 = vrsqrt.f32 %v3228_v49  ;;  %v3229_v60 = vadd.f32 1e-05, %v3227_v16  ;;  %v4516_v49 = vld [vmem:[%s5433_s24 + $0x4] ss:$16 sps:$4 sm:$0xff] (!%p4034_p6)  }
0x1900   : > { %3556 = vmatprep.subr.bf16.mxu0 (!%p4034_p6), %v4516_v49 }
0x1901   : > { %4510 = vrsqrt.f32 %v3229_v60  ;;  %v4518_v60 = vld [vmem:[%s5433_s24 + $0xc] ss:$16 sps:$4 sm:$0xff] (!%p4034_p6)  }
0x1902   : > { %3597 = vmatprep.subr.bf16.mxu1 (!%p4034_p6), %v4518_v60 }
0x1909   : > { %v4509_v58 = vpop.eup %4508 }
0x190a   : > { %v3232_v24 = vmul.f32 %v4509_v58, %v3216_v40  ;;  %v4556_v58 = vmov (!%p4034_p6), 0  }
0x190b   : > { %v4511_v0 = vpop.eup %4510 }
0x190c   : > { %v3240_v2 = vmul.f32 %v4020_v61, %v3232_v24  ;;  %v3233_v4 = vmul.f32 %v4511_v0, %v3217_v52  ;;  %v4520_v0 = vld [vmem:[%s5433_s24] ss:$16 sps:$4 sm:$0xff] (!%p4034_p6)  }
0x190e   : > { %v3241_v9 = vmul.f32 %v4020_v61, %v3233_v4  ;;  %v3248_v12 = vadd.f32 %v4021_v7, %v3240_v2  ;;  %v4521_v2 = vld [vmem:[%s5433_s24 + $0x8] ss:$16 sps:$4 sm:$0xff] (!%p4034_p6)  }
0x1910   : > { %v3249_v14 = vadd.f32 %v4021_v7, %v3241_v9  ;;  %v4522_v7 = vld [vmem:[%s5433_s24 + $0x24] ss:$16 sps:$4 sm:$0xff] (!%p4034_p6)  }
0x1912   : > { %v3250_v1 = vpack.c.bf16 %v3249_v14, %v3248_v12 }
0x1914   : > { %4379 = vmatmul.mubr.msk.bf16.vlgmr.msra.gmra.mrb[76].mxu1 %vm1132_vm2, %v3250_v1 }
0x1915   : > { %3629 = vmatprep.mubr.bf16.mxu1 (!%p4034_p6), %v4556_v58  ;;  %3598 = vmatpush1.bf16.msra.mxu1 (!%p4034_p6), %v4521_v2 }
0x19e7   : > { %v3311_v63 = vpop.f32.mrb[76].mxu1 }
0x19e8   : > { %v3312_v15 = vadd.f32 %v4022_v55, %v3311_v63  ;;  %v4380_v19 = vpop.f32.mrb[77].mxu1 }
0x19e9   : > { %v3314_v5 = vpop.f32.mrb[78].mxu1 }
0x19ea   : > { %v3315_v23 = vadd.f32 %v4022_v55, %v3314_v5  ;;  %v4381_v6 = vpop.f32.mrb[79].mxu1  ;;  %v3318_v25 = vmax.f32 %v3312_v15, 0.0 }
0x19ec   : > { %v3319_v22 = vmax.f32 %v3315_v23, 0.0 }
0x19ee   : > { %v3320_v26 = vpack.c.bf16 %v3319_v22, %v3318_v25 }
0x19f0   : > { %4391 = vmatmul.mubr.msk.bf16.vlgmr.msra.gmra.mrb[72].mxu0 %vm3360_vm15, %v3320_v26 }
0x19f1   : > { %3588 = vmatprep.mubr.bf16.mxu0 (!%p4034_p6), %v4556_v58  ;;  %3557 = vmatpush1.bf16.msra.mxu0 (!%p4034_p6), %v4520_v0 }
0x19f2   : > { %3558 = vmatprep.subr.bf16.mxu0 (!%p4034_p6), %v4522_v7 }
0x1ac3   : > { %v3398_v11 = vpop.f32.mrb[72].mxu0 }
0x1ac4   : > { %v3399_v27 = vadd.f32 %v4026_v3, %v3398_v11  ;;  %v4392_v28 = vpop.f32.mrb[73].mxu0 }
0x1ac5   : > { %v3401_v29 = vpop.f32.mrb[74].mxu0 }
0x1ac6   : > { %v3402_v8 = vadd.f32 %v4026_v3, %v3401_v29  ;;  %v4393_v30 = vpop.f32.mrb[75].mxu0  ;;  %v3405_v31 = vadd.f32 %v3399_v27, %v3248_v12  ;;  %v4524_v12 = vld [vmem:[%s5433_s24 + $0x2c] ss:$16 sps:$4 sm:$0xff] (!%p4034_p6)  }
0x1ac7   : > { %3599 = vmatprep.subr.bf16.mxu1 (!%p4034_p6), %v4524_v12 }
0x1ac8   : > { %v3409_v32 = vsel %vm1132_vm2, %v3405_v31, 0.0  ;;  %v3406_v33 = vadd.f32 %v3402_v8, %v3249_v14  ;;  %v4526_v14 = vld [vmem:[%s5433_s24 + $0x20] ss:$16 sps:$4 sm:$0xff] (!%p4034_p6)   ;;  %3600 = vmatpush1.bf16.msra.mxu1 (!%p4034_p6), %v4527_v20  ;;  %v3487_v8 = vshrl.u32 (!%p4034_p6), %v1177_v17, 7 }
0x1ac9   : > { %3410 = vadd.xlane.f32.xlu0 %v3409_v32  ;;  %3559 = vmatpush1.bf16.msra.mxu0 (!%p4034_p6), %v4526_v14  ;;  %v3484_v32 = vld [vmem:[%s5434_s1] sm:$0xf] (!%p4034_p6) }
0x1aca   : > { %v3412_v57 = vsel %vm1132_vm2, %v3406_v33, 0.0  ;;  %v3488_v30 = vsub.s32 (!%p4034_p6), 0, %v3487_v8 }
0x1acb   : > { %3413 = vadd.xlane.f32.xlu1 %v3412_v57  ;;  %v4557_v57 = vmov (!%p4034_p6), 1983009808  }
0x1b56   : > { %v3411_v56 = vpop.xlane.xlu0 %3410 }
0x1b57   : > { %v3415_v54 = vmul.f32 0.03125, %v3411_v56  ;;  %v3645_v56 = vunpack.c.l.s4 (!%p4034_p6), %v4557_v57 }
0x1b58   : > { %v3414_v18 = vpop.xlane.xlu1 %3413 }
0x1b59   : > { %v3417_v48 = vsub.f32 %v3405_v31, %v3415_v54  ;;  %v3416_v10 = vmul.f32 0.03125, %v3414_v18  ;;  %v3496_v31 = vsub.s32 (!%p4034_p6), 2, %v3487_v8  ;;  %v3500_v54 = vsub.s32 (!%p4034_p6), 3, %v3487_v8 }
0x1b5a   : > { %v3489_v18 = vrot.slane (!%p4034_p6), %v3484_v32, %v3488_v30 }
0x1b5b   : > { %v3418_v39 = vsub.f32 %v3406_v33, %v3416_v10  ;;  %v3419_v34 = vmul.f32 %v3417_v48, %v3417_v48  ;;  %v3492_v33 = vsub.s32 (!%p4034_p6), 1, %v3487_v8 }
0x1b5d   : > { %v3421_v35 = vsel %vm1132_vm2, %v3419_v34, 0.0  ;;  %v3420_v36 = vmul.f32 %v3418_v39, %v3418_v39  ;;  %v3493_v10 = vrot.slane (!%p4034_p6), %v3484_v32, %v3492_v33  ;;  %v3501_v34 = vrot.slane (!%p4034_p6), %v3484_v32, %v3500_v54 }
0x1b5e   : > { %3422 = vadd.xlane.f32.xlu0 %v3421_v35 }
0x1b5f   : > { %v3424_v37 = vsel %vm1132_vm2, %v3420_v36, 0.0 }
0x1b60   : > { %3425 = vadd.xlane.f32.xlu1 %v3424_v37 }
0x1beb   : > { %v3423_v38 = vpop.xlane.xlu0 %3422 }
0x1bec   : > { %v3427_v41 = vmul.f32 0.03125, %v3423_v38 }
0x1bed   : > { %v3426_v40 = vpop.xlane.xlu1 %3425 }
0x1bee   : > { %v3429_v42 = vadd.f32 1e-05, %v3427_v41  ;;  %v3428_v52 = vmul.f32 0.03125, %v3426_v40 }
0x1bf0   : > { %4512 = vrsqrt.f32 %v3429_v42  ;;  %v3430_v43 = vadd.f32 1e-05, %v3428_v52 }
0x1bf2   : > { %4514 = vrsqrt.f32 %v3430_v43 }
0x1bfa   : > { %v4513_v44 = vpop.eup %4512 }
0x1bfb   : > { %v3433_v45 = vmul.f32 %v4513_v44, %v3417_v48  ;;  %v3497_v48 = vrot.slane (!%p4034_p6), %v3484_v32, %v3496_v31 }
0x1bfc   : > { %v4515_v50 = vpop.eup %4514 }
0x1bfd   : > { %v3441_v53 = vmul.f32 %v4032_v47, %v3433_v45  ;;  %v3434_v13 = vmul.f32 %v4515_v50, %v3418_v39  ;;  %3456 = sbr.rel (%p4034_p6) target bundleno = 7415 (0x1cf7), region = 124  ;;  %v3646_v39 = vunpack.c.0.s8 (!%p4034_p6), %v3645_v56 }
0x1bff   : > { %v3449_v46 = vadd.f32 %v4033_v21, %v3441_v53  ;;  %v3442_v51 = vmul.f32 %v4032_v47, %v3434_v13  ;;  %v3649_v42 = vsub.s32 (!%p4034_p6), %v3646_v39, %v3487_v8 }
0x1c01   : > { %3451 = vst.msk [vmem:[#allocation2] sm:$0xff] %vm1132_vm2, %v3449_v46  ;;  %v3450_v62 = vadd.f32 %v4033_v21, %v3442_v51  ;;  %v3457_v16 = vsel (!%p4034_p6), %vm1132_vm2, %v3449_v46, 0.0 }
0x1c02   : > { %v3458_v61 = vrot.slane (!%p4034_p6), %v3457_v16, 4 }
0x1c03   : > { %3452 = vst.msk [vmem:[#allocation2 + $0x8] sm:$0xff] %vm1132_vm2, %v3450_v62  ;;  %v3464_v24 = vsel (!%p4034_p6), %vm1132_vm2, %v3450_v62, 0.0 }
0x1c04   : > { %v3465_v4 = vrot.slane %v3464_v24, 4  ;;  %v3459_v9 = vadd.f32 %v3458_v61, %v3457_v16 }
0x1c06   : > { %v3466_v1 = vadd.f32 %v3465_v4, %v3464_v24  ;;  %v3460_v59 = vrot.slane %v3459_v9, 2 }
0x1c08   : > { %v3467_v55 = vrot.slane %v3466_v1, 2  ;;  %v3461_v63 = vadd.f32 %v3460_v59, %v3459_v9 }
0x1c0a   : > { %v3468_v15 = vadd.f32 %v3467_v55, %v3466_v1  ;;  %v3462_v19 = vrot.slane %v3461_v63, 1 }
0x1c0c   : > { %v3469_v5 = vrot.slane %v3468_v15, 1  ;;  %v3463_v23 = vadd.f32 %v3462_v19, %v3461_v63 }
0x1c0e   : > { %v3470_v6 = vadd.f32 %v3469_v5, %v3468_v15  ;;  %v3472_v25 = vmul.f32 0.125, %v3463_v23 }
0x1c10   : > { %v3473_v22 = vmul.f32 0.125, %v3470_v6  ;;  %v3474_v26 = vpack.c.bf16 %v3472_v25, %v3472_v25 }
0x1c12   : > { %v3475_v3 = vpack.c.bf16 %v3473_v22, %v3473_v22  ;;  %v3508_v11 = vunpack.c.l.b16 %v3474_v26 }
0x1c14   : > { %v3509_v27 = vunpack.c.l.b16 %v3475_v3 }
0x1c16   : > { %v3511_v28 = vsel %vm3510_vm0, %v3509_v27, %v3508_v11 }
0x1c17   : > { %v3512_v29 = vpack.c.b16 %v3511_v28, %v3511_v28 }
0x1c19   : > { %4043 = vmatmul.mubr.msk.bf16.vlgmr.msra.gmra.mrb[0].mxu0 %vm1132_vm2, %v3512_v29  ;;  %4044 = vmatmul.mubr.msk.bf16.vlgmr.msra.gmra.mrb[0].mxu1 %vm1132_vm2, %v3512_v29 }
0x1cec   : > { %v3590_v35 = vpop.f32.mrb[0].mxu0  ;;  %v3631_v36 = vpop.f32.mrb[0].mxu1 }
0x1ced   : > { %v3591_v37 = vadd.f32 %v3590_v35, %v3489_v18  ;;  %v3632_v38 = vadd.f32 %v3631_v36, %v3497_v48  ;;  %v3592_v17 = vpop.f32.mrb[1].mxu0  ;;  %v3633_v41 = vpop.f32.mrb[1].mxu1 }
0x1cee   : > { %v3593_v40 = vadd.f32 %v3592_v17, %v3493_v10  ;;  %v3634_v52 = vadd.f32 %v3633_v41, %v3501_v34  ;;  %v3594_v43 = vpop.f32.mrb[2].mxu0  ;;  %v3635_v44 = vpop.f32.mrb[2].mxu1 }
0x1cef   : > { %v3595_v47 = vpop.f32.mrb[3].mxu0  ;;  %v3636_v45 = vpop.f32.mrb[3].mxu1 }
0x1cf0   : > { %v3642_v50 = vcombine.low %v3591_v37, %v3593_v40  ;;  %v3643_v21 = vcombine.low %v3632_v38, %v3634_v52 }
0x1cf2   : > { %v3650_v53 = vrot.slane %v3642_v50, %v3649_v42  ;;  %v3657_v13 = vrot.slane %v3643_v21, %v3649_v42 }
0x1cf4   : > { %v3658_v46 = vcombine.low %v3650_v53, %v3657_v13 }
0x1cf6   : > { %3660 = vst [vmem:[%s5435_s0] sm:$0xff] %v3658_v46 }
0x1cf7 PF: > { %s5436_s6 = sld [smem:[#allocation5_spill]]  ;;  %s5437_s5 = sld [smem:[#allocation4_spill]] }
0x1cf8   : > { %s5438_s26 = sld [smem:[#allocation6_spill]] }
0x1cfd   : > { %s34_s27 = sadd.s32 1, %s5436_s6  }
0x1cfe   : > { %p31_p7 = scmp.ge.s32.totalorder %s34_s27, 4  }
0x1d00   :  { %33 = sbr.rel (!%p31_p7) target bundleno = 18 (0x12), region = 217 }

</bundles_post_ra>
